<compile_context>
chip_gen: v7x
topology: tpu7x:2x2x1
jax: 0.10.0
libtpu: 0.0.40
codegen_flags: <defaults>
</compile_context>

<pallas_src>
import functools
import math

import jax
import jax.numpy as jnp
from jax.experimental import pallas as pl
from jax.experimental.pallas import tpu as pltpu

GRID_SIZE = 5
SPLINE_ORDER = 3
GRID_RANGE = (-1.0, 1.0)
N_COEFF = GRID_SIZE + SPLINE_ORDER        # B-spline bases per input feature
N_SLABS = N_COEFF + 1                     # + 1 SiLU slab (base path folded in)

MATMUL_DTYPE = jnp.bfloat16               # MXU operand dtype (f32 accumulate)
LANE = 128
SUBLANE = 8
BATCH_TILE = 256                          # max batch tile (sublane dim)
OUT_TILE = 256                            # max out-feature tile (lane dim)
VMEM_LIMIT_BYTES = 48 * 1024 * 1024       # > default scoped, < v7x 64 MiB


def _round_up(n, m):
    return ((n + m - 1) // m) * m


def _pad_feature_dim(d):
    """Lane-dense padding; divisible by OUT_TILE when it will be tiled."""
    if d <= OUT_TILE:
        return _round_up(d, LANE)
    return _round_up(d, OUT_TILE)


def _pad_batch_dim(b):
    if b <= BATCH_TILE:
        return _round_up(b, SUBLANE)
    return _round_up(b, BATCH_TILE)


# --------------------------------------------------------------------------- #
# Pallas kernel: one KANLinear layer (base + spline paths, single fused dot).
# --------------------------------------------------------------------------- #
def kan_linear_kernel(x_ref, knots_ref, inv_ref, w_ref, out_ref, bcat_ref, *,
                      spline_order):
    in_p = x_ref.shape[1]
    g = knots_ref.shape[0]                                   # number of knots

    # Build the fused [B-spline bases ++ SiLU] slab only on the first
    # out-tile of each batch tile; later out-tiles reuse the VMEM scratch.
    @pl.when(pl.program_id(1) == 0)
    def _build_bases():
        x = x_ref[...]                                       # (TB, In_p) f32

        # base path activation: SiLU(x) = x * sigmoid(x) (EUP exp + vrcp)
        act = x * pl.reciprocal(1.0 + jnp.exp(-x), approx=True)

        # knots lane-major: row j = knot t_j for every input feature.
        knot = [knots_ref[pl.ds(j, 1), :] for j in range(g)]        # (1, In_p)

        def inv_row(k, j):   # 1/(t_{j+k} - t_j), precomputed, 0 if degenerate
            return inv_ref[pl.ds((k - 1) * g + j, 1), :]            # (1, In_p)

        # degree-0 bases: indicator t_j <= x < t_{j+1}; one compare per knot
        ge = [x >= knot[j] for j in range(g)]
        bases = [(ge[j] & (~ge[j + 1])).astype(jnp.float32)
                 for j in range(g - 1)]

        # raise degree in place (new[j] reads only old[j], old[j+1])
        n_bases = g - 1
        for k in range(1, spline_order + 1):
            n_new = n_bases - 1
            for j in range(n_new):
                left = (x - knot[j]) * inv_row(k, j) * bases[j]
                right = (knot[j + k + 1] - x) * inv_row(k, j + 1) * bases[j + 1]
                bases[j] = left + right
            n_bases = n_new
        # bases[:n_bases] (= grid_size + spline_order slabs), each (TB, In_p)

        # write finalized slabs straight into the bf16 scratch (no concat)
        for j in range(n_bases):
            bcat_ref[:, j * in_p:(j + 1) * in_p] = bases[j].astype(MATMUL_DTYPE)
        bcat_ref[:, n_bases * in_p:(n_bases + 1) * in_p] = act.astype(MATMUL_DTYPE)

    # single fused contraction over (coeff+1, in):
    # (TB, (K+1)*In_p) @ ((K+1)*In_p, TO) -> base_out + spline_out in one dot
    out_ref[...] = jnp.dot(bcat_ref[...], w_ref[...],
                           preferred_element_type=jnp.float32)


def kan_linear_forward(x_p, layer):
    """x_p: (B_p, In_p) f32, already lane/sublane padded. Returns (B_p, Out_p)."""
    b_p, in_p = x_p.shape
    kw, out_p = layer["fused_w"].shape            # kw = N_SLABS * In_p
    g = layer["knots"].shape[0]

    tb = min(b_p, BATCH_TILE)
    to = min(out_p, OUT_TILE)

    kernel = functools.partial(kan_linear_kernel, spline_order=SPLINE_ORDER)
    return pl.pallas_call(
        kernel,
        out_shape=jax.ShapeDtypeStruct((b_p, out_p), jnp.float32),
        grid=(b_p // tb, out_p // to),
        in_specs=[
            pl.BlockSpec((tb, in_p), lambda b, o: (b, 0)),                  # x
            pl.BlockSpec((g, in_p), lambda b, o: (0, 0)),                   # knots
            pl.BlockSpec((SPLINE_ORDER * g, in_p), lambda b, o: (0, 0)),    # 1/dknot
            pl.BlockSpec((kw, to), lambda b, o: (0, o)),                    # fused W
        ],
        out_specs=pl.BlockSpec((tb, to), lambda b, o: (b, o)),
        scratch_shapes=[pltpu.VMEM((tb, kw), MATMUL_DTYPE)],                # b_cat
        compiler_params=pltpu.CompilerParams(
            # out axis must be "arbitrary": the basis cache is (re)built at
            # o == 0 and reused by later o within the same batch tile.
            dimension_semantics=("parallel", "arbitrary"),
            vmem_limit_bytes=VMEM_LIMIT_BYTES,
        ),
    )(x_p, layer["knots"], layer["inv_diff"], layer["fused_w"])


# --------------------------------------------------------------------------- #
# Parameter construction (deterministic, synthetic init) + one-time prep.
# --------------------------------------------------------------------------- #
def init_kan_layer(key, in_f, out_f):
    h = (GRID_RANGE[1] - GRID_RANGE[0]) / GRID_SIZE
    g1 = (jnp.arange(-SPLINE_ORDER, GRID_SIZE + SPLINE_ORDER + 1,
                     dtype=jnp.float32) * h + GRID_RANGE[0])
    grid = jnp.broadcast_to(g1, (in_f, g1.shape[0]))             # (In, G)

    k1, k2, k3 = jax.random.split(key, 3)
    bound = 1.0 / math.sqrt(in_f)
    base_weight = jax.random.uniform(k1, (out_f, in_f), jnp.float32,
                                     minval=-bound, maxval=bound)
    spline_weight = jax.random.uniform(k2, (out_f, in_f, N_COEFF), jnp.float32,
                                       minval=-0.1, maxval=0.1)
    spline_scaler = jax.random.uniform(k3, (out_f, in_f), jnp.float32,
                                       minval=-bound, maxval=bound)
    return dict(grid=grid, base_weight=base_weight,
                spline_weight=spline_weight, spline_scaler=spline_scaler)


def prepare_layer(raw):
    """One-time prep: fold scaler, fuse base+spline weight, pad, 1/dknot."""
    grid = raw["grid"]                                           # (In, G)
    base_w = raw["base_weight"]                                  # (Out, In)
    spline_w = raw["spline_weight"] * raw["spline_scaler"][:, :, None]  # (Out,In,K)
    in_f, g = grid.shape
    out_f = base_w.shape[0]
    k = spline_w.shape[-1]                                       # N_COEFF
    in_p = _pad_feature_dim(in_f)
    out_p = _pad_feature_dim(out_f)

    # knots, lane-major (G, In_p); padded feature columns get all-zero knots
    knots = jnp.zeros((g, in_p), jnp.float32).at[:, :in_f].set(grid.T)

    # precomputed reciprocals: inv[k-1, j] = 1/(t_{j+k} - t_j),
    # guarded to 0 where the denominator is 0 (padding / repeated knots).
    inv = jnp.zeros((SPLINE_ORDER, g, in_p), jnp.float32)
    for kk in range(1, SPLINE_ORDER + 1):
        d = knots[kk:, :] - knots[:-kk, :]                       # (g-kk, In_p)
        safe = jnp.where(d == 0.0, 0.0, 1.0 / jnp.where(d == 0.0, 1.0, d))
        inv = inv.at[kk - 1, :g - kk, :].set(safe)
    inv_diff = inv.reshape(SPLINE_ORDER * g, in_p)

    # fused weight: K spline slabs then one base slab, each (In_p, Out_p), bf16
    #   row block j<K, row j*In_p+i  = scaled_spline_weight[out, i, j]
    #   row block K,   row K*In_p+i  = base_weight[out, i]
    fw = jnp.zeros((k + 1, in_p, out_p), MATMUL_DTYPE)
    fw = fw.at[:k, :in_f, :out_f].set(
        jnp.transpose(spline_w, (2, 1, 0)).astype(MATMUL_DTYPE))
    fw = fw.at[k, :in_f, :out_f].set(base_w.T.astype(MATMUL_DTYPE))
    fused_w = fw.reshape((k + 1) * in_p, out_p)

    return dict(knots=knots, inv_diff=inv_diff, fused_w=fused_w,
                in_features=in_f, out_features=out_f,
                in_pad=in_p, out_pad=out_p)


def kan_forward(prepared_layers, x):
    """KAN.forward: chain of KANLinear layers. x: (..., layers_hidden[0])."""
    orig_shape = x.shape
    x2 = x.reshape(-1, orig_shape[-1]).astype(jnp.float32)
    b = x2.shape[0]
    b_p = _pad_batch_dim(b)
    in_p0 = prepared_layers[0]["in_pad"]
    xp = jnp.zeros((b_p, in_p0), jnp.float32).at[:b, :orig_shape[-1]].set(x2)
    for layer in prepared_layers:
        xp = kan_linear_forward(xp, layer)       # stays lane-dense / padded
    out_f = prepared_layers[-1]["out_features"]
    return xp[:b, :out_f].reshape(*orig_shape[:-1], out_f)


# --------------------------------------------------------------------------- #
# Pure-JAX f32 reference (mirrors the PyTorch math) for a sanity check.
# --------------------------------------------------------------------------- #
def _b_splines_ref(x, grid):
    xe = x[:, :, None]
    g = grid[None, :, :]
    bases = ((xe >= g[:, :, :-1]) & (xe < g[:, :, 1:])).astype(x.dtype)
    for k in range(1, SPLINE_ORDER + 1):
        bases = ((xe - g[:, :, :-(k + 1)]) / (g[:, :, k:-1] - g[:, :, :-(k + 1)])
                 * bases[:, :, :-1]
                 + (g[:, :, k + 1:] - xe) / (g[:, :, k + 1:] - g[:, :, 1:-k])
                 * bases[:, :, 1:])
    return bases


def _kan_forward_ref(params_list, x):
    x = x.reshape(-1, x.shape[-1])
    for p in params_list:
        scaled = p["spline_weight"] * p["spline_scaler"][:, :, None]
        act = x * jax.nn.sigmoid(x)
        base_out = act @ p["base_weight"].T
        bases = _b_splines_ref(x, p["grid"])                      # (B, In, K)
        spline_out = bases.reshape(x.shape[0], -1) @ scaled.reshape(
            scaled.shape[0], -1).T
        x = base_out + spline_out
    return x


# --------------------------------------------------------------------------- #
if __name__ == "__main__":
    layers_hidden = [32, 64, 16]
    batch = 8

    root = jax.random.PRNGKey(0)
    kx, *layer_keys = jax.random.split(root, len(layers_hidden))

    raw_params = [
        init_kan_layer(layer_keys[i], layers_hidden[i], layers_hidden[i + 1])
        for i in range(len(layers_hidden) - 1)
    ]
    # all weight preprocessing happens once, off the forward path
    prepared = [prepare_layer(p) for p in raw_params]

    x = jax.random.uniform(kx, (batch, layers_hidden[0]), jnp.float32,
                           minval=-1.0, maxval=1.0)

    fwd = jax.jit(lambda inp: kan_forward(prepared, inp))
    out = jax.block_until_ready(fwd(x))

    ref = _kan_forward_ref(raw_params, x)
    assert out.shape == (batch, layers_hidden[-1])
    # bf16 MXU operands + approx reciprocal -> looser tolerance vs f32 reference
    assert jnp.allclose(out, ref, rtol=3e-2, atol=3e-2), "mismatch vs reference"

    print("KERNEL_OK")
</pallas_src>

<mosaic_0001>
module attributes {stable_mosaic.version = 11 : i64} {
  func.func @kan_linear_kernel(%arg0: i32, %arg1: i32, %arg2: memref<8x128xf32, #tpu.memory_space<vmem>>, %arg3: memref<12x128xf32, #tpu.memory_space<vmem>>, %arg4: memref<36x128xf32, #tpu.memory_space<vmem>>, %arg5: memref<1152x128xbf16, #tpu.memory_space<vmem>>, %arg6: memref<8x128xf32, #tpu.memory_space<vmem>>, %arg7: memref<8x1152xbf16, #tpu.memory_space<vmem>>) attributes {dimension_semantics = [#tpu.dimension_semantics<parallel>, #tpu.dimension_semantics<arbitrary>], iteration_bounds = array<i64: 1, 1>, scalar_prefetch = 0 : i64, scratch_operands = 1 : i64, tpu.core_type = #tpu.core_type<tc>, window_params = [{transform_indices = @transform_0, window_bounds = array<i64: 8, 128>}, {pipeline_mode = #tpu.pipeline_mode<synchronous>, transform_indices = @transform_1, window_bounds = array<i64: 12, 128>}, {pipeline_mode = #tpu.pipeline_mode<synchronous>, transform_indices = @transform_2, window_bounds = array<i64: 36, 128>}, {transform_indices = @transform_3, window_bounds = array<i64: 1152, 128>}, {transform_indices = @transform_4, window_bounds = array<i64: 8, 128>}]} {
    %c0_i32 = arith.constant 0 : i32
    %0 = arith.cmpi eq, %arg1, %c0_i32 : i32
    %1 = arith.extui %0 : i1 to i32
    %c0_i32_0 = arith.constant 0 : i32
    %2 = arith.cmpi ne, %1, %c0_i32_0 : i32
    scf.if %2 {
      %c0_6 = arith.constant 0 : index
      %c0_7 = arith.constant 0 : index
      %7 = vector.load %arg2[%c0_6, %c0_7] : memref<8x128xf32, #tpu.memory_space<vmem>>, vector<8x128xf32>
      %cst_8 = arith.constant 0.000000e+00 : f32
      %8 = vector.broadcast %cst_8 : f32 to vector<8x128xf32>
      %9 = arith.subf %8, %7 : vector<8x128xf32>
      %10 = math.exp %9 : vector<8x128xf32>
      %cst_9 = arith.constant 1.000000e+00 : f32
      %11 = vector.broadcast %cst_9 : f32 to vector<8x128xf32>
      %12 = arith.addf %11, %10 : vector<8x128xf32>
      %13 = tpu.reciprocal %12 {approx = true} : vector<8x128xf32> -> vector<8x128xf32>
      %14 = arith.mulf %7, %13 : vector<8x128xf32>
      %c0_10 = arith.constant 0 : index
      %c0_11 = arith.constant 0 : index
      %15 = vector.load %arg3[%c0_10, %c0_11] : memref<12x128xf32, #tpu.memory_space<vmem>>, vector<1x128xf32>
      %c1 = arith.constant 1 : index
      %c0_12 = arith.constant 0 : index
      %16 = vector.load %arg3[%c1, %c0_12] : memref<12x128xf32, #tpu.memory_space<vmem>>, vector<1x128xf32>
      %c2 = arith.constant 2 : index
      %c0_13 = arith.constant 0 : index
      %17 = vector.load %arg3[%c2, %c0_13] : memref<12x128xf32, #tpu.memory_space<vmem>>, vector<1x128xf32>
      %c3 = arith.constant 3 : index
      %c0_14 = arith.constant 0 : index
      %18 = vector.load %arg3[%c3, %c0_14] : memref<12x128xf32, #tpu.memory_space<vmem>>, vector<1x128xf32>
      %c4 = arith.constant 4 : index
      %c0_15 = arith.constant 0 : index
      %19 = vector.load %arg3[%c4, %c0_15] : memref<12x128xf32, #tpu.memory_space<vmem>>, vector<1x128xf32>
      %c5 = arith.constant 5 : index
      %c0_16 = arith.constant 0 : index
      %20 = vector.load %arg3[%c5, %c0_16] : memref<12x128xf32, #tpu.memory_space<vmem>>, vector<1x128xf32>
      %c6 = arith.constant 6 : index
      %c0_17 = arith.constant 0 : index
      %21 = vector.load %arg3[%c6, %c0_17] : memref<12x128xf32, #tpu.memory_space<vmem>>, vector<1x128xf32>
      %c7 = arith.constant 7 : index
      %c0_18 = arith.constant 0 : index
      %22 = vector.load %arg3[%c7, %c0_18] : memref<12x128xf32, #tpu.memory_space<vmem>>, vector<1x128xf32>
      %c8 = arith.constant 8 : index
      %c0_19 = arith.constant 0 : index
      %23 = vector.load %arg3[%c8, %c0_19] : memref<12x128xf32, #tpu.memory_space<vmem>>, vector<1x128xf32>
      %c9 = arith.constant 9 : index
      %c0_20 = arith.constant 0 : index
      %24 = vector.load %arg3[%c9, %c0_20] : memref<12x128xf32, #tpu.memory_space<vmem>>, vector<1x128xf32>
      %c10 = arith.constant 10 : index
      %c0_21 = arith.constant 0 : index
      %25 = vector.load %arg3[%c10, %c0_21] : memref<12x128xf32, #tpu.memory_space<vmem>>, vector<1x128xf32>
      %c11 = arith.constant 11 : index
      %c0_22 = arith.constant 0 : index
      %26 = vector.load %arg3[%c11, %c0_22] : memref<12x128xf32, #tpu.memory_space<vmem>>, vector<1x128xf32>
      %27 = vector.broadcast %15 : vector<1x128xf32> to vector<8x128xf32>
      %28 = arith.cmpf oge, %7, %27 : vector<8x128xf32>
      %29 = vector.broadcast %16 : vector<1x128xf32> to vector<8x128xf32>
      %30 = arith.cmpf oge, %7, %29 : vector<8x128xf32>
      %31 = vector.broadcast %17 : vector<1x128xf32> to vector<8x128xf32>
      %32 = arith.cmpf oge, %7, %31 : vector<8x128xf32>
      %33 = vector.broadcast %18 : vector<1x128xf32> to vector<8x128xf32>
      %34 = arith.cmpf oge, %7, %33 : vector<8x128xf32>
      %35 = vector.broadcast %19 : vector<1x128xf32> to vector<8x128xf32>
      %36 = arith.cmpf oge, %7, %35 : vector<8x128xf32>
      %37 = vector.broadcast %20 : vector<1x128xf32> to vector<8x128xf32>
      %38 = arith.cmpf oge, %7, %37 : vector<8x128xf32>
      %39 = vector.broadcast %21 : vector<1x128xf32> to vector<8x128xf32>
      %40 = arith.cmpf oge, %7, %39 : vector<8x128xf32>
      %41 = vector.broadcast %22 : vector<1x128xf32> to vector<8x128xf32>
      %42 = arith.cmpf oge, %7, %41 : vector<8x128xf32>
      %43 = vector.broadcast %23 : vector<1x128xf32> to vector<8x128xf32>
      %44 = arith.cmpf oge, %7, %43 : vector<8x128xf32>
      %45 = vector.broadcast %24 : vector<1x128xf32> to vector<8x128xf32>
      %46 = arith.cmpf oge, %7, %45 : vector<8x128xf32>
      %47 = vector.broadcast %25 : vector<1x128xf32> to vector<8x128xf32>
      %48 = arith.cmpf oge, %7, %47 : vector<8x128xf32>
      %49 = vector.broadcast %26 : vector<1x128xf32> to vector<8x128xf32>
      %50 = arith.cmpf oge, %7, %49 : vector<8x128xf32>
      %cst_23 = arith.constant dense<true> : vector<8x128xi1>
      %51 = arith.xori %30, %cst_23 : vector<8x128xi1>
      %52 = arith.andi %28, %51 : vector<8x128xi1>
      %53 = arith.extui %52 : vector<8x128xi1> to vector<8x128xi32>
      %54 = arith.sitofp %53 : vector<8x128xi32> to vector<8x128xf32>
      %cst_24 = arith.constant dense<true> : vector<8x128xi1>
      %55 = arith.xori %32, %cst_24 : vector<8x128xi1>
      %56 = arith.andi %30, %55 : vector<8x128xi1>
      %57 = arith.extui %56 : vector<8x128xi1> to vector<8x128xi32>
      %58 = arith.sitofp %57 : vector<8x128xi32> to vector<8x128xf32>
      %cst_25 = arith.constant dense<true> : vector<8x128xi1>
      %59 = arith.xori %34, %cst_25 : vector<8x128xi1>
      %60 = arith.andi %32, %59 : vector<8x128xi1>
      %61 = arith.extui %60 : vector<8x128xi1> to vector<8x128xi32>
      %62 = arith.sitofp %61 : vector<8x128xi32> to vector<8x128xf32>
      %cst_26 = arith.constant dense<true> : vector<8x128xi1>
      %63 = arith.xori %36, %cst_26 : vector<8x128xi1>
      %64 = arith.andi %34, %63 : vector<8x128xi1>
      %65 = arith.extui %64 : vector<8x128xi1> to vector<8x128xi32>
      %66 = arith.sitofp %65 : vector<8x128xi32> to vector<8x128xf32>
      %cst_27 = arith.constant dense<true> : vector<8x128xi1>
      %67 = arith.xori %38, %cst_27 : vector<8x128xi1>
      %68 = arith.andi %36, %67 : vector<8x128xi1>
      %69 = arith.extui %68 : vector<8x128xi1> to vector<8x128xi32>
      %70 = arith.sitofp %69 : vector<8x128xi32> to vector<8x128xf32>
      %cst_28 = arith.constant dense<true> : vector<8x128xi1>
      %71 = arith.xori %40, %cst_28 : vector<8x128xi1>
      %72 = arith.andi %38, %71 : vector<8x128xi1>
      %73 = arith.extui %72 : vector<8x128xi1> to vector<8x128xi32>
      %74 = arith.sitofp %73 : vector<8x128xi32> to vector<8x128xf32>
      %cst_29 = arith.constant dense<true> : vector<8x128xi1>
      %75 = arith.xori %42, %cst_29 : vector<8x128xi1>
      %76 = arith.andi %40, %75 : vector<8x128xi1>
      %77 = arith.extui %76 : vector<8x128xi1> to vector<8x128xi32>
      %78 = arith.sitofp %77 : vector<8x128xi32> to vector<8x128xf32>
      %cst_30 = arith.constant dense<true> : vector<8x128xi1>
      %79 = arith.xori %44, %cst_30 : vector<8x128xi1>
      %80 = arith.andi %42, %79 : vector<8x128xi1>
      %81 = arith.extui %80 : vector<8x128xi1> to vector<8x128xi32>
      %82 = arith.sitofp %81 : vector<8x128xi32> to vector<8x128xf32>
      %cst_31 = arith.constant dense<true> : vector<8x128xi1>
      %83 = arith.xori %46, %cst_31 : vector<8x128xi1>
      %84 = arith.andi %44, %83 : vector<8x128xi1>
      %85 = arith.extui %84 : vector<8x128xi1> to vector<8x128xi32>
      %86 = arith.sitofp %85 : vector<8x128xi32> to vector<8x128xf32>
      %cst_32 = arith.constant dense<true> : vector<8x128xi1>
      %87 = arith.xori %48, %cst_32 : vector<8x128xi1>
      %88 = arith.andi %46, %87 : vector<8x128xi1>
      %89 = arith.extui %88 : vector<8x128xi1> to vector<8x128xi32>
      %90 = arith.sitofp %89 : vector<8x128xi32> to vector<8x128xf32>
      %cst_33 = arith.constant dense<true> : vector<8x128xi1>
      %91 = arith.xori %50, %cst_33 : vector<8x128xi1>
      %92 = arith.andi %48, %91 : vector<8x128xi1>
      %93 = arith.extui %92 : vector<8x128xi1> to vector<8x128xi32>
      %94 = arith.sitofp %93 : vector<8x128xi32> to vector<8x128xf32>
      %95 = vector.broadcast %15 : vector<1x128xf32> to vector<8x128xf32>
      %96 = arith.subf %7, %95 : vector<8x128xf32>
      %c0_34 = arith.constant 0 : index
      %c0_35 = arith.constant 0 : index
      %97 = vector.load %arg4[%c0_34, %c0_35] : memref<36x128xf32, #tpu.memory_space<vmem>>, vector<1x128xf32>
      %98 = vector.broadcast %97 : vector<1x128xf32> to vector<8x128xf32>
      %99 = arith.mulf %96, %98 : vector<8x128xf32>
      %100 = arith.mulf %99, %54 : vector<8x128xf32>
      %101 = vector.broadcast %17 : vector<1x128xf32> to vector<8x128xf32>
      %102 = arith.subf %101, %7 : vector<8x128xf32>
      %c1_36 = arith.constant 1 : index
      %c0_37 = arith.constant 0 : index
      %103 = vector.load %arg4[%c1_36, %c0_37] : memref<36x128xf32, #tpu.memory_space<vmem>>, vector<1x128xf32>
      %104 = vector.broadcast %103 : vector<1x128xf32> to vector<8x128xf32>
      %105 = arith.mulf %102, %104 : vector<8x128xf32>
      %106 = arith.mulf %105, %58 : vector<8x128xf32>
      %107 = arith.addf %100, %106 : vector<8x128xf32>
      %108 = vector.broadcast %16 : vector<1x128xf32> to vector<8x128xf32>
      %109 = arith.subf %7, %108 : vector<8x128xf32>
      %c1_38 = arith.constant 1 : index
      %c0_39 = arith.constant 0 : index
      %110 = vector.load %arg4[%c1_38, %c0_39] : memref<36x128xf32, #tpu.memory_space<vmem>>, vector<1x128xf32>
      %111 = vector.broadcast %110 : vector<1x128xf32> to vector<8x128xf32>
      %112 = arith.mulf %109, %111 : vector<8x128xf32>
      %113 = arith.mulf %112, %58 : vector<8x128xf32>
      %114 = vector.broadcast %18 : vector<1x128xf32> to vector<8x128xf32>
      %115 = arith.subf %114, %7 : vector<8x128xf32>
      %c2_40 = arith.constant 2 : index
      %c0_41 = arith.constant 0 : index
      %116 = vector.load %arg4[%c2_40, %c0_41] : memref<36x128xf32, #tpu.memory_space<vmem>>, vector<1x128xf32>
      %117 = vector.broadcast %116 : vector<1x128xf32> to vector<8x128xf32>
      %118 = arith.mulf %115, %117 : vector<8x128xf32>
      %119 = arith.mulf %118, %62 : vector<8x128xf32>
      %120 = arith.addf %113, %119 : vector<8x128xf32>
      %121 = vector.broadcast %17 : vector<1x128xf32> to vector<8x128xf32>
      %122 = arith.subf %7, %121 : vector<8x128xf32>
      %c2_42 = arith.constant 2 : index
      %c0_43 = arith.constant 0 : index
      %123 = vector.load %arg4[%c2_42, %c0_43] : memref<36x128xf32, #tpu.memory_space<vmem>>, vector<1x128xf32>
      %124 = vector.broadcast %123 : vector<1x128xf32> to vector<8x128xf32>
      %125 = arith.mulf %122, %124 : vector<8x128xf32>
      %126 = arith.mulf %125, %62 : vector<8x128xf32>
      %127 = vector.broadcast %19 : vector<1x128xf32> to vector<8x128xf32>
      %128 = arith.subf %127, %7 : vector<8x128xf32>
      %c3_44 = arith.constant 3 : index
      %c0_45 = arith.constant 0 : index
      %129 = vector.load %arg4[%c3_44, %c0_45] : memref<36x128xf32, #tpu.memory_space<vmem>>, vector<1x128xf32>
      %130 = vector.broadcast %129 : vector<1x128xf32> to vector<8x128xf32>
      %131 = arith.mulf %128, %130 : vector<8x128xf32>
      %132 = arith.mulf %131, %66 : vector<8x128xf32>
      %133 = arith.addf %126, %132 : vector<8x128xf32>
      %134 = vector.broadcast %18 : vector<1x128xf32> to vector<8x128xf32>
      %135 = arith.subf %7, %134 : vector<8x128xf32>
      %c3_46 = arith.constant 3 : index
      %c0_47 = arith.constant 0 : index
      %136 = vector.load %arg4[%c3_46, %c0_47] : memref<36x128xf32, #tpu.memory_space<vmem>>, vector<1x128xf32>
      %137 = vector.broadcast %136 : vector<1x128xf32> to vector<8x128xf32>
      %138 = arith.mulf %135, %137 : vector<8x128xf32>
      %139 = arith.mulf %138, %66 : vector<8x128xf32>
      %140 = vector.broadcast %20 : vector<1x128xf32> to vector<8x128xf32>
      %141 = arith.subf %140, %7 : vector<8x128xf32>
      %c4_48 = arith.constant 4 : index
      %c0_49 = arith.constant 0 : index
      %142 = vector.load %arg4[%c4_48, %c0_49] : memref<36x128xf32, #tpu.memory_space<vmem>>, vector<1x128xf32>
      %143 = vector.broadcast %142 : vector<1x128xf32> to vector<8x128xf32>
      %144 = arith.mulf %141, %143 : vector<8x128xf32>
      %145 = arith.mulf %144, %70 : vector<8x128xf32>
      %146 = arith.addf %139, %145 : vector<8x128xf32>
      %147 = vector.broadcast %19 : vector<1x128xf32> to vector<8x128xf32>
      %148 = arith.subf %7, %147 : vector<8x128xf32>
      %c4_50 = arith.constant 4 : index
      %c0_51 = arith.constant 0 : index
      %149 = vector.load %arg4[%c4_50, %c0_51] : memref<36x128xf32, #tpu.memory_space<vmem>>, vector<1x128xf32>
      %150 = vector.broadcast %149 : vector<1x128xf32> to vector<8x128xf32>
      %151 = arith.mulf %148, %150 : vector<8x128xf32>
      %152 = arith.mulf %151, %70 : vector<8x128xf32>
      %153 = vector.broadcast %21 : vector<1x128xf32> to vector<8x128xf32>
      %154 = arith.subf %153, %7 : vector<8x128xf32>
      %c5_52 = arith.constant 5 : index
      %c0_53 = arith.constant 0 : index
      %155 = vector.load %arg4[%c5_52, %c0_53] : memref<36x128xf32, #tpu.memory_space<vmem>>, vector<1x128xf32>
      %156 = vector.broadcast %155 : vector<1x128xf32> to vector<8x128xf32>
      %157 = arith.mulf %154, %156 : vector<8x128xf32>
      %158 = arith.mulf %157, %74 : vector<8x128xf32>
      %159 = arith.addf %152, %158 : vector<8x128xf32>
      %160 = vector.broadcast %20 : vector<1x128xf32> to vector<8x128xf32>
      %161 = arith.subf %7, %160 : vector<8x128xf32>
      %c5_54 = arith.constant 5 : index
      %c0_55 = arith.constant 0 : index
      %162 = vector.load %arg4[%c5_54, %c0_55] : memref<36x128xf32, #tpu.memory_space<vmem>>, vector<1x128xf32>
      %163 = vector.broadcast %162 : vector<1x128xf32> to vector<8x128xf32>
      %164 = arith.mulf %161, %163 : vector<8x128xf32>
      %165 = arith.mulf %164, %74 : vector<8x128xf32>
      %166 = vector.broadcast %22 : vector<1x128xf32> to vector<8x128xf32>
      %167 = arith.subf %166, %7 : vector<8x128xf32>
      %c6_56 = arith.constant 6 : index
      %c0_57 = arith.constant 0 : index
      %168 = vector.load %arg4[%c6_56, %c0_57] : memref<36x128xf32, #tpu.memory_space<vmem>>, vector<1x128xf32>
      %169 = vector.broadcast %168 : vector<1x128xf32> to vector<8x128xf32>
      %170 = arith.mulf %167, %169 : vector<8x128xf32>
      %171 = arith.mulf %170, %78 : vector<8x128xf32>
      %172 = arith.addf %165, %171 : vector<8x128xf32>
      %173 = vector.broadcast %21 : vector<1x128xf32> to vector<8x128xf32>
      %174 = arith.subf %7, %173 : vector<8x128xf32>
      %c6_58 = arith.constant 6 : index
      %c0_59 = arith.constant 0 : index
      %175 = vector.load %arg4[%c6_58, %c0_59] : memref<36x128xf32, #tpu.memory_space<vmem>>, vector<1x128xf32>
      %176 = vector.broadcast %175 : vector<1x128xf32> to vector<8x128xf32>
      %177 = arith.mulf %174, %176 : vector<8x128xf32>
      %178 = arith.mulf %177, %78 : vector<8x128xf32>
      %179 = vector.broadcast %23 : vector<1x128xf32> to vector<8x128xf32>
      %180 = arith.subf %179, %7 : vector<8x128xf32>
      %c7_60 = arith.constant 7 : index
      %c0_61 = arith.constant 0 : index
      %181 = vector.load %arg4[%c7_60, %c0_61] : memref<36x128xf32, #tpu.memory_space<vmem>>, vector<1x128xf32>
      %182 = vector.broadcast %181 : vector<1x128xf32> to vector<8x128xf32>
      %183 = arith.mulf %180, %182 : vector<8x128xf32>
      %184 = arith.mulf %183, %82 : vector<8x128xf32>
      %185 = arith.addf %178, %184 : vector<8x128xf32>
      %186 = vector.broadcast %22 : vector<1x128xf32> to vector<8x128xf32>
      %187 = arith.subf %7, %186 : vector<8x128xf32>
      %c7_62 = arith.constant 7 : index
      %c0_63 = arith.constant 0 : index
      %188 = vector.load %arg4[%c7_62, %c0_63] : memref<36x128xf32, #tpu.memory_space<vmem>>, vector<1x128xf32>
      %189 = vector.broadcast %188 : vector<1x128xf32> to vector<8x128xf32>
      %190 = arith.mulf %187, %189 : vector<8x128xf32>
      %191 = arith.mulf %190, %82 : vector<8x128xf32>
      %192 = vector.broadcast %24 : vector<1x128xf32> to vector<8x128xf32>
      %193 = arith.subf %192, %7 : vector<8x128xf32>
      %c8_64 = arith.constant 8 : index
      %c0_65 = arith.constant 0 : index
      %194 = vector.load %arg4[%c8_64, %c0_65] : memref<36x128xf32, #tpu.memory_space<vmem>>, vector<1x128xf32>
      %195 = vector.broadcast %194 : vector<1x128xf32> to vector<8x128xf32>
      %196 = arith.mulf %193, %195 : vector<8x128xf32>
      %197 = arith.mulf %196, %86 : vector<8x128xf32>
      %198 = arith.addf %191, %197 : vector<8x128xf32>
      %199 = vector.broadcast %23 : vector<1x128xf32> to vector<8x128xf32>
      %200 = arith.subf %7, %199 : vector<8x128xf32>
      %c8_66 = arith.constant 8 : index
      %c0_67 = arith.constant 0 : index
      %201 = vector.load %arg4[%c8_66, %c0_67] : memref<36x128xf32, #tpu.memory_space<vmem>>, vector<1x128xf32>
      %202 = vector.broadcast %201 : vector<1x128xf32> to vector<8x128xf32>
      %203 = arith.mulf %200, %202 : vector<8x128xf32>
      %204 = arith.mulf %203, %86 : vector<8x128xf32>
      %205 = vector.broadcast %25 : vector<1x128xf32> to vector<8x128xf32>
      %206 = arith.subf %205, %7 : vector<8x128xf32>
      %c9_68 = arith.constant 9 : index
      %c0_69 = arith.constant 0 : index
      %207 = vector.load %arg4[%c9_68, %c0_69] : memref<36x128xf32, #tpu.memory_space<vmem>>, vector<1x128xf32>
      %208 = vector.broadcast %207 : vector<1x128xf32> to vector<8x128xf32>
      %209 = arith.mulf %206, %208 : vector<8x128xf32>
      %210 = arith.mulf %209, %90 : vector<8x128xf32>
      %211 = arith.addf %204, %210 : vector<8x128xf32>
      %212 = vector.broadcast %24 : vector<1x128xf32> to vector<8x128xf32>
      %213 = arith.subf %7, %212 : vector<8x128xf32>
      %c9_70 = arith.constant 9 : index
      %c0_71 = arith.constant 0 : index
      %214 = vector.load %arg4[%c9_70, %c0_71] : memref<36x128xf32, #tpu.memory_space<vmem>>, vector<1x128xf32>
      %215 = vector.broadcast %214 : vector<1x128xf32> to vector<8x128xf32>
      %216 = arith.mulf %213, %215 : vector<8x128xf32>
      %217 = arith.mulf %216, %90 : vector<8x128xf32>
      %218 = vector.broadcast %26 : vector<1x128xf32> to vector<8x128xf32>
      %219 = arith.subf %218, %7 : vector<8x128xf32>
      %c10_72 = arith.constant 10 : index
      %c0_73 = arith.constant 0 : index
      %220 = vector.load %arg4[%c10_72, %c0_73] : memref<36x128xf32, #tpu.memory_space<vmem>>, vector<1x128xf32>
      %221 = vector.broadcast %220 : vector<1x128xf32> to vector<8x128xf32>
      %222 = arith.mulf %219, %221 : vector<8x128xf32>
      %223 = arith.mulf %222, %94 : vector<8x128xf32>
      %224 = arith.addf %217, %223 : vector<8x128xf32>
      %225 = vector.broadcast %15 : vector<1x128xf32> to vector<8x128xf32>
      %226 = arith.subf %7, %225 : vector<8x128xf32>
      %c12 = arith.constant 12 : index
      %c0_74 = arith.constant 0 : index
      %227 = vector.load %arg4[%c12, %c0_74] : memref<36x128xf32, #tpu.memory_space<vmem>>, vector<1x128xf32>
      %228 = vector.broadcast %227 : vector<1x128xf32> to vector<8x128xf32>
      %229 = arith.mulf %226, %228 : vector<8x128xf32>
      %230 = arith.mulf %229, %107 : vector<8x128xf32>
      %231 = vector.broadcast %18 : vector<1x128xf32> to vector<8x128xf32>
      %232 = arith.subf %231, %7 : vector<8x128xf32>
      %c13 = arith.constant 13 : index
      %c0_75 = arith.constant 0 : index
      %233 = vector.load %arg4[%c13, %c0_75] : memref<36x128xf32, #tpu.memory_space<vmem>>, vector<1x128xf32>
      %234 = vector.broadcast %233 : vector<1x128xf32> to vector<8x128xf32>
      %235 = arith.mulf %232, %234 : vector<8x128xf32>
      %236 = arith.mulf %235, %120 : vector<8x128xf32>
      %237 = arith.addf %230, %236 : vector<8x128xf32>
      %238 = vector.broadcast %16 : vector<1x128xf32> to vector<8x128xf32>
      %239 = arith.subf %7, %238 : vector<8x128xf32>
      %c13_76 = arith.constant 13 : index
      %c0_77 = arith.constant 0 : index
      %240 = vector.load %arg4[%c13_76, %c0_77] : memref<36x128xf32, #tpu.memory_space<vmem>>, vector<1x128xf32>
      %241 = vector.broadcast %240 : vector<1x128xf32> to vector<8x128xf32>
      %242 = arith.mulf %239, %241 : vector<8x128xf32>
      %243 = arith.mulf %242, %120 : vector<8x128xf32>
      %244 = vector.broadcast %19 : vector<1x128xf32> to vector<8x128xf32>
      %245 = arith.subf %244, %7 : vector<8x128xf32>
      %c14 = arith.constant 14 : index
      %c0_78 = arith.constant 0 : index
      %246 = vector.load %arg4[%c14, %c0_78] : memref<36x128xf32, #tpu.memory_space<vmem>>, vector<1x128xf32>
      %247 = vector.broadcast %246 : vector<1x128xf32> to vector<8x128xf32>
      %248 = arith.mulf %245, %247 : vector<8x128xf32>
      %249 = arith.mulf %248, %133 : vector<8x128xf32>
      %250 = arith.addf %243, %249 : vector<8x128xf32>
      %251 = vector.broadcast %17 : vector<1x128xf32> to vector<8x128xf32>
      %252 = arith.subf %7, %251 : vector<8x128xf32>
      %c14_79 = arith.constant 14 : index
      %c0_80 = arith.constant 0 : index
      %253 = vector.load %arg4[%c14_79, %c0_80] : memref<36x128xf32, #tpu.memory_space<vmem>>, vector<1x128xf32>
      %254 = vector.broadcast %253 : vector<1x128xf32> to vector<8x128xf32>
      %255 = arith.mulf %252, %254 : vector<8x128xf32>
      %256 = arith.mulf %255, %133 : vector<8x128xf32>
      %257 = vector.broadcast %20 : vector<1x128xf32> to vector<8x128xf32>
      %258 = arith.subf %257, %7 : vector<8x128xf32>
      %c15 = arith.constant 15 : index
      %c0_81 = arith.constant 0 : index
      %259 = vector.load %arg4[%c15, %c0_81] : memref<36x128xf32, #tpu.memory_space<vmem>>, vector<1x128xf32>
      %260 = vector.broadcast %259 : vector<1x128xf32> to vector<8x128xf32>
      %261 = arith.mulf %258, %260 : vector<8x128xf32>
      %262 = arith.mulf %261, %146 : vector<8x128xf32>
      %263 = arith.addf %256, %262 : vector<8x128xf32>
      %264 = vector.broadcast %18 : vector<1x128xf32> to vector<8x128xf32>
      %265 = arith.subf %7, %264 : vector<8x128xf32>
      %c15_82 = arith.constant 15 : index
      %c0_83 = arith.constant 0 : index
      %266 = vector.load %arg4[%c15_82, %c0_83] : memref<36x128xf32, #tpu.memory_space<vmem>>, vector<1x128xf32>
      %267 = vector.broadcast %266 : vector<1x128xf32> to vector<8x128xf32>
      %268 = arith.mulf %265, %267 : vector<8x128xf32>
      %269 = arith.mulf %268, %146 : vector<8x128xf32>
      %270 = vector.broadcast %21 : vector<1x128xf32> to vector<8x128xf32>
      %271 = arith.subf %270, %7 : vector<8x128xf32>
      %c16 = arith.constant 16 : index
      %c0_84 = arith.constant 0 : index
      %272 = vector.load %arg4[%c16, %c0_84] : memref<36x128xf32, #tpu.memory_space<vmem>>, vector<1x128xf32>
      %273 = vector.broadcast %272 : vector<1x128xf32> to vector<8x128xf32>
      %274 = arith.mulf %271, %273 : vector<8x128xf32>
      %275 = arith.mulf %274, %159 : vector<8x128xf32>
      %276 = arith.addf %269, %275 : vector<8x128xf32>
      %277 = vector.broadcast %19 : vector<1x128xf32> to vector<8x128xf32>
      %278 = arith.subf %7, %277 : vector<8x128xf32>
      %c16_85 = arith.constant 16 : index
      %c0_86 = arith.constant 0 : index
      %279 = vector.load %arg4[%c16_85, %c0_86] : memref<36x128xf32, #tpu.memory_space<vmem>>, vector<1x128xf32>
      %280 = vector.broadcast %279 : vector<1x128xf32> to vector<8x128xf32>
      %281 = arith.mulf %278, %280 : vector<8x128xf32>
      %282 = arith.mulf %281, %159 : vector<8x128xf32>
      %283 = vector.broadcast %22 : vector<1x128xf32> to vector<8x128xf32>
      %284 = arith.subf %283, %7 : vector<8x128xf32>
      %c17 = arith.constant 17 : index
      %c0_87 = arith.constant 0 : index
      %285 = vector.load %arg4[%c17, %c0_87] : memref<36x128xf32, #tpu.memory_space<vmem>>, vector<1x128xf32>
      %286 = vector.broadcast %285 : vector<1x128xf32> to vector<8x128xf32>
      %287 = arith.mulf %284, %286 : vector<8x128xf32>
      %288 = arith.mulf %287, %172 : vector<8x128xf32>
      %289 = arith.addf %282, %288 : vector<8x128xf32>
      %290 = vector.broadcast %20 : vector<1x128xf32> to vector<8x128xf32>
      %291 = arith.subf %7, %290 : vector<8x128xf32>
      %c17_88 = arith.constant 17 : index
      %c0_89 = arith.constant 0 : index
      %292 = vector.load %arg4[%c17_88, %c0_89] : memref<36x128xf32, #tpu.memory_space<vmem>>, vector<1x128xf32>
      %293 = vector.broadcast %292 : vector<1x128xf32> to vector<8x128xf32>
      %294 = arith.mulf %291, %293 : vector<8x128xf32>
      %295 = arith.mulf %294, %172 : vector<8x128xf32>
      %296 = vector.broadcast %23 : vector<1x128xf32> to vector<8x128xf32>
      %297 = arith.subf %296, %7 : vector<8x128xf32>
      %c18 = arith.constant 18 : index
      %c0_90 = arith.constant 0 : index
      %298 = vector.load %arg4[%c18, %c0_90] : memref<36x128xf32, #tpu.memory_space<vmem>>, vector<1x128xf32>
      %299 = vector.broadcast %298 : vector<1x128xf32> to vector<8x128xf32>
      %300 = arith.mulf %297, %299 : vector<8x128xf32>
      %301 = arith.mulf %300, %185 : vector<8x128xf32>
      %302 = arith.addf %295, %301 : vector<8x128xf32>
      %303 = vector.broadcast %21 : vector<1x128xf32> to vector<8x128xf32>
      %304 = arith.subf %7, %303 : vector<8x128xf32>
      %c18_91 = arith.constant 18 : index
      %c0_92 = arith.constant 0 : index
      %305 = vector.load %arg4[%c18_91, %c0_92] : memref<36x128xf32, #tpu.memory_space<vmem>>, vector<1x128xf32>
      %306 = vector.broadcast %305 : vector<1x128xf32> to vector<8x128xf32>
      %307 = arith.mulf %304, %306 : vector<8x128xf32>
      %308 = arith.mulf %307, %185 : vector<8x128xf32>
      %309 = vector.broadcast %24 : vector<1x128xf32> to vector<8x128xf32>
      %310 = arith.subf %309, %7 : vector<8x128xf32>
      %c19 = arith.constant 19 : index
      %c0_93 = arith.constant 0 : index
      %311 = vector.load %arg4[%c19, %c0_93] : memref<36x128xf32, #tpu.memory_space<vmem>>, vector<1x128xf32>
      %312 = vector.broadcast %311 : vector<1x128xf32> to vector<8x128xf32>
      %313 = arith.mulf %310, %312 : vector<8x128xf32>
      %314 = arith.mulf %313, %198 : vector<8x128xf32>
      %315 = arith.addf %308, %314 : vector<8x128xf32>
      %316 = vector.broadcast %22 : vector<1x128xf32> to vector<8x128xf32>
      %317 = arith.subf %7, %316 : vector<8x128xf32>
      %c19_94 = arith.constant 19 : index
      %c0_95 = arith.constant 0 : index
      %318 = vector.load %arg4[%c19_94, %c0_95] : memref<36x128xf32, #tpu.memory_space<vmem>>, vector<1x128xf32>
      %319 = vector.broadcast %318 : vector<1x128xf32> to vector<8x128xf32>
      %320 = arith.mulf %317, %319 : vector<8x128xf32>
      %321 = arith.mulf %320, %198 : vector<8x128xf32>
      %322 = vector.broadcast %25 : vector<1x128xf32> to vector<8x128xf32>
      %323 = arith.subf %322, %7 : vector<8x128xf32>
      %c20 = arith.constant 20 : index
      %c0_96 = arith.constant 0 : index
      %324 = vector.load %arg4[%c20, %c0_96] : memref<36x128xf32, #tpu.memory_space<vmem>>, vector<1x128xf32>
      %325 = vector.broadcast %324 : vector<1x128xf32> to vector<8x128xf32>
      %326 = arith.mulf %323, %325 : vector<8x128xf32>
      %327 = arith.mulf %326, %211 : vector<8x128xf32>
      %328 = arith.addf %321, %327 : vector<8x128xf32>
      %329 = vector.broadcast %23 : vector<1x128xf32> to vector<8x128xf32>
      %330 = arith.subf %7, %329 : vector<8x128xf32>
      %c20_97 = arith.constant 20 : index
      %c0_98 = arith.constant 0 : index
      %331 = vector.load %arg4[%c20_97, %c0_98] : memref<36x128xf32, #tpu.memory_space<vmem>>, vector<1x128xf32>
      %332 = vector.broadcast %331 : vector<1x128xf32> to vector<8x128xf32>
      %333 = arith.mulf %330, %332 : vector<8x128xf32>
      %334 = arith.mulf %333, %211 : vector<8x128xf32>
      %335 = vector.broadcast %26 : vector<1x128xf32> to vector<8x128xf32>
      %336 = arith.subf %335, %7 : vector<8x128xf32>
      %c21 = arith.constant 21 : index
      %c0_99 = arith.constant 0 : index
      %337 = vector.load %arg4[%c21, %c0_99] : memref<36x128xf32, #tpu.memory_space<vmem>>, vector<1x128xf32>
      %338 = vector.broadcast %337 : vector<1x128xf32> to vector<8x128xf32>
      %339 = arith.mulf %336, %338 : vector<8x128xf32>
      %340 = arith.mulf %339, %224 : vector<8x128xf32>
      %341 = arith.addf %334, %340 : vector<8x128xf32>
      %342 = vector.broadcast %15 : vector<1x128xf32> to vector<8x128xf32>
      %343 = arith.subf %7, %342 : vector<8x128xf32>
      %c24 = arith.constant 24 : index
      %c0_100 = arith.constant 0 : index
      %344 = vector.load %arg4[%c24, %c0_100] : memref<36x128xf32, #tpu.memory_space<vmem>>, vector<1x128xf32>
      %345 = vector.broadcast %344 : vector<1x128xf32> to vector<8x128xf32>
      %346 = arith.mulf %343, %345 : vector<8x128xf32>
      %347 = arith.mulf %346, %237 : vector<8x128xf32>
      %348 = vector.broadcast %19 : vector<1x128xf32> to vector<8x128xf32>
      %349 = arith.subf %348, %7 : vector<8x128xf32>
      %c25 = arith.constant 25 : index
      %c0_101 = arith.constant 0 : index
      %350 = vector.load %arg4[%c25, %c0_101] : memref<36x128xf32, #tpu.memory_space<vmem>>, vector<1x128xf32>
      %351 = vector.broadcast %350 : vector<1x128xf32> to vector<8x128xf32>
      %352 = arith.mulf %349, %351 : vector<8x128xf32>
      %353 = arith.mulf %352, %250 : vector<8x128xf32>
      %354 = arith.addf %347, %353 : vector<8x128xf32>
      %355 = vector.broadcast %16 : vector<1x128xf32> to vector<8x128xf32>
      %356 = arith.subf %7, %355 : vector<8x128xf32>
      %c25_102 = arith.constant 25 : index
      %c0_103 = arith.constant 0 : index
      %357 = vector.load %arg4[%c25_102, %c0_103] : memref<36x128xf32, #tpu.memory_space<vmem>>, vector<1x128xf32>
      %358 = vector.broadcast %357 : vector<1x128xf32> to vector<8x128xf32>
      %359 = arith.mulf %356, %358 : vector<8x128xf32>
      %360 = arith.mulf %359, %250 : vector<8x128xf32>
      %361 = vector.broadcast %20 : vector<1x128xf32> to vector<8x128xf32>
      %362 = arith.subf %361, %7 : vector<8x128xf32>
      %c26 = arith.constant 26 : index
      %c0_104 = arith.constant 0 : index
      %363 = vector.load %arg4[%c26, %c0_104] : memref<36x128xf32, #tpu.memory_space<vmem>>, vector<1x128xf32>
      %364 = vector.broadcast %363 : vector<1x128xf32> to vector<8x128xf32>
      %365 = arith.mulf %362, %364 : vector<8x128xf32>
      %366 = arith.mulf %365, %263 : vector<8x128xf32>
      %367 = arith.addf %360, %366 : vector<8x128xf32>
      %368 = vector.broadcast %17 : vector<1x128xf32> to vector<8x128xf32>
      %369 = arith.subf %7, %368 : vector<8x128xf32>
      %c26_105 = arith.constant 26 : index
      %c0_106 = arith.constant 0 : index
      %370 = vector.load %arg4[%c26_105, %c0_106] : memref<36x128xf32, #tpu.memory_space<vmem>>, vector<1x128xf32>
      %371 = vector.broadcast %370 : vector<1x128xf32> to vector<8x128xf32>
      %372 = arith.mulf %369, %371 : vector<8x128xf32>
      %373 = arith.mulf %372, %263 : vector<8x128xf32>
      %374 = vector.broadcast %21 : vector<1x128xf32> to vector<8x128xf32>
      %375 = arith.subf %374, %7 : vector<8x128xf32>
      %c27 = arith.constant 27 : index
      %c0_107 = arith.constant 0 : index
      %376 = vector.load %arg4[%c27, %c0_107] : memref<36x128xf32, #tpu.memory_space<vmem>>, vector<1x128xf32>
      %377 = vector.broadcast %376 : vector<1x128xf32> to vector<8x128xf32>
      %378 = arith.mulf %375, %377 : vector<8x128xf32>
      %379 = arith.mulf %378, %276 : vector<8x128xf32>
      %380 = arith.addf %373, %379 : vector<8x128xf32>
      %381 = vector.broadcast %18 : vector<1x128xf32> to vector<8x128xf32>
      %382 = arith.subf %7, %381 : vector<8x128xf32>
      %c27_108 = arith.constant 27 : index
      %c0_109 = arith.constant 0 : index
      %383 = vector.load %arg4[%c27_108, %c0_109] : memref<36x128xf32, #tpu.memory_space<vmem>>, vector<1x128xf32>
      %384 = vector.broadcast %383 : vector<1x128xf32> to vector<8x128xf32>
      %385 = arith.mulf %382, %384 : vector<8x128xf32>
      %386 = arith.mulf %385, %276 : vector<8x128xf32>
      %387 = vector.broadcast %22 : vector<1x128xf32> to vector<8x128xf32>
      %388 = arith.subf %387, %7 : vector<8x128xf32>
      %c28 = arith.constant 28 : index
      %c0_110 = arith.constant 0 : index
      %389 = vector.load %arg4[%c28, %c0_110] : memref<36x128xf32, #tpu.memory_space<vmem>>, vector<1x128xf32>
      %390 = vector.broadcast %389 : vector<1x128xf32> to vector<8x128xf32>
      %391 = arith.mulf %388, %390 : vector<8x128xf32>
      %392 = arith.mulf %391, %289 : vector<8x128xf32>
      %393 = arith.addf %386, %392 : vector<8x128xf32>
      %394 = vector.broadcast %19 : vector<1x128xf32> to vector<8x128xf32>
      %395 = arith.subf %7, %394 : vector<8x128xf32>
      %c28_111 = arith.constant 28 : index
      %c0_112 = arith.constant 0 : index
      %396 = vector.load %arg4[%c28_111, %c0_112] : memref<36x128xf32, #tpu.memory_space<vmem>>, vector<1x128xf32>
      %397 = vector.broadcast %396 : vector<1x128xf32> to vector<8x128xf32>
      %398 = arith.mulf %395, %397 : vector<8x128xf32>
      %399 = arith.mulf %398, %289 : vector<8x128xf32>
      %400 = vector.broadcast %23 : vector<1x128xf32> to vector<8x128xf32>
      %401 = arith.subf %400, %7 : vector<8x128xf32>
      %c29 = arith.constant 29 : index
      %c0_113 = arith.constant 0 : index
      %402 = vector.load %arg4[%c29, %c0_113] : memref<36x128xf32, #tpu.memory_space<vmem>>, vector<1x128xf32>
      %403 = vector.broadcast %402 : vector<1x128xf32> to vector<8x128xf32>
      %404 = arith.mulf %401, %403 : vector<8x128xf32>
      %405 = arith.mulf %404, %302 : vector<8x128xf32>
      %406 = arith.addf %399, %405 : vector<8x128xf32>
      %407 = vector.broadcast %20 : vector<1x128xf32> to vector<8x128xf32>
      %408 = arith.subf %7, %407 : vector<8x128xf32>
      %c29_114 = arith.constant 29 : index
      %c0_115 = arith.constant 0 : index
      %409 = vector.load %arg4[%c29_114, %c0_115] : memref<36x128xf32, #tpu.memory_space<vmem>>, vector<1x128xf32>
      %410 = vector.broadcast %409 : vector<1x128xf32> to vector<8x128xf32>
      %411 = arith.mulf %408, %410 : vector<8x128xf32>
      %412 = arith.mulf %411, %302 : vector<8x128xf32>
      %413 = vector.broadcast %24 : vector<1x128xf32> to vector<8x128xf32>
      %414 = arith.subf %413, %7 : vector<8x128xf32>
      %c30 = arith.constant 30 : index
      %c0_116 = arith.constant 0 : index
      %415 = vector.load %arg4[%c30, %c0_116] : memref<36x128xf32, #tpu.memory_space<vmem>>, vector<1x128xf32>
      %416 = vector.broadcast %415 : vector<1x128xf32> to vector<8x128xf32>
      %417 = arith.mulf %414, %416 : vector<8x128xf32>
      %418 = arith.mulf %417, %315 : vector<8x128xf32>
      %419 = arith.addf %412, %418 : vector<8x128xf32>
      %420 = vector.broadcast %21 : vector<1x128xf32> to vector<8x128xf32>
      %421 = arith.subf %7, %420 : vector<8x128xf32>
      %c30_117 = arith.constant 30 : index
      %c0_118 = arith.constant 0 : index
      %422 = vector.load %arg4[%c30_117, %c0_118] : memref<36x128xf32, #tpu.memory_space<vmem>>, vector<1x128xf32>
      %423 = vector.broadcast %422 : vector<1x128xf32> to vector<8x128xf32>
      %424 = arith.mulf %421, %423 : vector<8x128xf32>
      %425 = arith.mulf %424, %315 : vector<8x128xf32>
      %426 = vector.broadcast %25 : vector<1x128xf32> to vector<8x128xf32>
      %427 = arith.subf %426, %7 : vector<8x128xf32>
      %c31 = arith.constant 31 : index
      %c0_119 = arith.constant 0 : index
      %428 = vector.load %arg4[%c31, %c0_119] : memref<36x128xf32, #tpu.memory_space<vmem>>, vector<1x128xf32>
      %429 = vector.broadcast %428 : vector<1x128xf32> to vector<8x128xf32>
      %430 = arith.mulf %427, %429 : vector<8x128xf32>
      %431 = arith.mulf %430, %328 : vector<8x128xf32>
      %432 = arith.addf %425, %431 : vector<8x128xf32>
      %433 = vector.broadcast %22 : vector<1x128xf32> to vector<8x128xf32>
      %434 = arith.subf %7, %433 : vector<8x128xf32>
      %c31_120 = arith.constant 31 : index
      %c0_121 = arith.constant 0 : index
      %435 = vector.load %arg4[%c31_120, %c0_121] : memref<36x128xf32, #tpu.memory_space<vmem>>, vector<1x128xf32>
      %436 = vector.broadcast %435 : vector<1x128xf32> to vector<8x128xf32>
      %437 = arith.mulf %434, %436 : vector<8x128xf32>
      %438 = arith.mulf %437, %328 : vector<8x128xf32>
      %439 = vector.broadcast %26 : vector<1x128xf32> to vector<8x128xf32>
      %440 = arith.subf %439, %7 : vector<8x128xf32>
      %c32 = arith.constant 32 : index
      %c0_122 = arith.constant 0 : index
      %441 = vector.load %arg4[%c32, %c0_122] : memref<36x128xf32, #tpu.memory_space<vmem>>, vector<1x128xf32>
      %442 = vector.broadcast %441 : vector<1x128xf32> to vector<8x128xf32>
      %443 = arith.mulf %440, %442 : vector<8x128xf32>
      %444 = arith.mulf %443, %341 : vector<8x128xf32>
      %445 = arith.addf %438, %444 : vector<8x128xf32>
      %446 = arith.truncf %354 : vector<8x128xf32> to vector<8x128xbf16>
      %c0_123 = arith.constant 0 : index
      %c0_124 = arith.constant 0 : index
      %447 = vector.load %arg7[%c0_123, %c0_124] : memref<8x1152xbf16, #tpu.memory_space<vmem>>, vector<8x128xbf16>
      tpu.vector_store %arg7[%c0_123, %c0_124], %446 {strides = array<i32>} : memref<8x1152xbf16, #tpu.memory_space<vmem>>, vector<8x128xbf16>,
      %448 = arith.truncf %367 : vector<8x128xf32> to vector<8x128xbf16>
      %c0_125 = arith.constant 0 : index
      %c128 = arith.constant 128 : index
      %449 = vector.load %arg7[%c0_125, %c128] : memref<8x1152xbf16, #tpu.memory_space<vmem>>, vector<8x128xbf16>
      tpu.vector_store %arg7[%c0_125, %c128], %448 {strides = array<i32>} : memref<8x1152xbf16, #tpu.memory_space<vmem>>, vector<8x128xbf16>,
      %450 = arith.truncf %380 : vector<8x128xf32> to vector<8x128xbf16>
      %c0_126 = arith.constant 0 : index
      %c256 = arith.constant 256 : index
      %451 = vector.load %arg7[%c0_126, %c256] : memref<8x1152xbf16, #tpu.memory_space<vmem>>, vector<8x128xbf16>
      tpu.vector_store %arg7[%c0_126, %c256], %450 {strides = array<i32>} : memref<8x1152xbf16, #tpu.memory_space<vmem>>, vector<8x128xbf16>,
      %452 = arith.truncf %393 : vector<8x128xf32> to vector<8x128xbf16>
      %c0_127 = arith.constant 0 : index
      %c384 = arith.constant 384 : index
      %453 = vector.load %arg7[%c0_127, %c384] : memref<8x1152xbf16, #tpu.memory_space<vmem>>, vector<8x128xbf16>
      tpu.vector_store %arg7[%c0_127, %c384], %452 {strides = array<i32>} : memref<8x1152xbf16, #tpu.memory_space<vmem>>, vector<8x128xbf16>,
      %454 = arith.truncf %406 : vector<8x128xf32> to vector<8x128xbf16>
      %c0_128 = arith.constant 0 : index
      %c512 = arith.constant 512 : index
      %455 = vector.load %arg7[%c0_128, %c512] : memref<8x1152xbf16, #tpu.memory_space<vmem>>, vector<8x128xbf16>
      tpu.vector_store %arg7[%c0_128, %c512], %454 {strides = array<i32>} : memref<8x1152xbf16, #tpu.memory_space<vmem>>, vector<8x128xbf16>,
      %456 = arith.truncf %419 : vector<8x128xf32> to vector<8x128xbf16>
      %c0_129 = arith.constant 0 : index
      %c640 = arith.constant 640 : index
      %457 = vector.load %arg7[%c0_129, %c640] : memref<8x1152xbf16, #tpu.memory_space<vmem>>, vector<8x128xbf16>
      tpu.vector_store %arg7[%c0_129, %c640], %456 {strides = array<i32>} : memref<8x1152xbf16, #tpu.memory_space<vmem>>, vector<8x128xbf16>,
      %458 = arith.truncf %432 : vector<8x128xf32> to vector<8x128xbf16>
      %c0_130 = arith.constant 0 : index
      %c768 = arith.constant 768 : index
      %459 = vector.load %arg7[%c0_130, %c768] : memref<8x1152xbf16, #tpu.memory_space<vmem>>, vector<8x128xbf16>
      tpu.vector_store %arg7[%c0_130, %c768], %458 {strides = array<i32>} : memref<8x1152xbf16, #tpu.memory_space<vmem>>, vector<8x128xbf16>,
      %460 = arith.truncf %445 : vector<8x128xf32> to vector<8x128xbf16>
      %c0_131 = arith.constant 0 : index
      %c896 = arith.constant 896 : index
      %461 = vector.load %arg7[%c0_131, %c896] : memref<8x1152xbf16, #tpu.memory_space<vmem>>, vector<8x128xbf16>
      tpu.vector_store %arg7[%c0_131, %c896], %460 {strides = array<i32>} : memref<8x1152xbf16, #tpu.memory_space<vmem>>, vector<8x128xbf16>,
      %462 = arith.truncf %14 : vector<8x128xf32> to vector<8x128xbf16>
      %c0_132 = arith.constant 0 : index
      %c1024 = arith.constant 1024 : index
      %463 = vector.load %arg7[%c0_132, %c1024] : memref<8x1152xbf16, #tpu.memory_space<vmem>>, vector<8x128xbf16>
      tpu.vector_store %arg7[%c0_132, %c1024], %462 {strides = array<i32>} : memref<8x1152xbf16, #tpu.memory_space<vmem>>, vector<8x128xbf16>,
    } else {
    }
    %c0 = arith.constant 0 : index
    %c0_1 = arith.constant 0 : index
    %3 = vector.load %arg7[%c0, %c0_1] : memref<8x1152xbf16, #tpu.memory_space<vmem>>, vector<8x1152xbf16>
    %c0_2 = arith.constant 0 : index
    %c0_3 = arith.constant 0 : index
    %4 = vector.load %arg5[%c0_2, %c0_3] : memref<1152x128xbf16, #tpu.memory_space<vmem>>, vector<1152x128xbf16>
    %cst = arith.constant dense<0.000000e+00> : vector<8x128xf32>
    %5 = tpu.matmul %3, %4, %cst {dimension_numbers = #tpu.dot_dimension_numbers<[1], [0], [0], [1], [0, 0, 1, 1], [], []>} : vector<8x1152xbf16>, vector<1152x128xbf16>, vector<8x128xf32> -> vector<8x128xf32>
    %c0_4 = arith.constant 0 : index
    %c0_5 = arith.constant 0 : index
    %6 = vector.load %arg6[%c0_4, %c0_5] : memref<8x128xf32, #tpu.memory_space<vmem>>, vector<8x128xf32>
    tpu.vector_store %arg6[%c0_4, %c0_5], %5 {strides = array<i32>} : memref<8x128xf32, #tpu.memory_space<vmem>>, vector<8x128xf32>,
    return
  }
  func.func @transform_0(%arg0: i32, %arg1: i32) -> (i32, i32) {
    %c0_i32 = arith.constant 0 : i32
    %c0_i32_0 = arith.constant 0 : i32
    return %arg0, %c0_i32 : i32, i32
  }
  func.func @transform_1(%arg0: i32, %arg1: i32) -> (i32, i32) {
    %c0_i32 = arith.constant 0 : i32
    %c0_i32_0 = arith.constant 0 : i32
    %c0_i32_1 = arith.constant 0 : i32
    return %c0_i32, %c0_i32_0 : i32, i32
  }
  func.func @transform_2(%arg0: i32, %arg1: i32) -> (i32, i32) {
    %c0_i32 = arith.constant 0 : i32
    %c0_i32_0 = arith.constant 0 : i32
    %c0_i32_1 = arith.constant 0 : i32
    return %c0_i32, %c0_i32_0 : i32, i32
  }
  func.func @transform_3(%arg0: i32, %arg1: i32) -> (i32, i32) {
    %c0_i32 = arith.constant 0 : i32
    %c0_i32_0 = arith.constant 0 : i32
    return %c0_i32, %arg1 : i32, i32
  }
  func.func @transform_4(%arg0: i32, %arg1: i32) -> (i32, i32) {
    %c0_i32 = arith.constant 0 : i32
    return %arg0, %arg1 : i32, i32
  }
}

module attributes {stable_mosaic.version = 11 : i64} {
  func.func @kan_linear_kernel(%arg0: i32, %arg1: i32, %arg2: memref<8x128xf32, #tpu.memory_space<vmem>>, %arg3: memref<12x128xf32, #tpu.memory_space<vmem>>, %arg4: memref<36x128xf32, #tpu.memory_space<vmem>>, %arg5: memref<1152x128xbf16, #tpu.memory_space<vmem>>, %arg6: memref<8x128xf32, #tpu.memory_space<vmem>>, %arg7: memref<8x1152xbf16, #tpu.memory_space<vmem>>) attributes {dimension_semantics = [#tpu.dimension_semantics<parallel>, #tpu.dimension_semantics<arbitrary>], iteration_bounds = array<i64: 1, 1>, scalar_prefetch = 0 : i64, scratch_operands = 1 : i64, tpu.core_type = #tpu.core_type<tc>, window_params = [{transform_indices = @transform_0, window_bounds = array<i64: 8, 128>}, {pipeline_mode = #tpu.pipeline_mode<synchronous>, transform_indices = @transform_1, window_bounds = array<i64: 12, 128>}, {pipeline_mode = #tpu.pipeline_mode<synchronous>, transform_indices = @transform_2, window_bounds = array<i64: 36, 128>}, {transform_indices = @transform_3, window_bounds = array<i64: 1152, 128>}, {transform_indices = @transform_4, window_bounds = array<i64: 8, 128>}]} {
    %c0_i32 = arith.constant 0 : i32
    %0 = arith.cmpi eq, %arg1, %c0_i32 : i32
    %1 = arith.extui %0 : i1 to i32
    %c0_i32_0 = arith.constant 0 : i32
    %2 = arith.cmpi ne, %1, %c0_i32_0 : i32
    scf.if %2 {
      %c0_6 = arith.constant 0 : index
      %c0_7 = arith.constant 0 : index
      %7 = vector.load %arg2[%c0_6, %c0_7] : memref<8x128xf32, #tpu.memory_space<vmem>>, vector<8x128xf32>
      %cst_8 = arith.constant 0.000000e+00 : f32
      %8 = vector.broadcast %cst_8 : f32 to vector<8x128xf32>
      %9 = arith.subf %8, %7 : vector<8x128xf32>
      %10 = math.exp %9 : vector<8x128xf32>
      %cst_9 = arith.constant 1.000000e+00 : f32
      %11 = vector.broadcast %cst_9 : f32 to vector<8x128xf32>
      %12 = arith.addf %11, %10 : vector<8x128xf32>
      %13 = tpu.reciprocal %12 {approx = true} : vector<8x128xf32> -> vector<8x128xf32>
      %14 = arith.mulf %7, %13 : vector<8x128xf32>
      %c0_10 = arith.constant 0 : index
      %c0_11 = arith.constant 0 : index
      %15 = vector.load %arg3[%c0_10, %c0_11] : memref<12x128xf32, #tpu.memory_space<vmem>>, vector<1x128xf32>
      %c1 = arith.constant 1 : index
      %c0_12 = arith.constant 0 : index
      %16 = vector.load %arg3[%c1, %c0_12] : memref<12x128xf32, #tpu.memory_space<vmem>>, vector<1x128xf32>
      %c2 = arith.constant 2 : index
      %c0_13 = arith.constant 0 : index
      %17 = vector.load %arg3[%c2, %c0_13] : memref<12x128xf32, #tpu.memory_space<vmem>>, vector<1x128xf32>
      %c3 = arith.constant 3 : index
      %c0_14 = arith.constant 0 : index
      %18 = vector.load %arg3[%c3, %c0_14] : memref<12x128xf32, #tpu.memory_space<vmem>>, vector<1x128xf32>
      %c4 = arith.constant 4 : index
      %c0_15 = arith.constant 0 : index
      %19 = vector.load %arg3[%c4, %c0_15] : memref<12x128xf32, #tpu.memory_space<vmem>>, vector<1x128xf32>
      %c5 = arith.constant 5 : index
      %c0_16 = arith.constant 0 : index
      %20 = vector.load %arg3[%c5, %c0_16] : memref<12x128xf32, #tpu.memory_space<vmem>>, vector<1x128xf32>
      %c6 = arith.constant 6 : index
      %c0_17 = arith.constant 0 : index
      %21 = vector.load %arg3[%c6, %c0_17] : memref<12x128xf32, #tpu.memory_space<vmem>>, vector<1x128xf32>
      %c7 = arith.constant 7 : index
      %c0_18 = arith.constant 0 : index
      %22 = vector.load %arg3[%c7, %c0_18] : memref<12x128xf32, #tpu.memory_space<vmem>>, vector<1x128xf32>
      %c8 = arith.constant 8 : index
      %c0_19 = arith.constant 0 : index
      %23 = vector.load %arg3[%c8, %c0_19] : memref<12x128xf32, #tpu.memory_space<vmem>>, vector<1x128xf32>
      %c9 = arith.constant 9 : index
      %c0_20 = arith.constant 0 : index
      %24 = vector.load %arg3[%c9, %c0_20] : memref<12x128xf32, #tpu.memory_space<vmem>>, vector<1x128xf32>
      %c10 = arith.constant 10 : index
      %c0_21 = arith.constant 0 : index
      %25 = vector.load %arg3[%c10, %c0_21] : memref<12x128xf32, #tpu.memory_space<vmem>>, vector<1x128xf32>
      %c11 = arith.constant 11 : index
      %c0_22 = arith.constant 0 : index
      %26 = vector.load %arg3[%c11, %c0_22] : memref<12x128xf32, #tpu.memory_space<vmem>>, vector<1x128xf32>
      %27 = vector.broadcast %15 : vector<1x128xf32> to vector<8x128xf32>
      %28 = arith.cmpf oge, %7, %27 : vector<8x128xf32>
      %29 = vector.broadcast %16 : vector<1x128xf32> to vector<8x128xf32>
      %30 = arith.cmpf oge, %7, %29 : vector<8x128xf32>
      %31 = vector.broadcast %17 : vector<1x128xf32> to vector<8x128xf32>
      %32 = arith.cmpf oge, %7, %31 : vector<8x128xf32>
      %33 = vector.broadcast %18 : vector<1x128xf32> to vector<8x128xf32>
      %34 = arith.cmpf oge, %7, %33 : vector<8x128xf32>
      %35 = vector.broadcast %19 : vector<1x128xf32> to vector<8x128xf32>
      %36 = arith.cmpf oge, %7, %35 : vector<8x128xf32>
      %37 = vector.broadcast %20 : vector<1x128xf32> to vector<8x128xf32>
      %38 = arith.cmpf oge, %7, %37 : vector<8x128xf32>
      %39 = vector.broadcast %21 : vector<1x128xf32> to vector<8x128xf32>
      %40 = arith.cmpf oge, %7, %39 : vector<8x128xf32>
      %41 = vector.broadcast %22 : vector<1x128xf32> to vector<8x128xf32>
      %42 = arith.cmpf oge, %7, %41 : vector<8x128xf32>
      %43 = vector.broadcast %23 : vector<1x128xf32> to vector<8x128xf32>
      %44 = arith.cmpf oge, %7, %43 : vector<8x128xf32>
      %45 = vector.broadcast %24 : vector<1x128xf32> to vector<8x128xf32>
      %46 = arith.cmpf oge, %7, %45 : vector<8x128xf32>
      %47 = vector.broadcast %25 : vector<1x128xf32> to vector<8x128xf32>
      %48 = arith.cmpf oge, %7, %47 : vector<8x128xf32>
      %49 = vector.broadcast %26 : vector<1x128xf32> to vector<8x128xf32>
      %50 = arith.cmpf oge, %7, %49 : vector<8x128xf32>
      %cst_23 = arith.constant dense<true> : vector<8x128xi1>
      %51 = arith.xori %30, %cst_23 : vector<8x128xi1>
      %52 = arith.andi %28, %51 : vector<8x128xi1>
      %53 = arith.extui %52 : vector<8x128xi1> to vector<8x128xi32>
      %54 = arith.sitofp %53 : vector<8x128xi32> to vector<8x128xf32>
      %cst_24 = arith.constant dense<true> : vector<8x128xi1>
      %55 = arith.xori %32, %cst_24 : vector<8x128xi1>
      %56 = arith.andi %30, %55 : vector<8x128xi1>
      %57 = arith.extui %56 : vector<8x128xi1> to vector<8x128xi32>
      %58 = arith.sitofp %57 : vector<8x128xi32> to vector<8x128xf32>
      %cst_25 = arith.constant dense<true> : vector<8x128xi1>
      %59 = arith.xori %34, %cst_25 : vector<8x128xi1>
      %60 = arith.andi %32, %59 : vector<8x128xi1>
      %61 = arith.extui %60 : vector<8x128xi1> to vector<8x128xi32>
      %62 = arith.sitofp %61 : vector<8x128xi32> to vector<8x128xf32>
      %cst_26 = arith.constant dense<true> : vector<8x128xi1>
      %63 = arith.xori %36, %cst_26 : vector<8x128xi1>
      %64 = arith.andi %34, %63 : vector<8x128xi1>
      %65 = arith.extui %64 : vector<8x128xi1> to vector<8x128xi32>
      %66 = arith.sitofp %65 : vector<8x128xi32> to vector<8x128xf32>
      %cst_27 = arith.constant dense<true> : vector<8x128xi1>
      %67 = arith.xori %38, %cst_27 : vector<8x128xi1>
      %68 = arith.andi %36, %67 : vector<8x128xi1>
      %69 = arith.extui %68 : vector<8x128xi1> to vector<8x128xi32>
      %70 = arith.sitofp %69 : vector<8x128xi32> to vector<8x128xf32>
      %cst_28 = arith.constant dense<true> : vector<8x128xi1>
      %71 = arith.xori %40, %cst_28 : vector<8x128xi1>
      %72 = arith.andi %38, %71 : vector<8x128xi1>
      %73 = arith.extui %72 : vector<8x128xi1> to vector<8x128xi32>
      %74 = arith.sitofp %73 : vector<8x128xi32> to vector<8x128xf32>
      %cst_29 = arith.constant dense<true> : vector<8x128xi1>
      %75 = arith.xori %42, %cst_29 : vector<8x128xi1>
      %76 = arith.andi %40, %75 : vector<8x128xi1>
      %77 = arith.extui %76 : vector<8x128xi1> to vector<8x128xi32>
      %78 = arith.sitofp %77 : vector<8x128xi32> to vector<8x128xf32>
      %cst_30 = arith.constant dense<true> : vector<8x128xi1>
      %79 = arith.xori %44, %cst_30 : vector<8x128xi1>
      %80 = arith.andi %42, %79 : vector<8x128xi1>
      %81 = arith.extui %80 : vector<8x128xi1> to vector<8x128xi32>
      %82 = arith.sitofp %81 : vector<8x128xi32> to vector<8x128xf32>
      %cst_31 = arith.constant dense<true> : vector<8x128xi1>
      %83 = arith.xori %46, %cst_31 : vector<8x128xi1>
      %84 = arith.andi %44, %83 : vector<8x128xi1>
      %85 = arith.extui %84 : vector<8x128xi1> to vector<8x128xi32>
      %86 = arith.sitofp %85 : vector<8x128xi32> to vector<8x128xf32>
      %cst_32 = arith.constant dense<true> : vector<8x128xi1>
      %87 = arith.xori %48, %cst_32 : vector<8x128xi1>
      %88 = arith.andi %46, %87 : vector<8x128xi1>
      %89 = arith.extui %88 : vector<8x128xi1> to vector<8x128xi32>
      %90 = arith.sitofp %89 : vector<8x128xi32> to vector<8x128xf32>
      %cst_33 = arith.constant dense<true> : vector<8x128xi1>
      %91 = arith.xori %50, %cst_33 : vector<8x128xi1>
      %92 = arith.andi %48, %91 : vector<8x128xi1>
      %93 = arith.extui %92 : vector<8x128xi1> to vector<8x128xi32>
      %94 = arith.sitofp %93 : vector<8x128xi32> to vector<8x128xf32>
      %95 = vector.broadcast %15 : vector<1x128xf32> to vector<8x128xf32>
      %96 = arith.subf %7, %95 : vector<8x128xf32>
      %c0_34 = arith.constant 0 : index
      %c0_35 = arith.constant 0 : index
      %97 = vector.load %arg4[%c0_34, %c0_35] : memref<36x128xf32, #tpu.memory_space<vmem>>, vector<1x128xf32>
      %98 = vector.broadcast %97 : vector<1x128xf32> to vector<8x128xf32>
      %99 = arith.mulf %96, %98 : vector<8x128xf32>
      %100 = arith.mulf %99, %54 : vector<8x128xf32>
      %101 = vector.broadcast %17 : vector<1x128xf32> to vector<8x128xf32>
      %102 = arith.subf %101, %7 : vector<8x128xf32>
      %c1_36 = arith.constant 1 : index
      %c0_37 = arith.constant 0 : index
      %103 = vector.load %arg4[%c1_36, %c0_37] : memref<36x128xf32, #tpu.memory_space<vmem>>, vector<1x128xf32>
      %104 = vector.broadcast %103 : vector<1x128xf32> to vector<8x128xf32>
      %105 = arith.mulf %102, %104 : vector<8x128xf32>
      %106 = arith.mulf %105, %58 : vector<8x128xf32>
      %107 = arith.addf %100, %106 : vector<8x128xf32>
      %108 = vector.broadcast %16 : vector<1x128xf32> to vector<8x128xf32>
      %109 = arith.subf %7, %108 : vector<8x128xf32>
      %c1_38 = arith.constant 1 : index
      %c0_39 = arith.constant 0 : index
      %110 = vector.load %arg4[%c1_38, %c0_39] : memref<36x128xf32, #tpu.memory_space<vmem>>, vector<1x128xf32>
      %111 = vector.broadcast %110 : vector<1x128xf32> to vector<8x128xf32>
      %112 = arith.mulf %109, %111 : vector<8x128xf32>
      %113 = arith.mulf %112, %58 : vector<8x128xf32>
      %114 = vector.broadcast %18 : vector<1x128xf32> to vector<8x128xf32>
      %115 = arith.subf %114, %7 : vector<8x128xf32>
      %c2_40 = arith.constant 2 : index
      %c0_41 = arith.constant 0 : index
      %116 = vector.load %arg4[%c2_40, %c0_41] : memref<36x128xf32, #tpu.memory_space<vmem>>, vector<1x128xf32>
      %117 = vector.broadcast %116 : vector<1x128xf32> to vector<8x128xf32>
      %118 = arith.mulf %115, %117 : vector<8x128xf32>
      %119 = arith.mulf %118, %62 : vector<8x128xf32>
      %120 = arith.addf %113, %119 : vector<8x128xf32>
      %121 = vector.broadcast %17 : vector<1x128xf32> to vector<8x128xf32>
      %122 = arith.subf %7, %121 : vector<8x128xf32>
      %c2_42 = arith.constant 2 : index
      %c0_43 = arith.constant 0 : index
      %123 = vector.load %arg4[%c2_42, %c0_43] : memref<36x128xf32, #tpu.memory_space<vmem>>, vector<1x128xf32>
      %124 = vector.broadcast %123 : vector<1x128xf32> to vector<8x128xf32>
      %125 = arith.mulf %122, %124 : vector<8x128xf32>
      %126 = arith.mulf %125, %62 : vector<8x128xf32>
      %127 = vector.broadcast %19 : vector<1x128xf32> to vector<8x128xf32>
      %128 = arith.subf %127, %7 : vector<8x128xf32>
      %c3_44 = arith.constant 3 : index
      %c0_45 = arith.constant 0 : index
      %129 = vector.load %arg4[%c3_44, %c0_45] : memref<36x128xf32, #tpu.memory_space<vmem>>, vector<1x128xf32>
      %130 = vector.broadcast %129 : vector<1x128xf32> to vector<8x128xf32>
      %131 = arith.mulf %128, %130 : vector<8x128xf32>
      %132 = arith.mulf %131, %66 : vector<8x128xf32>
      %133 = arith.addf %126, %132 : vector<8x128xf32>
      %134 = vector.broadcast %18 : vector<1x128xf32> to vector<8x128xf32>
      %135 = arith.subf %7, %134 : vector<8x128xf32>
      %c3_46 = arith.constant 3 : index
      %c0_47 = arith.constant 0 : index
      %136 = vector.load %arg4[%c3_46, %c0_47] : memref<36x128xf32, #tpu.memory_space<vmem>>, vector<1x128xf32>
      %137 = vector.broadcast %136 : vector<1x128xf32> to vector<8x128xf32>
      %138 = arith.mulf %135, %137 : vector<8x128xf32>
      %139 = arith.mulf %138, %66 : vector<8x128xf32>
      %140 = vector.broadcast %20 : vector<1x128xf32> to vector<8x128xf32>
      %141 = arith.subf %140, %7 : vector<8x128xf32>
      %c4_48 = arith.constant 4 : index
      %c0_49 = arith.constant 0 : index
      %142 = vector.load %arg4[%c4_48, %c0_49] : memref<36x128xf32, #tpu.memory_space<vmem>>, vector<1x128xf32>
      %143 = vector.broadcast %142 : vector<1x128xf32> to vector<8x128xf32>
      %144 = arith.mulf %141, %143 : vector<8x128xf32>
      %145 = arith.mulf %144, %70 : vector<8x128xf32>
      %146 = arith.addf %139, %145 : vector<8x128xf32>
      %147 = vector.broadcast %19 : vector<1x128xf32> to vector<8x128xf32>
      %148 = arith.subf %7, %147 : vector<8x128xf32>
      %c4_50 = arith.constant 4 : index
      %c0_51 = arith.constant 0 : index
      %149 = vector.load %arg4[%c4_50, %c0_51] : memref<36x128xf32, #tpu.memory_space<vmem>>, vector<1x128xf32>
      %150 = vector.broadcast %149 : vector<1x128xf32> to vector<8x128xf32>
      %151 = arith.mulf %148, %150 : vector<8x128xf32>
      %152 = arith.mulf %151, %70 : vector<8x128xf32>
      %153 = vector.broadcast %21 : vector<1x128xf32> to vector<8x128xf32>
      %154 = arith.subf %153, %7 : vector<8x128xf32>
      %c5_52 = arith.constant 5 : index
      %c0_53 = arith.constant 0 : index
      %155 = vector.load %arg4[%c5_52, %c0_53] : memref<36x128xf32, #tpu.memory_space<vmem>>, vector<1x128xf32>
      %156 = vector.broadcast %155 : vector<1x128xf32> to vector<8x128xf32>
      %157 = arith.mulf %154, %156 : vector<8x128xf32>
      %158 = arith.mulf %157, %74 : vector<8x128xf32>
      %159 = arith.addf %152, %158 : vector<8x128xf32>
      %160 = vector.broadcast %20 : vector<1x128xf32> to vector<8x128xf32>
      %161 = arith.subf %7, %160 : vector<8x128xf32>
      %c5_54 = arith.constant 5 : index
      %c0_55 = arith.constant 0 : index
      %162 = vector.load %arg4[%c5_54, %c0_55] : memref<36x128xf32, #tpu.memory_space<vmem>>, vector<1x128xf32>
      %163 = vector.broadcast %162 : vector<1x128xf32> to vector<8x128xf32>
      %164 = arith.mulf %161, %163 : vector<8x128xf32>
      %165 = arith.mulf %164, %74 : vector<8x128xf32>
      %166 = vector.broadcast %22 : vector<1x128xf32> to vector<8x128xf32>
      %167 = arith.subf %166, %7 : vector<8x128xf32>
      %c6_56 = arith.constant 6 : index
      %c0_57 = arith.constant 0 : index
      %168 = vector.load %arg4[%c6_56, %c0_57] : memref<36x128xf32, #tpu.memory_space<vmem>>, vector<1x128xf32>
      %169 = vector.broadcast %168 : vector<1x128xf32> to vector<8x128xf32>
      %170 = arith.mulf %167, %169 : vector<8x128xf32>
      %171 = arith.mulf %170, %78 : vector<8x128xf32>
      %172 = arith.addf %165, %171 : vector<8x128xf32>
      %173 = vector.broadcast %21 : vector<1x128xf32> to vector<8x128xf32>
      %174 = arith.subf %7, %173 : vector<8x128xf32>
      %c6_58 = arith.constant 6 : index
      %c0_59 = arith.constant 0 : index
      %175 = vector.load %arg4[%c6_58, %c0_59] : memref<36x128xf32, #tpu.memory_space<vmem>>, vector<1x128xf32>
      %176 = vector.broadcast %175 : vector<1x128xf32> to vector<8x128xf32>
      %177 = arith.mulf %174, %176 : vector<8x128xf32>
      %178 = arith.mulf %177, %78 : vector<8x128xf32>
      %179 = vector.broadcast %23 : vector<1x128xf32> to vector<8x128xf32>
      %180 = arith.subf %179, %7 : vector<8x128xf32>
      %c7_60 = arith.constant 7 : index
      %c0_61 = arith.constant 0 : index
      %181 = vector.load %arg4[%c7_60, %c0_61] : memref<36x128xf32, #tpu.memory_space<vmem>>, vector<1x128xf32>
      %182 = vector.broadcast %181 : vector<1x128xf32> to vector<8x128xf32>
      %183 = arith.mulf %180, %182 : vector<8x128xf32>
      %184 = arith.mulf %183, %82 : vector<8x128xf32>
      %185 = arith.addf %178, %184 : vector<8x128xf32>
      %186 = vector.broadcast %22 : vector<1x128xf32> to vector<8x128xf32>
      %187 = arith.subf %7, %186 : vector<8x128xf32>
      %c7_62 = arith.constant 7 : index
      %c0_63 = arith.constant 0 : index
      %188 = vector.load %arg4[%c7_62, %c0_63] : memref<36x128xf32, #tpu.memory_space<vmem>>, vector<1x128xf32>
      %189 = vector.broadcast %188 : vector<1x128xf32> to vector<8x128xf32>
      %190 = arith.mulf %187, %189 : vector<8x128xf32>
      %191 = arith.mulf %190, %82 : vector<8x128xf32>
      %192 = vector.broadcast %24 : vector<1x128xf32> to vector<8x128xf32>
      %193 = arith.subf %192, %7 : vector<8x128xf32>
      %c8_64 = arith.constant 8 : index
      %c0_65 = arith.constant 0 : index
      %194 = vector.load %arg4[%c8_64, %c0_65] : memref<36x128xf32, #tpu.memory_space<vmem>>, vector<1x128xf32>
      %195 = vector.broadcast %194 : vector<1x128xf32> to vector<8x128xf32>
      %196 = arith.mulf %193, %195 : vector<8x128xf32>
      %197 = arith.mulf %196, %86 : vector<8x128xf32>
      %198 = arith.addf %191, %197 : vector<8x128xf32>
      %199 = vector.broadcast %23 : vector<1x128xf32> to vector<8x128xf32>
      %200 = arith.subf %7, %199 : vector<8x128xf32>
      %c8_66 = arith.constant 8 : index
      %c0_67 = arith.constant 0 : index
      %201 = vector.load %arg4[%c8_66, %c0_67] : memref<36x128xf32, #tpu.memory_space<vmem>>, vector<1x128xf32>
      %202 = vector.broadcast %201 : vector<1x128xf32> to vector<8x128xf32>
      %203 = arith.mulf %200, %202 : vector<8x128xf32>
      %204 = arith.mulf %203, %86 : vector<8x128xf32>
      %205 = vector.broadcast %25 : vector<1x128xf32> to vector<8x128xf32>
      %206 = arith.subf %205, %7 : vector<8x128xf32>
      %c9_68 = arith.constant 9 : index
      %c0_69 = arith.constant 0 : index
      %207 = vector.load %arg4[%c9_68, %c0_69] : memref<36x128xf32, #tpu.memory_space<vmem>>, vector<1x128xf32>
      %208 = vector.broadcast %207 : vector<1x128xf32> to vector<8x128xf32>
      %209 = arith.mulf %206, %208 : vector<8x128xf32>
      %210 = arith.mulf %209, %90 : vector<8x128xf32>
      %211 = arith.addf %204, %210 : vector<8x128xf32>
      %212 = vector.broadcast %24 : vector<1x128xf32> to vector<8x128xf32>
      %213 = arith.subf %7, %212 : vector<8x128xf32>
      %c9_70 = arith.constant 9 : index
      %c0_71 = arith.constant 0 : index
      %214 = vector.load %arg4[%c9_70, %c0_71] : memref<36x128xf32, #tpu.memory_space<vmem>>, vector<1x128xf32>
      %215 = vector.broadcast %214 : vector<1x128xf32> to vector<8x128xf32>
      %216 = arith.mulf %213, %215 : vector<8x128xf32>
      %217 = arith.mulf %216, %90 : vector<8x128xf32>
      %218 = vector.broadcast %26 : vector<1x128xf32> to vector<8x128xf32>
      %219 = arith.subf %218, %7 : vector<8x128xf32>
      %c10_72 = arith.constant 10 : index
      %c0_73 = arith.constant 0 : index
      %220 = vector.load %arg4[%c10_72, %c0_73] : memref<36x128xf32, #tpu.memory_space<vmem>>, vector<1x128xf32>
      %221 = vector.broadcast %220 : vector<1x128xf32> to vector<8x128xf32>
      %222 = arith.mulf %219, %221 : vector<8x128xf32>
      %223 = arith.mulf %222, %94 : vector<8x128xf32>
      %224 = arith.addf %217, %223 : vector<8x128xf32>
      %225 = vector.broadcast %15 : vector<1x128xf32> to vector<8x128xf32>
      %226 = arith.subf %7, %225 : vector<8x128xf32>
      %c12 = arith.constant 12 : index
      %c0_74 = arith.constant 0 : index
      %227 = vector.load %arg4[%c12, %c0_74] : memref<36x128xf32, #tpu.memory_space<vmem>>, vector<1x128xf32>
      %228 = vector.broadcast %227 : vector<1x128xf32> to vector<8x128xf32>
      %229 = arith.mulf %226, %228 : vector<8x128xf32>
      %230 = arith.mulf %229, %107 : vector<8x128xf32>
      %231 = vector.broadcast %18 : vector<1x128xf32> to vector<8x128xf32>
      %232 = arith.subf %231, %7 : vector<8x128xf32>
      %c13 = arith.constant 13 : index
      %c0_75 = arith.constant 0 : index
      %233 = vector.load %arg4[%c13, %c0_75] : memref<36x128xf32, #tpu.memory_space<vmem>>, vector<1x128xf32>
      %234 = vector.broadcast %233 : vector<1x128xf32> to vector<8x128xf32>
      %235 = arith.mulf %232, %234 : vector<8x128xf32>
      %236 = arith.mulf %235, %120 : vector<8x128xf32>
      %237 = arith.addf %230, %236 : vector<8x128xf32>
      %238 = vector.broadcast %16 : vector<1x128xf32> to vector<8x128xf32>
      %239 = arith.subf %7, %238 : vector<8x128xf32>
      %c13_76 = arith.constant 13 : index
      %c0_77 = arith.constant 0 : index
      %240 = vector.load %arg4[%c13_76, %c0_77] : memref<36x128xf32, #tpu.memory_space<vmem>>, vector<1x128xf32>
      %241 = vector.broadcast %240 : vector<1x128xf32> to vector<8x128xf32>
      %242 = arith.mulf %239, %241 : vector<8x128xf32>
      %243 = arith.mulf %242, %120 : vector<8x128xf32>
      %244 = vector.broadcast %19 : vector<1x128xf32> to vector<8x128xf32>
      %245 = arith.subf %244, %7 : vector<8x128xf32>
      %c14 = arith.constant 14 : index
      %c0_78 = arith.constant 0 : index
      %246 = vector.load %arg4[%c14, %c0_78] : memref<36x128xf32, #tpu.memory_space<vmem>>, vector<1x128xf32>
      %247 = vector.broadcast %246 : vector<1x128xf32> to vector<8x128xf32>
      %248 = arith.mulf %245, %247 : vector<8x128xf32>
      %249 = arith.mulf %248, %133 : vector<8x128xf32>
      %250 = arith.addf %243, %249 : vector<8x128xf32>
      %251 = vector.broadcast %17 : vector<1x128xf32> to vector<8x128xf32>
      %252 = arith.subf %7, %251 : vector<8x128xf32>
      %c14_79 = arith.constant 14 : index
      %c0_80 = arith.constant 0 : index
      %253 = vector.load %arg4[%c14_79, %c0_80] : memref<36x128xf32, #tpu.memory_space<vmem>>, vector<1x128xf32>
      %254 = vector.broadcast %253 : vector<1x128xf32> to vector<8x128xf32>
      %255 = arith.mulf %252, %254 : vector<8x128xf32>
      %256 = arith.mulf %255, %133 : vector<8x128xf32>
      %257 = vector.broadcast %20 : vector<1x128xf32> to vector<8x128xf32>
      %258 = arith.subf %257, %7 : vector<8x128xf32>
      %c15 = arith.constant 15 : index
      %c0_81 = arith.constant 0 : index
      %259 = vector.load %arg4[%c15, %c0_81] : memref<36x128xf32, #tpu.memory_space<vmem>>, vector<1x128xf32>
      %260 = vector.broadcast %259 : vector<1x128xf32> to vector<8x128xf32>
      %261 = arith.mulf %258, %260 : vector<8x128xf32>
      %262 = arith.mulf %261, %146 : vector<8x128xf32>
      %263 = arith.addf %256, %262 : vector<8x128xf32>
      %264 = vector.broadcast %18 : vector<1x128xf32> to vector<8x128xf32>
      %265 = arith.subf %7, %264 : vector<8x128xf32>
      %c15_82 = arith.constant 15 : index
      %c0_83 = arith.constant 0 : index
      %266 = vector.load %arg4[%c15_82, %c0_83] : memref<36x128xf32, #tpu.memory_space<vmem>>, vector<1x128xf32>
      %267 = vector.broadcast %266 : vector<1x128xf32> to vector<8x128xf32>
      %268 = arith.mulf %265, %267 : vector<8x128xf32>
      %269 = arith.mulf %268, %146 : vector<8x128xf32>
      %270 = vector.broadcast %21 : vector<1x128xf32> to vector<8x128xf32>
      %271 = arith.subf %270, %7 : vector<8x128xf32>
      %c16 = arith.constant 16 : index
      %c0_84 = arith.constant 0 : index
      %272 = vector.load %arg4[%c16, %c0_84] : memref<36x128xf32, #tpu.memory_space<vmem>>, vector<1x128xf32>
      %273 = vector.broadcast %272 : vector<1x128xf32> to vector<8x128xf32>
      %274 = arith.mulf %271, %273 : vector<8x128xf32>
      %275 = arith.mulf %274, %159 : vector<8x128xf32>
      %276 = arith.addf %269, %275 : vector<8x128xf32>
      %277 = vector.broadcast %19 : vector<1x128xf32> to vector<8x128xf32>
      %278 = arith.subf %7, %277 : vector<8x128xf32>
      %c16_85 = arith.constant 16 : index
      %c0_86 = arith.constant 0 : index
      %279 = vector.load %arg4[%c16_85, %c0_86] : memref<36x128xf32, #tpu.memory_space<vmem>>, vector<1x128xf32>
      %280 = vector.broadcast %279 : vector<1x128xf32> to vector<8x128xf32>
      %281 = arith.mulf %278, %280 : vector<8x128xf32>
      %282 = arith.mulf %281, %159 : vector<8x128xf32>
      %283 = vector.broadcast %22 : vector<1x128xf32> to vector<8x128xf32>
      %284 = arith.subf %283, %7 : vector<8x128xf32>
      %c17 = arith.constant 17 : index
      %c0_87 = arith.constant 0 : index
      %285 = vector.load %arg4[%c17, %c0_87] : memref<36x128xf32, #tpu.memory_space<vmem>>, vector<1x128xf32>
      %286 = vector.broadcast %285 : vector<1x128xf32> to vector<8x128xf32>
      %287 = arith.mulf %284, %286 : vector<8x128xf32>
      %288 = arith.mulf %287, %172 : vector<8x128xf32>
      %289 = arith.addf %282, %288 : vector<8x128xf32>
      %290 = vector.broadcast %20 : vector<1x128xf32> to vector<8x128xf32>
      %291 = arith.subf %7, %290 : vector<8x128xf32>
      %c17_88 = arith.constant 17 : index
      %c0_89 = arith.constant 0 : index
      %292 = vector.load %arg4[%c17_88, %c0_89] : memref<36x128xf32, #tpu.memory_space<vmem>>, vector<1x128xf32>
      %293 = vector.broadcast %292 : vector<1x128xf32> to vector<8x128xf32>
      %294 = arith.mulf %291, %293 : vector<8x128xf32>
      %295 = arith.mulf %294, %172 : vector<8x128xf32>
      %296 = vector.broadcast %23 : vector<1x128xf32> to vector<8x128xf32>
      %297 = arith.subf %296, %7 : vector<8x128xf32>
      %c18 = arith.constant 18 : index
      %c0_90 = arith.constant 0 : index
      %298 = vector.load %arg4[%c18, %c0_90] : memref<36x128xf32, #tpu.memory_space<vmem>>, vector<1x128xf32>
      %299 = vector.broadcast %298 : vector<1x128xf32> to vector<8x128xf32>
      %300 = arith.mulf %297, %299 : vector<8x128xf32>
      %301 = arith.mulf %300, %185 : vector<8x128xf32>
      %302 = arith.addf %295, %301 : vector<8x128xf32>
      %303 = vector.broadcast %21 : vector<1x128xf32> to vector<8x128xf32>
      %304 = arith.subf %7, %303 : vector<8x128xf32>
      %c18_91 = arith.constant 18 : index
      %c0_92 = arith.constant 0 : index
      %305 = vector.load %arg4[%c18_91, %c0_92] : memref<36x128xf32, #tpu.memory_space<vmem>>, vector<1x128xf32>
      %306 = vector.broadcast %305 : vector<1x128xf32> to vector<8x128xf32>
      %307 = arith.mulf %304, %306 : vector<8x128xf32>
      %308 = arith.mulf %307, %185 : vector<8x128xf32>
      %309 = vector.broadcast %24 : vector<1x128xf32> to vector<8x128xf32>
      %310 = arith.subf %309, %7 : vector<8x128xf32>
      %c19 = arith.constant 19 : index
      %c0_93 = arith.constant 0 : index
      %311 = vector.load %arg4[%c19, %c0_93] : memref<36x128xf32, #tpu.memory_space<vmem>>, vector<1x128xf32>
      %312 = vector.broadcast %311 : vector<1x128xf32> to vector<8x128xf32>
      %313 = arith.mulf %310, %312 : vector<8x128xf32>
      %314 = arith.mulf %313, %198 : vector<8x128xf32>
      %315 = arith.addf %308, %314 : vector<8x128xf32>
      %316 = vector.broadcast %22 : vector<1x128xf32> to vector<8x128xf32>
      %317 = arith.subf %7, %316 : vector<8x128xf32>
      %c19_94 = arith.constant 19 : index
      %c0_95 = arith.constant 0 : index
      %318 = vector.load %arg4[%c19_94, %c0_95] : memref<36x128xf32, #tpu.memory_space<vmem>>, vector<1x128xf32>
      %319 = vector.broadcast %318 : vector<1x128xf32> to vector<8x128xf32>
      %320 = arith.mulf %317, %319 : vector<8x128xf32>
      %321 = arith.mulf %320, %198 : vector<8x128xf32>
      %322 = vector.broadcast %25 : vector<1x128xf32> to vector<8x128xf32>
      %323 = arith.subf %322, %7 : vector<8x128xf32>
      %c20 = arith.constant 20 : index
      %c0_96 = arith.constant 0 : index
      %324 = vector.load %arg4[%c20, %c0_96] : memref<36x128xf32, #tpu.memory_space<vmem>>, vector<1x128xf32>
      %325 = vector.broadcast %324 : vector<1x128xf32> to vector<8x128xf32>
      %326 = arith.mulf %323, %325 : vector<8x128xf32>
      %327 = arith.mulf %326, %211 : vector<8x128xf32>
      %328 = arith.addf %321, %327 : vector<8x128xf32>
      %329 = vector.broadcast %23 : vector<1x128xf32> to vector<8x128xf32>
      %330 = arith.subf %7, %329 : vector<8x128xf32>
      %c20_97 = arith.constant 20 : index
      %c0_98 = arith.constant 0 : index
      %331 = vector.load %arg4[%c20_97, %c0_98] : memref<36x128xf32, #tpu.memory_space<vmem>>, vector<1x128xf32>
      %332 = vector.broadcast %331 : vector<1x128xf32> to vector<8x128xf32>
      %333 = arith.mulf %330, %332 : vector<8x128xf32>
      %334 = arith.mulf %333, %211 : vector<8x128xf32>
      %335 = vector.broadcast %26 : vector<1x128xf32> to vector<8x128xf32>
      %336 = arith.subf %335, %7 : vector<8x128xf32>
      %c21 = arith.constant 21 : index
      %c0_99 = arith.constant 0 : index
      %337 = vector.load %arg4[%c21, %c0_99] : memref<36x128xf32, #tpu.memory_space<vmem>>, vector<1x128xf32>
      %338 = vector.broadcast %337 : vector<1x128xf32> to vector<8x128xf32>
      %339 = arith.mulf %336, %338 : vector<8x128xf32>
      %340 = arith.mulf %339, %224 : vector<8x128xf32>
      %341 = arith.addf %334, %340 : vector<8x128xf32>
      %342 = vector.broadcast %15 : vector<1x128xf32> to vector<8x128xf32>
      %343 = arith.subf %7, %342 : vector<8x128xf32>
      %c24 = arith.constant 24 : index
      %c0_100 = arith.constant 0 : index
      %344 = vector.load %arg4[%c24, %c0_100] : memref<36x128xf32, #tpu.memory_space<vmem>>, vector<1x128xf32>
      %345 = vector.broadcast %344 : vector<1x128xf32> to vector<8x128xf32>
      %346 = arith.mulf %343, %345 : vector<8x128xf32>
      %347 = arith.mulf %346, %237 : vector<8x128xf32>
      %348 = vector.broadcast %19 : vector<1x128xf32> to vector<8x128xf32>
      %349 = arith.subf %348, %7 : vector<8x128xf32>
      %c25 = arith.constant 25 : index
      %c0_101 = arith.constant 0 : index
      %350 = vector.load %arg4[%c25, %c0_101] : memref<36x128xf32, #tpu.memory_space<vmem>>, vector<1x128xf32>
      %351 = vector.broadcast %350 : vector<1x128xf32> to vector<8x128xf32>
      %352 = arith.mulf %349, %351 : vector<8x128xf32>
      %353 = arith.mulf %352, %250 : vector<8x128xf32>
      %354 = arith.addf %347, %353 : vector<8x128xf32>
      %355 = vector.broadcast %16 : vector<1x128xf32> to vector<8x128xf32>
      %356 = arith.subf %7, %355 : vector<8x128xf32>
      %c25_102 = arith.constant 25 : index
      %c0_103 = arith.constant 0 : index
      %357 = vector.load %arg4[%c25_102, %c0_103] : memref<36x128xf32, #tpu.memory_space<vmem>>, vector<1x128xf32>
      %358 = vector.broadcast %357 : vector<1x128xf32> to vector<8x128xf32>
      %359 = arith.mulf %356, %358 : vector<8x128xf32>
      %360 = arith.mulf %359, %250 : vector<8x128xf32>
      %361 = vector.broadcast %20 : vector<1x128xf32> to vector<8x128xf32>
      %362 = arith.subf %361, %7 : vector<8x128xf32>
      %c26 = arith.constant 26 : index
      %c0_104 = arith.constant 0 : index
      %363 = vector.load %arg4[%c26, %c0_104] : memref<36x128xf32, #tpu.memory_space<vmem>>, vector<1x128xf32>
      %364 = vector.broadcast %363 : vector<1x128xf32> to vector<8x128xf32>
      %365 = arith.mulf %362, %364 : vector<8x128xf32>
      %366 = arith.mulf %365, %263 : vector<8x128xf32>
      %367 = arith.addf %360, %366 : vector<8x128xf32>
      %368 = vector.broadcast %17 : vector<1x128xf32> to vector<8x128xf32>
      %369 = arith.subf %7, %368 : vector<8x128xf32>
      %c26_105 = arith.constant 26 : index
      %c0_106 = arith.constant 0 : index
      %370 = vector.load %arg4[%c26_105, %c0_106] : memref<36x128xf32, #tpu.memory_space<vmem>>, vector<1x128xf32>
      %371 = vector.broadcast %370 : vector<1x128xf32> to vector<8x128xf32>
      %372 = arith.mulf %369, %371 : vector<8x128xf32>
      %373 = arith.mulf %372, %263 : vector<8x128xf32>
      %374 = vector.broadcast %21 : vector<1x128xf32> to vector<8x128xf32>
      %375 = arith.subf %374, %7 : vector<8x128xf32>
      %c27 = arith.constant 27 : index
      %c0_107 = arith.constant 0 : index
      %376 = vector.load %arg4[%c27, %c0_107] : memref<36x128xf32, #tpu.memory_space<vmem>>, vector<1x128xf32>
      %377 = vector.broadcast %376 : vector<1x128xf32> to vector<8x128xf32>
      %378 = arith.mulf %375, %377 : vector<8x128xf32>
      %379 = arith.mulf %378, %276 : vector<8x128xf32>
      %380 = arith.addf %373, %379 : vector<8x128xf32>
      %381 = vector.broadcast %18 : vector<1x128xf32> to vector<8x128xf32>
      %382 = arith.subf %7, %381 : vector<8x128xf32>
      %c27_108 = arith.constant 27 : index
      %c0_109 = arith.constant 0 : index
      %383 = vector.load %arg4[%c27_108, %c0_109] : memref<36x128xf32, #tpu.memory_space<vmem>>, vector<1x128xf32>
      %384 = vector.broadcast %383 : vector<1x128xf32> to vector<8x128xf32>
      %385 = arith.mulf %382, %384 : vector<8x128xf32>
      %386 = arith.mulf %385, %276 : vector<8x128xf32>
      %387 = vector.broadcast %22 : vector<1x128xf32> to vector<8x128xf32>
      %388 = arith.subf %387, %7 : vector<8x128xf32>
      %c28 = arith.constant 28 : index
      %c0_110 = arith.constant 0 : index
      %389 = vector.load %arg4[%c28, %c0_110] : memref<36x128xf32, #tpu.memory_space<vmem>>, vector<1x128xf32>
      %390 = vector.broadcast %389 : vector<1x128xf32> to vector<8x128xf32>
      %391 = arith.mulf %388, %390 : vector<8x128xf32>
      %392 = arith.mulf %391, %289 : vector<8x128xf32>
      %393 = arith.addf %386, %392 : vector<8x128xf32>
      %394 = vector.broadcast %19 : vector<1x128xf32> to vector<8x128xf32>
      %395 = arith.subf %7, %394 : vector<8x128xf32>
      %c28_111 = arith.constant 28 : index
      %c0_112 = arith.constant 0 : index
      %396 = vector.load %arg4[%c28_111, %c0_112] : memref<36x128xf32, #tpu.memory_space<vmem>>, vector<1x128xf32>
      %397 = vector.broadcast %396 : vector<1x128xf32> to vector<8x128xf32>
      %398 = arith.mulf %395, %397 : vector<8x128xf32>
      %399 = arith.mulf %398, %289 : vector<8x128xf32>
      %400 = vector.broadcast %23 : vector<1x128xf32> to vector<8x128xf32>
      %401 = arith.subf %400, %7 : vector<8x128xf32>
      %c29 = arith.constant 29 : index
      %c0_113 = arith.constant 0 : index
      %402 = vector.load %arg4[%c29, %c0_113] : memref<36x128xf32, #tpu.memory_space<vmem>>, vector<1x128xf32>
      %403 = vector.broadcast %402 : vector<1x128xf32> to vector<8x128xf32>
      %404 = arith.mulf %401, %403 : vector<8x128xf32>
      %405 = arith.mulf %404, %302 : vector<8x128xf32>
      %406 = arith.addf %399, %405 : vector<8x128xf32>
      %407 = vector.broadcast %20 : vector<1x128xf32> to vector<8x128xf32>
      %408 = arith.subf %7, %407 : vector<8x128xf32>
      %c29_114 = arith.constant 29 : index
      %c0_115 = arith.constant 0 : index
      %409 = vector.load %arg4[%c29_114, %c0_115] : memref<36x128xf32, #tpu.memory_space<vmem>>, vector<1x128xf32>
      %410 = vector.broadcast %409 : vector<1x128xf32> to vector<8x128xf32>
      %411 = arith.mulf %408, %410 : vector<8x128xf32>
      %412 = arith.mulf %411, %302 : vector<8x128xf32>
      %413 = vector.broadcast %24 : vector<1x128xf32> to vector<8x128xf32>
      %414 = arith.subf %413, %7 : vector<8x128xf32>
      %c30 = arith.constant 30 : index
      %c0_116 = arith.constant 0 : index
      %415 = vector.load %arg4[%c30, %c0_116] : memref<36x128xf32, #tpu.memory_space<vmem>>, vector<1x128xf32>
      %416 = vector.broadcast %415 : vector<1x128xf32> to vector<8x128xf32>
      %417 = arith.mulf %414, %416 : vector<8x128xf32>
      %418 = arith.mulf %417, %315 : vector<8x128xf32>
      %419 = arith.addf %412, %418 : vector<8x128xf32>
      %420 = vector.broadcast %21 : vector<1x128xf32> to vector<8x128xf32>
      %421 = arith.subf %7, %420 : vector<8x128xf32>
      %c30_117 = arith.constant 30 : index
      %c0_118 = arith.constant 0 : index
      %422 = vector.load %arg4[%c30_117, %c0_118] : memref<36x128xf32, #tpu.memory_space<vmem>>, vector<1x128xf32>
      %423 = vector.broadcast %422 : vector<1x128xf32> to vector<8x128xf32>
      %424 = arith.mulf %421, %423 : vector<8x128xf32>
      %425 = arith.mulf %424, %315 : vector<8x128xf32>
      %426 = vector.broadcast %25 : vector<1x128xf32> to vector<8x128xf32>
      %427 = arith.subf %426, %7 : vector<8x128xf32>
      %c31 = arith.constant 31 : index
      %c0_119 = arith.constant 0 : index
      %428 = vector.load %arg4[%c31, %c0_119] : memref<36x128xf32, #tpu.memory_space<vmem>>, vector<1x128xf32>
      %429 = vector.broadcast %428 : vector<1x128xf32> to vector<8x128xf32>
      %430 = arith.mulf %427, %429 : vector<8x128xf32>
      %431 = arith.mulf %430, %328 : vector<8x128xf32>
      %432 = arith.addf %425, %431 : vector<8x128xf32>
      %433 = vector.broadcast %22 : vector<1x128xf32> to vector<8x128xf32>
      %434 = arith.subf %7, %433 : vector<8x128xf32>
      %c31_120 = arith.constant 31 : index
      %c0_121 = arith.constant 0 : index
      %435 = vector.load %arg4[%c31_120, %c0_121] : memref<36x128xf32, #tpu.memory_space<vmem>>, vector<1x128xf32>
      %436 = vector.broadcast %435 : vector<1x128xf32> to vector<8x128xf32>
      %437 = arith.mulf %434, %436 : vector<8x128xf32>
      %438 = arith.mulf %437, %328 : vector<8x128xf32>
      %439 = vector.broadcast %26 : vector<1x128xf32> to vector<8x128xf32>
      %440 = arith.subf %439, %7 : vector<8x128xf32>
      %c32 = arith.constant 32 : index
      %c0_122 = arith.constant 0 : index
      %441 = vector.load %arg4[%c32, %c0_122] : memref<36x128xf32, #tpu.memory_space<vmem>>, vector<1x128xf32>
      %442 = vector.broadcast %441 : vector<1x128xf32> to vector<8x128xf32>
      %443 = arith.mulf %440, %442 : vector<8x128xf32>
      %444 = arith.mulf %443, %341 : vector<8x128xf32>
      %445 = arith.addf %438, %444 : vector<8x128xf32>
      %446 = arith.truncf %354 : vector<8x128xf32> to vector<8x128xbf16>
      %c0_123 = arith.constant 0 : index
      %c0_124 = arith.constant 0 : index
      %447 = vector.load %arg7[%c0_123, %c0_124] : memref<8x1152xbf16, #tpu.memory_space<vmem>>, vector<8x128xbf16>
      tpu.vector_store %arg7[%c0_123, %c0_124], %446 {strides = array<i32>} : memref<8x1152xbf16, #tpu.memory_space<vmem>>, vector<8x128xbf16>,
      %448 = arith.truncf %367 : vector<8x128xf32> to vector<8x128xbf16>
      %c0_125 = arith.constant 0 : index
      %c128 = arith.constant 128 : index
      %449 = vector.load %arg7[%c0_125, %c128] : memref<8x1152xbf16, #tpu.memory_space<vmem>>, vector<8x128xbf16>
      tpu.vector_store %arg7[%c0_125, %c128], %448 {strides = array<i32>} : memref<8x1152xbf16, #tpu.memory_space<vmem>>, vector<8x128xbf16>,
      %450 = arith.truncf %380 : vector<8x128xf32> to vector<8x128xbf16>
      %c0_126 = arith.constant 0 : index
      %c256 = arith.constant 256 : index
      %451 = vector.load %arg7[%c0_126, %c256] : memref<8x1152xbf16, #tpu.memory_space<vmem>>, vector<8x128xbf16>
      tpu.vector_store %arg7[%c0_126, %c256], %450 {strides = array<i32>} : memref<8x1152xbf16, #tpu.memory_space<vmem>>, vector<8x128xbf16>,
      %452 = arith.truncf %393 : vector<8x128xf32> to vector<8x128xbf16>
      %c0_127 = arith.constant 0 : index
      %c384 = arith.constant 384 : index
      %453 = vector.load %arg7[%c0_127, %c384] : memref<8x1152xbf16, #tpu.memory_space<vmem>>, vector<8x128xbf16>
      tpu.vector_store %arg7[%c0_127, %c384], %452 {strides = array<i32>} : memref<8x1152xbf16, #tpu.memory_space<vmem>>, vector<8x128xbf16>,
      %454 = arith.truncf %406 : vector<8x128xf32> to vector<8x128xbf16>
      %c0_128 = arith.constant 0 : index
      %c512 = arith.constant 512 : index
      %455 = vector.load %arg7[%c0_128, %c512] : memref<8x1152xbf16, #tpu.memory_space<vmem>>, vector<8x128xbf16>
      tpu.vector_store %arg7[%c0_128, %c512], %454 {strides = array<i32>} : memref<8x1152xbf16, #tpu.memory_space<vmem>>, vector<8x128xbf16>,
      %456 = arith.truncf %419 : vector<8x128xf32> to vector<8x128xbf16>
      %c0_129 = arith.constant 0 : index
      %c640 = arith.constant 640 : index
      %457 = vector.load %arg7[%c0_129, %c640] : memref<8x1152xbf16, #tpu.memory_space<vmem>>, vector<8x128xbf16>
      tpu.vector_store %arg7[%c0_129, %c640], %456 {strides = array<i32>} : memref<8x1152xbf16, #tpu.memory_space<vmem>>, vector<8x128xbf16>,
      %458 = arith.truncf %432 : vector<8x128xf32> to vector<8x128xbf16>
      %c0_130 = arith.constant 0 : index
      %c768 = arith.constant 768 : index
      %459 = vector.load %arg7[%c0_130, %c768] : memref<8x1152xbf16, #tpu.memory_space<vmem>>, vector<8x128xbf16>
      tpu.vector_store %arg7[%c0_130, %c768], %458 {strides = array<i32>} : memref<8x1152xbf16, #tpu.memory_space<vmem>>, vector<8x128xbf16>,
      %460 = arith.truncf %445 : vector<8x128xf32> to vector<8x128xbf16>
      %c0_131 = arith.constant 0 : index
      %c896 = arith.constant 896 : index
      %461 = vector.load %arg7[%c0_131, %c896] : memref<8x1152xbf16, #tpu.memory_space<vmem>>, vector<8x128xbf16>
      tpu.vector_store %arg7[%c0_131, %c896], %460 {strides = array<i32>} : memref<8x1152xbf16, #tpu.memory_space<vmem>>, vector<8x128xbf16>,
      %462 = arith.truncf %14 : vector<8x128xf32> to vector<8x128xbf16>
      %c0_132 = arith.constant 0 : index
      %c1024 = arith.constant 1024 : index
      %463 = vector.load %arg7[%c0_132, %c1024] : memref<8x1152xbf16, #tpu.memory_space<vmem>>, vector<8x128xbf16>
      tpu.vector_store %arg7[%c0_132, %c1024], %462 {strides = array<i32>} : memref<8x1152xbf16, #tpu.memory_space<vmem>>, vector<8x128xbf16>,
    } else {
    }
    %c0 = arith.constant 0 : index
    %c0_1 = arith.constant 0 : index
    %3 = vector.load %arg7[%c0, %c0_1] : memref<8x1152xbf16, #tpu.memory_space<vmem>>, vector<8x1152xbf16>
    %c0_2 = arith.constant 0 : index
    %c0_3 = arith.constant 0 : index
    %4 = vector.load %arg5[%c0_2, %c0_3] : memref<1152x128xbf16, #tpu.memory_space<vmem>>, vector<1152x128xbf16>
    %cst = arith.constant dense<0.000000e+00> : vector<8x128xf32>
    %5 = tpu.matmul %3, %4, %cst {dimension_numbers = #tpu.dot_dimension_numbers<[1], [0], [0], [1], [0, 0, 1, 1], [], []>} : vector<8x1152xbf16>, vector<1152x128xbf16>, vector<8x128xf32> -> vector<8x128xf32>
    %c0_4 = arith.constant 0 : index
    %c0_5 = arith.constant 0 : index
    %6 = vector.load %arg6[%c0_4, %c0_5] : memref<8x128xf32, #tpu.memory_space<vmem>>, vector<8x128xf32>
    tpu.vector_store %arg6[%c0_4, %c0_5], %5 {strides = array<i32>} : memref<8x128xf32, #tpu.memory_space<vmem>>, vector<8x128xf32>,
    return
  }
  func.func @transform_0(%arg0: i32, %arg1: i32) -> (i32, i32) {
    %c0_i32 = arith.constant 0 : i32
    %c0_i32_0 = arith.constant 0 : i32
    return %arg0, %c0_i32 : i32, i32
  }
  func.func @transform_1(%arg0: i32, %arg1: i32) -> (i32, i32) {
    %c0_i32 = arith.constant 0 : i32
    %c0_i32_0 = arith.constant 0 : i32
    %c0_i32_1 = arith.constant 0 : i32
    return %c0_i32, %c0_i32_0 : i32, i32
  }
  func.func @transform_2(%arg0: i32, %arg1: i32) -> (i32, i32) {
    %c0_i32 = arith.constant 0 : i32
    %c0_i32_0 = arith.constant 0 : i32
    %c0_i32_1 = arith.constant 0 : i32
    return %c0_i32, %c0_i32_0 : i32, i32
  }
  func.func @transform_3(%arg0: i32, %arg1: i32) -> (i32, i32) {
    %c0_i32 = arith.constant 0 : i32
    %c0_i32_0 = arith.constant 0 : i32
    return %c0_i32, %arg1 : i32, i32
  }
  func.func @transform_4(%arg0: i32, %arg1: i32) -> (i32, i32) {
    %c0_i32 = arith.constant 0 : i32
    return %arg0, %arg1 : i32, i32
  }
}

</mosaic_0001>

<bundles_post_ra>
// kernel: _lambda_.3
= control target key start
LH: loop header
LB: loop body
LE: loop exit
PB: predicated region body
PF: predicated region fallthrough
CT: control target
= control target key end

     0   :  { %vm1684_vm4 = vmmov 1   ;;  %v1685_v48 = vmov 0.0   ;;  %s2298_s0 = inlined_call_operand.vmem [shape: f32[8,128], index: 0, kind: input, shape index: {}]   ;;  %s2299_s1 = inlined_call_operand.vmem [shape: f32[12,128], index: 1, kind: input, shape index: {}]   ;;  %s2300_s2 = inlined_call_operand.vmem [shape: f32[36,128], index: 2, kind: input, shape index: {}]   ;;  %s2301_s3 = inlined_call_operand.vmem [shape: bf16[1152,128], index: 3, kind: input, shape index: {}]   ;;  %s2302_s4 = inlined_call_operand.hbm [shape: f32[8,128], index: 4, kind: output, shape index: {}]  }
   0x1   :  { %v1575_v0 = vld [vmem:[%s2301_s3 + $0x40] sm:$0xff]   ;;  %v1579_v4 = vld [vmem:[%s2301_s3 + $0x48] sm:$0xff]   ;;  %v1583_v8 = vld [vmem:[%s2301_s3 + $0x50] sm:$0xff]  }
   0x2   :  { %v1576_v1 = vld [vmem:[%s2301_s3 + $0xc0] sm:$0xff]   ;;  %1454 = vmatprep.subr.bf16.mxu0 %v1575_v0  ;;  %v1580_v5 = vld [vmem:[%s2301_s3 + $0xc8] sm:$0xff]   ;;  %v1584_v9 = vld [vmem:[%s2301_s3 + $0xd0] sm:$0xff]  }
   0x3   :  { %v1577_v2 = vld [vmem:[%s2301_s3] sm:$0xff]   ;;  %1476 = vmatprep.subr.bf16.mxu1 %v1576_v1  ;;  %v1581_v6 = vld [vmem:[%s2301_s3 + $0x8] sm:$0xff]   ;;  %v1585_v10 = vld [vmem:[%s2301_s3 + $0x10] sm:$0xff]  }
   0x4   :  { %v1578_v3 = vld [vmem:[%s2301_s3 + $0x80] sm:$0xff]   ;;  %1455 = vmatpush3.bf16.msra.mxu0 %v1577_v2  ;;  %v1582_v7 = vld [vmem:[%s2301_s3 + $0x88] sm:$0xff]   ;;  %v1586_v11 = vld [vmem:[%s2301_s3 + $0x90] sm:$0xff]  }
   0x5   :  { %1477 = vmatpush3.bf16.msra.mxu1 %v1578_v3  ;;  %1456 = vmatprep.subr.bf16.mxu0 %v1579_v4  ;;  %v1587_v12 = vld [vmem:[%s2301_s3 + $0x58] sm:$0xff]   ;;  %v1591_v16 = vld [vmem:[%s2301_s3 + $0x60] sm:$0xff]   ;;  %v1595_v20 = vld [vmem:[%s2301_s3 + $0x68] sm:$0xff]  }
   0x6   :  { %1478 = vmatprep.subr.bf16.mxu1 %v1580_v5  ;;  %v1588_v13 = vld [vmem:[%s2301_s3 + $0xd8] sm:$0xff]   ;;  %v1592_v17 = vld [vmem:[%s2301_s3 + $0xe0] sm:$0xff]   ;;  %v1596_v21 = vld [vmem:[%s2301_s3 + $0xe8] sm:$0xff]  }
   0x7   :  { %v1589_v14 = vld [vmem:[%s2301_s3 + $0x18] sm:$0xff]   ;;  %v1593_v18 = vld [vmem:[%s2301_s3 + $0x20] sm:$0xff]   ;;  %v1597_v22 = vld [vmem:[%s2301_s3 + $0x28] sm:$0xff]  }
   0x8   :  { %1457 = vmatpush3.bf16.msra.mxu0 %v1581_v6  ;;  %v1590_v15 = vld [vmem:[%s2301_s3 + $0x98] sm:$0xff]   ;;  %v1594_v19 = vld [vmem:[%s2301_s3 + $0xa0] sm:$0xff]   ;;  %v1598_v23 = vld [vmem:[%s2301_s3 + $0xa8] sm:$0xff]  }
   0x9   :  { %1479 = vmatpush3.bf16.msra.mxu1 %v1582_v7  ;;  %1458 = vmatprep.subr.bf16.mxu0 %v1583_v8  ;;  %v1599_v24 = vld [vmem:[%s2301_s3 + $0x70] sm:$0xff]   ;;  %v1603_v28 = vld [vmem:[%s2301_s3 + $0x78] sm:$0xff]   ;;  %v1812_v32 = vld [vmem:[%s2298_s0] sm:$0xff] }
   0xa   :  { %1480 = vmatprep.subr.bf16.mxu1 %v1584_v9  ;;  %v1600_v25 = vld [vmem:[%s2301_s3 + $0xf0] sm:$0xff]   ;;  %v1604_v29 = vld [vmem:[%s2301_s3 + $0xf8] sm:$0xff]   ;;  %v1297_v33 = vld [vmem:[%s2299_s1] ss:$0 sm:$0xff] }
   0xb   :  { %v1601_v26 = vld [vmem:[%s2301_s3 + $0x30] sm:$0xff]   ;;  %v1605_v30 = vld [vmem:[%s2301_s3 + $0x38] sm:$0xff]   ;;  %v1298_v34 = vld [vmem:[%s2299_s1 + $0x1] ss:$0 sm:$0xff]  ;;  %vm46_vm0 = vcmp.ge.f32.partialorder %v1812_v32, %v1297_v33  ;;  %v1834_v38 = vsub.f32 %v1812_v32, %v1297_v33 }
   0xc   :  { %1459 = vmatpush3.bf16.msra.mxu0 %v1585_v10  ;;  %v1602_v27 = vld [vmem:[%s2301_s3 + $0xb0] sm:$0xff]   ;;  %v1606_v31 = vld [vmem:[%s2301_s3 + $0xb8] sm:$0xff]   ;;  %v1299_v35 = vld [vmem:[%s2299_s1 + $0x2] ss:$0 sm:$0xff]  ;;  %vm51_vm1 = vcmp.ge.f32.partialorder %v1812_v32, %v1298_v34  ;;  %v1837_v39 = vsub.f32 %v1812_v32, %v1298_v34 }
   0xd   :  { %1481 = vmatpush3.bf16.msra.mxu1 %v1586_v11  ;;  %1460 = vmatprep.subr.bf16.mxu0 %v1587_v12  ;;  %v1300_v36 = vld [vmem:[%s2299_s1 + $0x3] ss:$0 sm:$0xff]  ;;  %v1829_v37 = vld [vmem:[%s2299_s1 + $0x4] ss:$0 sm:$0xff]  ;;  %v1842_v40 = vld [vmem:[%s2299_s1 + $0x5] ss:$0 sm:$0xff]  ;;  %vm56_vm2 = vcmp.ge.f32.partialorder %v1812_v32, %v1299_v35  ;;  %v154_v42 = vsub.f32 %v1299_v35, %v1812_v32  ;;  %v1864_v47 = vsub.f32 %v1812_v32, %v1299_v35 }
   0xe   :  { %1482 = vmatprep.subr.bf16.mxu1 %v1588_v13  ;;  %vm61_vm3 = vcmp.ge.f32.partialorder %v1812_v32, %v1300_v36  ;;  %vm102_vm5 = vmxor %vm51_vm1, %vm1684_vm4  ;;  %v1320_v41 = vld [vmem:[%s2300_s2] ss:$0 sm:$0xff]  ;;  %vm66_vm6 = vcmp.ge.f32.partialorder %v1812_v32, %v1829_v37  ;;  %v1321_v44 = vld [vmem:[%s2300_s2 + $0x1] ss:$0 sm:$0xff]  ;;  %v166_v45 = vsub.f32 %v1300_v36, %v1812_v32  ;;  %v178_v52 = vsub.f32 %v1829_v37, %v1812_v32 }
   0xf   :  { %vm103_vm7 = vmand %vm46_vm0, %vm102_vm5  ;;  %v152_v43 = vmul.f32 %v1320_v41, %v1834_v38  ;;  %v1322_v46 = vld [vmem:[%s2300_s2 + $0x2] ss:$0 sm:$0xff]  ;;  %v160_v50 = vmul.f32 %v1321_v44, %v154_v42  ;;  %v164_v51 = vmul.f32 %v1321_v44, %v1837_v39  ;;  %v1323_v53 = vld [vmem:[%s2300_s2 + $0x3] ss:$0 sm:$0xff]  ;;  %v1885_v58 = vsub.f32 %v1812_v32, %v1300_v36 }
  0x10   :  { %1461 = vmatpush3.bf16.msra.mxu0 %v1589_v14  ;;  %v1309_v49 = vsel %vm103_vm7, 1.0, %v1685_v48  ;;  %vm106_vm8 = vmxor %vm56_vm2, %vm1684_vm4  ;;  %v1879_v54 = vld [vmem:[%s2300_s2 + $0x4] ss:$0 sm:$0xff]  ;;  %v172_v56 = vmul.f32 %v1322_v46, %v166_v45  ;;  %v176_v57 = vmul.f32 %v1322_v46, %v1864_v47  ;;  %v1331_v59 = vld [vmem:[%s2300_s2 + $0xc] ss:$0 sm:$0xff]  ;;  %vm71_vm10 = vcmp.ge.f32.partialorder %v1812_v32, %v1842_v40 }
  0x11   :  { %1483 = vmatpush3.bf16.msra.mxu1 %v1590_v15  ;;  %1462 = vmatprep.subr.bf16.mxu0 %v1591_v16  ;;  %vm107_vm9 = vmand %vm51_vm1, %vm106_vm8  ;;  %v153_v55 = vmul.f32 %v1309_v49, %v152_v43  ;;  %v1332_v60 = vld [vmem:[%s2300_s2 + $0xd] ss:$0 sm:$0xff]  ;;  %v184_v62 = vmul.f32 %v1323_v53, %v178_v52  ;;  %v190_v63 = vsub.f32 %v1842_v40, %v1812_v32  ;;  %v1333_v4 = vld [vmem:[%s2300_s2 + $0xe] ss:$0 sm:$0xff] }
  0x12   :  { %1484 = vmatprep.subr.bf16.mxu1 %v1592_v17  ;;  %v1310_v61 = vsel %vm107_vm9, 1.0, %v1685_v48  ;;  %vm110_vm11 = vmxor %vm61_vm3, %vm1684_vm4  ;;  %v188_v2 = vmul.f32 %v1323_v53, %v1885_v58  ;;  %v276_v3 = vmul.f32 %v1331_v59, %v1834_v38  ;;  %v1911_v5 = vld [vmem:[%s2300_s2 + $0xf] ss:$0 sm:$0xff]  ;;  %v1921_v8 = vsub.f32 %v1812_v32, %v1842_v40  ;;  %v1341_v14 = vld [vmem:[%s2300_s2 + $0x18] ss:$0 sm:$0xff] }
  0x13   :  { %vm111_vm12 = vmand %vm56_vm2, %vm110_vm11  ;;  %v161_v0 = vmul.f32 %v1310_v61, %v160_v50  ;;  %v165_v1 = vmul.f32 %v1310_v61, %v164_v51  ;;  %v196_v7 = vmul.f32 %v1879_v54, %v190_v63  ;;  %v283_v9 = vmul.f32 %v1332_v60, %v166_v45  ;;  %v1342_v15 = vld [vmem:[%s2300_s2 + $0x19] ss:$0 sm:$0xff]  ;;  %v1607_v33 = vld [vmem:[%s2301_s3 + $0x140] sm:$0xff]  }
  0x14   :  { %1463 = vmatpush3.bf16.msra.mxu0 %v1593_v18  ;;  %v1311_v6 = vsel %vm111_vm12, 1.0, %v1685_v48  ;;  %vm114_vm13 = vmxor %vm66_vm6, %vm1684_vm4  ;;  %v286_v13 = vmul.f32 %v1332_v60, %v1837_v39  ;;  %v293_v17 = vmul.f32 %v1333_v4, %v178_v52  ;;  %v296_v18 = vmul.f32 %v1333_v4, %v1864_v47  ;;  %v1335_v61 = vld [vmem:[%s2300_s2 + $0x10] ss:$0 sm:$0xff]  ;;  %v1336_v4 = vld [vmem:[%s2300_s2 + $0x11] ss:$0 sm:$0xff] }
  0x15   :  { %1485 = vmatpush3.bf16.msra.mxu1 %v1594_v19  ;;  %1464 = vmatprep.subr.bf16.mxu0 %v1595_v20  ;;  %vm115_vm14 = vmand %vm61_vm3, %vm114_vm13  ;;  %v162_v10 = vadd.f32 %v161_v0, %v153_v55  ;;  %v173_v11 = vmul.f32 %v1311_v6, %v172_v56  ;;  %v177_v12 = vmul.f32 %v1311_v6, %v176_v57  ;;  %v1942_v20 = vld [vmem:[%s2300_s2 + $0x1a] ss:$0 sm:$0xff] }
  0x16   :  { %1486 = vmatprep.subr.bf16.mxu1 %v1596_v21  ;;  %v1312_v16 = vsel %vm115_vm14, 1.0, %v1685_v48  ;;  %vm118_vm15 = vmxor %vm71_vm10, %vm1684_vm4  ;;  %v303_v19 = vmul.f32 %v1911_v5, %v190_v63  ;;  %v388_v42 = vmul.f32 %v1942_v20, %v190_v63 }
  0x17   :  { %vm119_vm0 = vmand %vm66_vm6, %vm118_vm15  ;;  %v174_v21 = vadd.f32 %v173_v11, %v165_v1 }
  0x18   :  { %1465 = vmatpush3.bf16.msra.mxu0 %v1597_v22  ;;  %v185_v22 = vmul.f32 %v1312_v16, %v184_v62 }
  0x19   :  { %1487 = vmatpush3.bf16.msra.mxu1 %v1598_v23  ;;  %1466 = vmatprep.subr.bf16.mxu0 %v1599_v24  ;;  %v189_v23 = vmul.f32 %v1312_v16, %v188_v2  ;;  %v277_v24 = vmul.f32 %v276_v3, %v162_v10  ;;  %v284_v36 = vmul.f32 %v283_v9, %v174_v21 }
  0x1a   :  { %1488 = vmatprep.subr.bf16.mxu1 %v1600_v25  ;;  %v1950_v25 = vld [vmem:[%s2299_s1 + $0x6] ss:$0 sm:$0xff]  ;;  %v186_v34 = vadd.f32 %v185_v22, %v177_v12  ;;  %v287_v41 = vmul.f32 %v286_v13, %v174_v21  ;;  %v306_v9 = vmul.f32 %v1911_v5, %v1885_v58  ;;  %v2030_v5 = vld [vmem:[%s2299_s1 + $0x8] ss:$0 sm:$0xff]  ;;  %v391_v22 = vmul.f32 %v1942_v20, %v1864_v47 }
  0x1b   :  { %vm76_vm1 = vcmp.ge.f32.partialorder %v1812_v32, %v1950_v25  ;;  %v285_v44 = vadd.f32 %v284_v36, %v277_v24  ;;  %v202_v50 = vsub.f32 %v1950_v25, %v1812_v32  ;;  %vm86_vm8 = vcmp.ge.f32.partialorder %v1812_v32, %v2030_v5  ;;  %v1611_v20 = vld [vmem:[%s2301_s3 + $0x148] sm:$0xff]  }
  0x1c   :  { %1467 = vmatpush3.bf16.msra.mxu0 %v1601_v26  ;;  %v1955_v26 = vld [vmem:[%s2299_s1 + $0x7] ss:$0 sm:$0xff]  ;;  %v294_v45 = vmul.f32 %v293_v17, %v186_v34  ;;  %v297_v46 = vmul.f32 %v296_v18, %v186_v34  ;;  %vm122_vm3 = vmxor %vm76_vm1, %vm1684_vm4  ;;  %v1345_v18 = vld [vmem:[%s2300_s2 + $0x1c] ss:$0 sm:$0xff] }
  0x1d   :  { %1489 = vmatpush3.bf16.msra.mxu1 %v1602_v27  ;;  %1468 = vmatprep.subr.bf16.mxu0 %v1603_v28  ;;  %v1313_v27 = vsel %vm119_vm0, 1.0, %v1685_v48  ;;  %v371_v28 = vmul.f32 %v1341_v14, %v1834_v38  ;;  %vm81_vm2 = vcmp.ge.f32.partialorder %v1812_v32, %v1955_v26  ;;  %v1973_v38 = vsub.f32 %v1812_v32, %v1829_v37  ;;  %v1609_v37 = vld [vmem:[%s2301_s3 + $0x1c0] sm:$0xff]   ;;  %vm123_vm5 = vmand %vm71_vm10, %vm122_vm3  ;;  %v1344_v14 = vld [vmem:[%s2300_s2 + $0x1b] ss:$0 sm:$0xff] }
  0x1e   :  { %1490 = vmatprep.subr.bf16.mxu1 %v1604_v29  ;;  %v378_v29 = vmul.f32 %v1342_v15, %v178_v52  ;;  %v197_v35 = vmul.f32 %v1313_v27, %v196_v7  ;;  %v214_v52 = vsub.f32 %v1955_v26, %v1812_v32  ;;  %v295_v53 = vadd.f32 %v294_v45, %v287_v41  ;;  %vm126_vm6 = vmxor %vm81_vm2, %vm1684_vm4  ;;  %v1610_v45 = vld [vmem:[%s2301_s3 + $0x180] sm:$0xff]  }
  0x1f   :  { %v200_v49 = vmul.f32 %v1879_v54, %v1973_v38  ;;  %v372_v56 = vmul.f32 %v371_v28, %v285_v44  ;;  %v1314_v57 = vsel %vm123_vm5, 1.0, %v1685_v48  ;;  %vm127_vm7 = vmand %vm76_vm1, %vm126_vm6  ;;  %v313_v10 = vmul.f32 %v1335_v61, %v202_v50  ;;  %v1615_v44 = vld [vmem:[%s2301_s3 + $0x150] sm:$0xff]  }
  0x20   :  { %1469 = vmatpush3.bf16.msra.mxu0 %v1605_v30  ;;  %v381_v30 = vmul.f32 %v1342_v15, %v1837_v39  ;;  %v1978_v39 = vld [vmem:[%s2300_s2 + $0x6] ss:$0 sm:$0xff]  ;;  %v198_v43 = vadd.f32 %v197_v35, %v189_v23  ;;  %v379_v63 = vmul.f32 %v378_v29, %v295_v53  ;;  %v2010_v1 = vsel %vm127_vm7, 1.0, %v1685_v48  ;;  %vm130_vm9 = vmxor %vm86_vm8, %vm1684_vm4 }
  0x21   :  { %1491 = vmatpush3.bf16.msra.mxu1 %v1606_v31  ;;  %v1325_v31 = vld [vmem:[%s2300_s2 + $0x5] ss:$0 sm:$0xff]  ;;  %1498 = vmatprep.subr.bf16.mxu0 %v1607_v33  ;;  %v201_v40 = vmul.f32 %v1313_v27, %v200_v49  ;;  %v220_v60 = vmul.f32 %v1978_v39, %v214_v52  ;;  %v316_v13 = vmul.f32 %v1335_v61, %v1973_v38  ;;  %vm2060_vm10 = vmand %vm81_vm2, %vm130_vm9  ;;  %v1621_v61 = vld [vmem:[%s2301_s3 + $0x1d8] sm:$0xff]  }
  0x22   :  { %v212_v51 = vmul.f32 %v1325_v31, %v1921_v8  ;;  %v304_v55 = vmul.f32 %v303_v19, %v198_v43  ;;  %1520 = vmatprep.subr.bf16.mxu1 %v1609_v37  ;;  %v208_v54 = vmul.f32 %v1325_v31, %v202_v50  ;;  %v382_v0 = vmul.f32 %v381_v30, %v295_v53  ;;  %v1608_v35 = vld [vmem:[%s2301_s3 + $0x100] sm:$0xff]   ;;  %v1613_v37 = vld [vmem:[%s2301_s3 + $0x1c8] sm:$0xff]  }
  0x23   :  { %v221_v3 = vmul.f32 %v2010_v1, %v220_v60  ;;  %v380_v6 = vadd.f32 %v379_v63, %v372_v56  ;;  %v307_v16 = vmul.f32 %v306_v9, %v198_v43  ;;  %v323_v17 = vmul.f32 %v1336_v4, %v214_v52  ;;  %v1612_v43 = vld [vmem:[%s2301_s3 + $0x108] sm:$0xff]   ;;  %v1617_v56 = vld [vmem:[%s2301_s3 + $0x1d0] sm:$0xff]   ;;  %v1625_v9 = vld [vmem:[%s2301_s3 + $0x1e0] sm:$0xff]  }
  0x24   :  { %v213_v59 = vmul.f32 %v1314_v57, %v212_v51  ;;  %v305_v62 = vadd.f32 %v304_v55, %v297_v46  ;;  %v209_v2 = vmul.f32 %v1314_v57, %v208_v54  ;;  %v398_v24 = vmul.f32 %v1344_v14, %v202_v50  ;;  %v1616_v51 = vld [vmem:[%s2301_s3 + $0x110] sm:$0xff]   ;;  %v1614_v55 = vld [vmem:[%s2301_s3 + $0x188] sm:$0xff]   ;;  %v1620_v57 = vld [vmem:[%s2301_s3 + $0x118] sm:$0xff]  }
  0x25   :  { %v401_v27 = vmul.f32 %v1344_v14, %v1885_v58  ;;  %v408_v30 = vmul.f32 %v1345_v18, %v214_v52  ;;  %v1652_v31 = vpack.c.bf16 %v380_v6, %v380_v6  ;;  %v1619_v52 = vld [vmem:[%s2301_s3 + $0x158] sm:$0xff]   ;;  %v2075_v53 = vsub.f32 %v1812_v32, %v1950_v25  ;;  %v1623_v25 = vld [vmem:[%s2301_s3 + $0x160] sm:$0xff]   ;;  %v1618_v60 = vld [vmem:[%s2301_s3 + $0x190] sm:$0xff]  }
  0x26   :  { %v389_v7 = vmul.f32 %v388_v42, %v305_v62  ;;  %v210_v11 = vadd.f32 %v209_v2, %v201_v40  ;;  %v2018_v12 = vadd.f32 %v221_v3, %v213_v59  ;;  %v392_v29 = vmul.f32 %v391_v22, %v305_v62  ;;  %v1622_v2 = vld [vmem:[%s2301_s3 + $0x198] sm:$0xff]   ;;  %v1628_v3 = vld [vmem:[%s2301_s3 + $0x128] sm:$0xff]  }
  0x27   :  { %v224_v40 = vmul.f32 %v1978_v39, %v2075_v53  ;;  %v326_v54 = vmul.f32 %v1336_v4, %v1921_v8  ;;  %v411_v59 = vmul.f32 %v1345_v18, %v1973_v38  ;;  %v2101_v62 = vsub.f32 %v1812_v32, %v1955_v26  ;;  %v1624_v39 = vld [vmem:[%s2301_s3 + $0x120] sm:$0xff]   ;;  %v1306_v4 = vld [vmem:[%s2299_s1 + $0x9] ss:$0 sm:$0xff]  ;;  %v1346_v22 = vld [vmem:[%s2300_s2 + $0x1d] ss:$0 sm:$0xff] }
  0x28   :  { %v390_v15 = vadd.f32 %v389_v7, %v382_v0  ;;  %v314_v19 = vmul.f32 %v313_v10, %v210_v11  ;;  %v317_v21 = vmul.f32 %v316_v13, %v210_v11  ;;  %v324_v23 = vmul.f32 %v323_v17, %v2018_v12  ;;  %v1627_v0 = vld [vmem:[%s2301_s3 + $0x168] sm:$0xff]   ;;  %v1631_v10 = vld [vmem:[%s2301_s3 + $0x170] sm:$0xff]   ;;  %v1327_v11 = vld [vmem:[%s2300_s2 + $0x7] ss:$0 sm:$0xff] }
  0x29   :  { %v226_v38 = vsub.f32 %v2030_v5, %v1812_v32  ;;  %v24_v63 = vsub.f32 0.0, %v1812_v32  ;;  %v225_v26 = vmul.f32 %v2010_v1, %v224_v40  ;;  %v1316_v6 = vsel %vm2060_vm10, 1.0, %v1685_v48  ;;  %v1633_v40 = vld [vmem:[%s2301_s3 + $0x1f0] sm:$0xff]  }
  0x2a   :  { %v315_v28 = vadd.f32 %v314_v19, %v307_v16  ;;  %v1653_v33 = vpack.c.bf16 %v390_v15, %v390_v15  ;;  %v325_v34 = vadd.f32 %v324_v23, %v317_v21  ;;  %v2126_v7 = vmul.f32 %v326_v54, %v2018_v12  ;;  %v1328_v12 = vld [vmem:[%s2300_s2 + $0x8] ss:$0 sm:$0xff]  ;;  %v1337_v15 = vld [vmem:[%s2300_s2 + $0x12] ss:$0 sm:$0xff]  ;;  %v1338_v21 = vld [vmem:[%s2300_s2 + $0x13] ss:$0 sm:$0xff] }
  0x2b   :  { %vm91_vm11 = vcmp.ge.f32.partialorder %v1812_v32, %v1306_v4  ;;  %v238_v13 = vsub.f32 %v1306_v4, %v1812_v32  ;;  %v259_v14 = vsub.f32 %v1812_v32, %v1306_v4  ;;  %v2150_v16 = vsub.f32 %v1812_v32, %v2030_v5  ;;  %v1307_v5 = vld [vmem:[%s2299_s1 + $0xa] ss:$0 sm:$0xff] }
  0x2c   :  { %v399_v36 = vmul.f32 %v398_v24, %v315_v28  ;;  %v402_v47 = vmul.f32 %v401_v27, %v315_v28  ;;  %1114 = vmatprep.mubr.bf16.mxu0 %v1653_v33  ;;  %v409_v58 = vmul.f32 %v408_v30, %v325_v34  ;;  %v2128_v1 = vmul.f32 %v411_v59, %v325_v34  ;;  %vm134_vm12 = vmxor %vm91_vm11, %vm1684_vm4  ;;  %v1626_v30 = vld [vmem:[%s2301_s3 + $0x1a0] sm:$0xff]  }
  0x2d   :  { %1115 = vmatmul.mubr.bf16.vlgmr.msra.gmra.mrb[0].mxu0 %v1652_v31  ;;  %v232_v17 = vmul.f32 %v1327_v11, %v226_v38  ;;  %v236_v18 = vmul.f32 %v1327_v11, %v2101_v62  ;;  %v333_v19 = vmul.f32 %v1337_v15, %v226_v38  ;;  %v25_v23 = vmul.f32 1.442695, %v24_v63  ;;  %vm135_vm13 = vmand %vm86_vm8, %vm134_vm12 }
  0x2e   :  { %v400_v41 = vadd.f32 %v399_v36, %v392_v29  ;;  %v410_v42 = vadd.f32 %v409_v58, %v402_v47  ;;  %1499 = vmatpush3.bf16.msra.mxu0 %v1608_v35  ;;  %v244_v24 = vmul.f32 %v1328_v12, %v238_v13  ;;  %v336_v27 = vmul.f32 %v1337_v15, %v2075_v53  ;;  %v2169_v29 = vld [vmem:[%s2300_s2 + $0x1e] ss:$0 sm:$0xff]  ;;  %v1629_v36 = vld [vmem:[%s2301_s3 + $0x1e8] sm:$0xff]  }
  0x2f   :  { %1500 = vmatprep.subr.bf16.mxu0 %v1611_v20  ;;  %v343_v28 = vmul.f32 %v1338_v21, %v238_v13  ;;  %v1317_v31 = vsel %vm135_vm13, 1.0, %v1685_v48  ;;  %v233_v33 = vmul.f32 %v1316_v6, %v232_v17  ;;  %v237_v34 = vmul.f32 %v1316_v6, %v236_v18  ;;  %v1349_v18 = vld [vmem:[%s2300_s2 + $0x20] ss:$0 sm:$0xff] }
  0x30   :  { %v1654_v49 = vpack.c.bf16 %v400_v41, %v400_v41  ;;  %v1655_v50 = vpack.c.bf16 %v410_v42, %v410_v42  ;;  %v418_v35 = vmul.f32 %v1346_v22, %v226_v38  ;;  %v245_v47 = vmul.f32 %v1317_v31, %v244_v24  ;;  %v1308_v41 = vld [vmem:[%s2299_s1 + $0xb] ss:$0 sm:$0xff]  ;;  %v1329_v42 = vld [vmem:[%s2300_s2 + $0x9] ss:$0 sm:$0xff]  ;;  %v1636_v38 = vld [vmem:[%s2301_s3 + $0x138] sm:$0xff]  }
  0x31   :  { %v421_v20 = vmul.f32 %v1346_v22, %v1921_v8  ;;  %v428_v58 = vmul.f32 %v2169_v29, %v238_v13  ;;  %vm96_vm14 = vcmp.ge.f32.partialorder %v1812_v32, %v1307_v5  ;;  %v1635_v8 = vld [vmem:[%s2301_s3 + $0x178] sm:$0xff]   ;;  %vm101_vm15 = vcmp.ge.f32.partialorder %v1812_v32, %v1308_v41 }
  0x32   :  { %1501 = vmatpush3.bf16.msra.mxu0 %v1612_v43  ;;  %1154 = vmatprep.mubr.bf16.mxu1 %v1655_v50  ;;  %v1632_v43 = vld [vmem:[%s2301_s3 + $0x130] sm:$0xff]   ;;  %vm138_vm0 = vmxor %vm96_vm14, %vm1684_vm4  ;;  %1648 = vpow2.f32 %v25_v23  ;;  %v246_v46 = vadd.f32 %v245_v47, %v237_v34  ;;  %v1330_v50 = vld [vmem:[%s2300_s2 + $0xa] ss:$0 sm:$0xff]  ;;  %v431_v22 = vmul.f32 %v2169_v29, %v2075_v53 }
  0x33   :  { %1502 = vmatprep.subr.bf16.mxu0 %v1615_v44  ;;  %1155 = vmatmul.mubr.bf16.vlgmr.msra.gmra.mrb[0].mxu1 %v1654_v49  ;;  %v234_v44 = vadd.f32 %v233_v33, %v225_v26  ;;  %vm139_vm1 = vmand %vm91_vm11, %vm138_vm0  ;;  %v260_v49 = vmul.f32 %v1329_v42, %v259_v14  ;;  %v346_v26 = vmul.f32 %v1338_v21, %v2101_v62  ;;  %v1637_v23 = vld [vmem:[%s2301_s3 + $0x1f8] sm:$0xff]  }
  0x34   :  { %1521 = vmatpush3.bf16.msra.mxu1 %v1610_v45  ;;  %v248_v45 = vmul.f32 %v1328_v12, %v2150_v16  ;;  %vm142_vm2 = vmxor %vm101_vm15, %vm1684_vm4  ;;  %v344_v54 = vmul.f32 %v343_v28, %v246_v46 }
  0x35   :  { %1522 = vmatprep.subr.bf16.mxu1 %v1613_v37  ;;  %v250_v37 = vsub.f32 %v1307_v5, %v1812_v32  ;;  %vm143_vm3 = vmand %vm96_vm14, %vm142_vm2  ;;  %v347_v13 = vmul.f32 %v346_v26, %v246_v46 }
  0x36   :  { %1503 = vmatpush3.bf16.msra.mxu0 %v1616_v51  ;;  %v1339_v51 = vld [vmem:[%s2300_s2 + $0x14] ss:$0 sm:$0xff] }
  0x37   :  { %1504 = vmatprep.subr.bf16.mxu0 %v1619_v52  ;;  %v1630_v52 = vld [vmem:[%s2301_s3 + $0x1a8] sm:$0xff]   ;;  %v256_v59 = vmul.f32 %v1329_v42, %v250_v37  ;;  %v356_v12 = vmul.f32 %v1339_v51, %v2150_v16 }
  0x38   :  { %1523 = vmatpush3.bf16.msra.mxu1 %v1614_v55  ;;  %v334_v55 = vmul.f32 %v333_v19, %v234_v44  ;;  %v1634_v19 = vld [vmem:[%s2301_s3 + $0x1b0] sm:$0xff]  }
  0x39   :  { %1524 = vmatprep.subr.bf16.mxu1 %v1617_v56  ;;  %v337_v56 = vmul.f32 %v336_v27, %v234_v44 }
  0x3a   :  { %1505 = vmatpush3.bf16.msra.mxu0 %v1620_v57  ;;  %v1318_v57 = vsel %vm139_vm1, 1.0, %v1685_v48  ;;  %v335_v63 = vadd.f32 %v334_v55, %v2126_v7 }
  0x3b   :  { %1506 = vmatprep.subr.bf16.mxu0 %v1623_v25  ;;  %v249_v25 = vmul.f32 %v1317_v31, %v248_v45  ;;  %v257_v4 = vmul.f32 %v1318_v57, %v256_v59 }
  0x3c   :  { %1525 = vmatpush3.bf16.msra.mxu1 %v1618_v60  ;;  %v261_v60 = vmul.f32 %v1318_v57, %v260_v49  ;;  %v422_v11 = vmul.f32 %v421_v20, %v335_v63 }
  0x3d   :  { %1526 = vmatprep.subr.bf16.mxu1 %v1621_v61  ;;  %v262_v61 = vsub.f32 %v1308_v41, %v1812_v32  ;;  %v258_v14 = vadd.f32 %v257_v4, %v249_v25 }
  0x3e   :  { %1507 = vmatpush3.bf16.msra.mxu0 %v1624_v39  ;;  %v1340_v39 = vld [vmem:[%s2300_s2 + $0x15] ss:$0 sm:$0xff] }
  0x3f   :  { %1508 = vmatprep.subr.bf16.mxu0 %v1627_v0  ;;  %v1319_v0 = vsel %vm143_vm3, 1.0, %v1685_v48  ;;  %v268_v6 = vmul.f32 %v1330_v50, %v262_v61  ;;  %v363_v17 = vmul.f32 %v1340_v39, %v262_v61  ;;  %v357_v31 = vmul.f32 %v356_v12, %v258_v14 }
  0x40   :  { %1527 = vmatpush3.bf16.msra.mxu1 %v1622_v2  ;;  %v353_v2 = vmul.f32 %v1339_v51, %v250_v37 }
  0x41   :  { %1528 = vmatprep.subr.bf16.mxu1 %v1625_v9  ;;  %v1348_v9 = vld [vmem:[%s2300_s2 + $0x1f] ss:$0 sm:$0xff]  ;;  %v269_v15 = vmul.f32 %v1319_v0, %v268_v6 }
  0x42   :  { %1509 = vmatpush3.bf16.msra.mxu0 %v1628_v3  ;;  %v345_v3 = vadd.f32 %v344_v54, %v337_v56  ;;  %v438_v16 = vmul.f32 %v1348_v9, %v250_v37  ;;  %v354_v28 = vmul.f32 %v353_v2, %v258_v14  ;;  %v441_v34 = vmul.f32 %v1348_v9, %v2101_v62 }
  0x43   :  { %1510 = vmatprep.subr.bf16.mxu0 %v1631_v10  ;;  %v419_v10 = vmul.f32 %v418_v35, %v335_v63  ;;  %v270_v27 = vadd.f32 %v269_v15, %v261_v60 }
  0x44   :  { %1529 = vmatpush3.bf16.msra.mxu1 %v1626_v30  ;;  %v429_v7 = vmul.f32 %v428_v58, %v345_v3  ;;  %v1649_v30 = vpop.eup %1648  ;;  %v432_v33 = vmul.f32 %v431_v22, %v345_v3 }
  0x45   :  { %1530 = vmatprep.subr.bf16.mxu1 %v1629_v36  ;;  %v420_v21 = vadd.f32 %v419_v10, %v2128_v1  ;;  %v448_v1 = vmul.f32 %v1349_v18, %v262_v61 }
  0x46   :  { %1511 = vmatpush3.bf16.msra.mxu0 %v1632_v43  ;;  %v430_v24 = vadd.f32 %v429_v7, %v422_v11 }
  0x47   :  { %1512 = vmatprep.subr.bf16.mxu0 %v1635_v8 }
  0x48   :  { %1531 = vmatpush3.bf16.msra.mxu1 %v1630_v52 }
  0x49   :  { %1532 = vmatprep.subr.bf16.mxu1 %v1633_v40 }
  0x4a   :  { %1513 = vmatpush3.bf16.msra.mxu0 %v1636_v38 }
  0x4b   :  { %1551 = vmatprep.subr.bf16.mxu0 %v1685_v48 }
  0x4c   :  { %9 = vsyncpa [#allocation4], 0  ;;  %v355_v35 = vadd.f32 %v354_v28, %v347_v13  ;;  %v364_v53 = vmul.f32 %v363_v17, %v270_v27  ;;  %v27_v29 = vadd.f32 1.0, %v1649_v30  ;;  %1533 = vmatpush3.bf16.msra.mxu1 %v1634_v19  ;;  %v1638_v5 = vld [vmem:[%s2301_s3 + $0x1b8] sm:$0xff]   ;;  %v1656_v36 = vpack.c.bf16 %v420_v21, %v420_v21  ;;  %v1639_v41 = vld [vmem:[%s2301_s3 + $0x200] sm:$0xff]  }
  0x4d   :  { %1534 = vmatprep.subr.bf16.mxu1 %v1637_v23  ;;  %v1657_v47 = vpack.c.bf16 %v430_v24, %v430_v24  ;;  %v1640_v44 = vld [vmem:[%s2301_s3 + $0x208] sm:$0xff]   ;;  %vm1686_vm4 = vmmov 0   ;;  %v1641_v37 = vld [vmem:[%s2301_s3 + $0x210] sm:$0xff]   ;;  %v1642_v50 = vld [vmem:[%s2301_s3 + $0x218] sm:$0xff]  }
  0x4e   :  { %v365_v20 = vadd.f32 %v364_v53, %v357_v31  ;;  %v439_v58 = vmul.f32 %v438_v16, %v355_v35  ;;  %v442_v62 = vmul.f32 %v441_v34, %v355_v35  ;;  %1650 = vrcp.f32 %v27_v29  ;;  %v1643_v55 = vld [vmem:[%s2301_s3 + $0x220] sm:$0xff]   ;;  %v1644_v56 = vld [vmem:[%s2301_s3 + $0x228] sm:$0xff]   ;;  %v1646_v57 = vld [vmem:[%s2301_s3 + $0x238] sm:$0xff]  }
  0x4f   :  { %1194 = vmatprep.mubr.bf16.mxu0 %v1657_v47 }
  0x50   :  { %v440_v42 = vadd.f32 %v439_v58, %v432_v33  ;;  %v449_v43 = vmul.f32 %v448_v1, %v365_v20  ;;  %1535 = vmatpush3.bf16.msra.mxu1 %v1638_v5  ;;  %1195 = vmatmul.mubr.bf16.vlgmr.msra.gmra.mrb[4].mxu0 %v1656_v36 }
  0x51   :  { %1552 = vmatpush3.bf16.msra.mxu0 %v1639_v41  ;;  %1567 = vmatprep.mubr.msk.bf16.mxu0 %vm1686_vm4, %v1685_v48 }
  0x52   :  { %v450_v8 = vadd.f32 %v449_v43, %v442_v62  ;;  %1553 = vmatprep.subr.bf16.mxu0 %v1685_v48  ;;  %v1658_v45 = vpack.c.bf16 %v440_v42, %v440_v42 }
  0x54   :  { %v1659_v46 = vpack.c.bf16 %v450_v8, %v450_v8 }
  0x55   :  { %1554 = vmatpush3.bf16.msra.mxu0 %v1640_v44 }
  0x56   :  { %1555 = vmatprep.subr.bf16.mxu0 %v1685_v48  ;;  %1234 = vmatprep.mubr.bf16.mxu1 %v1659_v46 }
  0x57   :  { %1235 = vmatmul.mubr.bf16.vlgmr.msra.gmra.mrb[4].mxu1 %v1658_v45 }
  0x58   :  { %v1651_v49 = vpop.eup %1650 }
  0x59   :  { %1556 = vmatpush3.bf16.msra.mxu0 %v1641_v37  ;;  %v29_v51 = vmul.f32 %v1651_v49, %v1812_v32  ;;  %v1645_v32 = vld [vmem:[%s2301_s3 + $0x230] sm:$0xff]   ;;  %s1687_s3 = smov [#allocation3]  }
  0x5a   :  { %1557 = vmatprep.subr.bf16.mxu0 %v1685_v48  ;;  %s1289_s28 = sshll.u32 %s1687_s3, 4  ;;  %s1290_s28 = int_to_ptr.vmem [resolvable:$true] %s1289_s28 }
  0x5b   :  { %v467_v52 = vpack.c.bf16 %v29_v51, %v29_v51  ;;  %s1660_s29 = scalar_lea.vmem %s1290_s28, 128  ;;  %p1665_p1 = scmp.lt.s32.totalorder %s1290_s28, %s1290_s28 }
  0x5c   :  { %p1661_p0 = scmp.ne.s32.totalorder %s1290_s28, %s1660_s29  ;;  %p1666_p2 = scmp.lt.s32.totalorder %s1660_s29, %s1660_s29 }
  0x5d   :  { %1558 = vmatpush3.bf16.msra.mxu0 %v1642_v50  ;;  %468 = vst [vmem:[#allocation2 + $0x20] sm:$0xf] %v467_v52 }
  0x5e   :  { %1559 = vmatprep.subr.bf16.mxu0 %v1685_v48  ;;  %p1667_p3 = por %p1666_p2, %p1665_p1 }
  0x60   :  { %p1668_p4 = pnand %p1667_p3, %p1661_p0 }
  0x61   :  { %1560 = vmatpush3.bf16.msra.mxu0 %v1643_v55 }
  0x62   :  { %1561 = vmatprep.subr.bf16.mxu0 %v1685_v48 }
  0x64   :  { %v1647_v25 = vld [vmem:[#allocation2 + $0x20] ss:$0 sps:$4 sm:$0xff]  }
  0x65   :  { %1562 = vmatpush3.bf16.msra.mxu0 %v1644_v56 }
  0x66   :  { %1563 = vmatprep.subr.bf16.mxu0 %v1685_v48 }
  0x69   :  { %1564 = vmatpush3.bf16.msra.mxu0 %v1645_v32 }
  0x6a   :  { %1565 = vmatprep.subr.bf16.mxu0 %v1685_v48 }
  0x6d   :  { %1566 = vmatpush3.bf16.msra.mxu0 %v1646_v57 }
  0x70   :  { %1568 = vmatmul.mubr.bf16.vlgmr.msra.gmra.mrb[8].mxu0 %v1647_v25 }
 0x100   :  { %v1470_v40 = vpop.f32.mrb[0].mxu0 }
 0x101   :  { %v1471_v54 = vpop.f32.mrb[1].mxu0 }
 0x102   :  { %v1472_v59 = vadd.f32 %v1471_v54, %v1470_v40  ;;  %v1473_v60 = vpop.f32.mrb[2].mxu0 }
 0x103   :  { %v1474_v61 = vpop.f32.mrb[3].mxu0 }
 0x106   :  { %v1492_v39 = vpop.f32.mrb[0].mxu1 }
 0x107   :  { %v1493_v38 = vpop.f32.mrb[1].mxu1 }
 0x108   :  { %v1494_v63 = vadd.f32 %v1493_v38, %v1492_v39  ;;  %v1495_v0 = vpop.f32.mrb[2].mxu1 }
 0x109   :  { %v1496_v26 = vpop.f32.mrb[3].mxu1 }
 0x10a   :  { %v1157_v2 = vadd.f32 %v1494_v63, %v1472_v59 }
 0x123   :  { %v1514_v3 = vpop.f32.mrb[4].mxu0 }
 0x124   :  { %v1515_v4 = vpop.f32.mrb[5].mxu0 }
 0x125   :  { %v1516_v6 = vadd.f32 %v1515_v4, %v1514_v3  ;;  %v1517_v9 = vpop.f32.mrb[6].mxu0 }
 0x126   :  { %v1518_v10 = vpop.f32.mrb[7].mxu0 }
 0x127   :  { %v1197_v48 = vadd.f32 %v1516_v6, %v1157_v2 }
 0x12a   :  { %v1536_v11 = vpop.f32.mrb[4].mxu1 }
 0x12b   :  { %v1537_v13 = vpop.f32.mrb[5].mxu1 }
 0x12c   :  { %v1538_v12 = vadd.f32 %v1537_v13, %v1536_v11  ;;  %v1539_v7 = vpop.f32.mrb[6].mxu1 }
 0x12d   :  { %v1540_v14 = vpop.f32.mrb[7].mxu1 }
 0x12e   :  { %v1237_v15 = vadd.f32 %v1538_v12, %v1197_v48 }
 0x143   :  { %v1276_v17 = vpop.f32.mrb[8].mxu0 }
 0x144   :  { %v1277_v18 = vadd.f32 %v1276_v17, %v1237_v15  ;;  %v1569_v19 = vpop.f32.mrb[9].mxu0 }
 0x145   :  { %v1279_v21 = vpop.f32.mrb[10].mxu0 }
 0x146   :  { %1282 = vst [vmem:[#allocation3] sm:$0xff] %v1277_v18  ;;  %v1570_v22 = vpop.f32.mrb[11].mxu0 }
 0x147   :  { %1671 = shalt.err (!%p1668_p4)
}
 0x148   :  { %s1672_s6 = scalar_lea.hbm %s2302_s4, 128 }
 0x149   :  { %p1673_p5 = scmp.ne.s32.totalorder %s2302_s4, %s1672_s6  ;;  %p1676_p6 = scmp.lt.u32.totalorder %s1672_s6, %s2302_s4 }
 0x14b   :  { %p1678_p7 = pnand %p1676_p6, %p1673_p5 }
 0x14d   :  { %1681 = shalt.err (!%p1678_p7)
}
 0x14e   :  { %1292 = dma.vmem_to_hbm [thread:$0]  %s1290_s28, 128, %s2302_s4, [#allocation4]  }
 0x14f   :  { %1682 = dma.done.wait [#allocation4], 128  }
 0x150   :  { %1683 = vsyncadd [#allocation4], 4294967168 }
 0x151   :  { %1296 = vsyncpa [#allocation4], 1 }

// kernel: _lambda_.2
= control target key start
LH: loop header
LB: loop body
LE: loop exit
PB: predicated region body
PF: predicated region fallthrough
CT: control target
= control target key end

     0   :  { %9 = vsyncpa [#allocation4], 0  ;;  %s2080_s0 = inlined_call_operand.vmem [shape: f32[8,128], index: 0, kind: input, shape index: {}]   ;;  %s2081_s1 = inlined_call_operand.hbm [shape: f32[12,128], index: 1, kind: input, shape index: {}]   ;;  %s2082_s2 = inlined_call_operand.hbm [shape: f32[36,128], index: 2, kind: input, shape index: {}]   ;;  %s2083_s3 = inlined_call_operand.hbm [shape: bf16[1152,128], index: 3, kind: input, shape index: {}]   ;;  %s2084_s4 = inlined_call_operand.vmem [shape: f32[8,128], index: 4, kind: output, shape index: {}]  }
   0x1   :  { %10 = vsyncpa [#allocation6], 0  ;;  %s1768_s15 = smov [#allocation5]   ;;  %s1769_s17 = smov [#allocation3]  }
   0x2   :  { %s30_s16 = sshll.u32 %s1768_s15, 4  ;;  %s18_s18 = sshll.u32 %s1769_s17, 4  ;;  %s31_s16 = int_to_ptr.vmem [resolvable:$true] %s30_s16  ;;  %s1803_s18 = int_to_ptr.vmem [resolvable:$true] %s18_s18 }
   0x3   :  { %s1698_s21 = scalar_lea.hbm %s2082_s2, 640 }
   0x4   :  { %p1699_p0 = scmp.ne.s32.totalorder %s2082_s2, %s1698_s21  ;;  %p1702_p1 = scmp.lt.u32.totalorder %s1698_s21, %s2082_s2 }
   0x6   :  { %p1704_p2 = pnand %p1702_p1, %p1699_p0 }
   0x8   :  { %1707 = shalt.err (!%p1704_p2)
}
   0x9   :  { %s1708_s26 = scalar_lea.vmem %s31_s16, 640  ;;  %p1713_p4 = scmp.lt.s32.totalorder %s31_s16, %s31_s16 }
   0xa   :  { %p1709_p3 = scmp.ne.s32.totalorder %s31_s16, %s1708_s26  ;;  %p1714_p5 = scmp.lt.s32.totalorder %s1708_s26, %s1708_s26 }
   0xc   :  { %p1715_p6 = por %p1714_p5, %p1713_p4 }
   0xe   :  { %p1716_p7 = pnand %p1715_p6, %p1709_p3 }
  0x10   :  { %1719 = shalt.err (!%p1716_p7)
}
  0x11   :  { %s1770_s27 = smov 128   ;;  %s1771_s28 = smov 8  }
  0x12   :  { %36 = dma.hbm_to_vmem [thread:$0]  %s2082_s2, 640, %s31_s16, [#allocation6], %s1770_s27, %s1770_s27, %s1771_s28  }
  0x13   :  { %s1720_s7 = scalar_lea.hbm %s2081_s1, 256 }
  0x14   :  { %p1721_p8 = scmp.ne.s32.totalorder %s2081_s1, %s1720_s7  ;;  %p1724_p9 = scmp.lt.u32.totalorder %s1720_s7, %s2081_s1 }
  0x16   :  { %p1726_p10 = pnand %p1724_p9, %p1721_p8 }
  0x18   :  { %1729 = shalt.err (!%p1726_p10)
}
  0x19   :  { %s1730_s12 = scalar_lea.vmem %s1803_s18, 256  ;;  %p1735_p12 = scmp.lt.s32.totalorder %s1803_s18, %s1803_s18 }
  0x1a   :  { %p1731_p11 = scmp.ne.s32.totalorder %s1803_s18, %s1730_s12  ;;  %p1736_p13 = scmp.lt.s32.totalorder %s1730_s12, %s1730_s12 }
  0x1c   :  { %p1737_p0 = por %p1736_p13, %p1735_p12 }
  0x1e   :  { %p1738_p1 = pnand %p1737_p0, %p1731_p11 }
  0x20   :  { %1741 = shalt.err (!%p1738_p1)
}
  0x21   :  { %24 = dma.hbm_to_vmem [thread:$0]  %s2081_s1, 256, %s1803_s18, [#allocation4], %s1770_s27, %s1770_s27, %s1771_s28  }
  0x22   :  { %s1772_s14 = smov [#allocation7]   ;;  %s1742_s19 = scalar_lea.hbm %s2083_s3, 9216 }
  0x23   :  { %s42_s15 = sshll.u32 %s1772_s14, 4  ;;  %p1743_p2 = scmp.ne.s32.totalorder %s2083_s3, %s1742_s19  ;;  %s43_s15 = int_to_ptr.vmem [resolvable:$true] %s42_s15 }
  0x24   :  { %p1746_p3 = scmp.lt.u32.totalorder %s1742_s19, %s2083_s3 }
  0x26   :  { %p1748_p4 = pnand %p1746_p3, %p1743_p2 }
  0x28   :  { %1751 = shalt.err (!%p1748_p4)
}
  0x29   :  { %s1752_s24 = scalar_lea.vmem %s43_s15, 9216  ;;  %p1757_p6 = scmp.lt.s32.totalorder %s43_s15, %s43_s15 }
  0x2a   :  { %p1753_p5 = scmp.ne.s32.totalorder %s43_s15, %s1752_s24  ;;  %p1758_p7 = scmp.lt.s32.totalorder %s1752_s24, %s1752_s24 }
  0x2c   :  { %p1759_p8 = por %p1758_p7, %p1757_p6 }
  0x2e   :  { %p1760_p9 = pnand %p1759_p8, %p1753_p5 }
  0x30   :  { %1763 = shalt.err (!%p1760_p9)
}
  0x31   :  { %s1773_s1 = smov 64   ;;  %s1774_s18 = smov 4  }
  0x32   :  { %48 = dma.hbm_to_vmem [thread:$0]  %s2083_s3, 9216, %s43_s15, [#allocation6], %s1773_s1, %s1773_s1, %s1774_s18  }
  0x33   :  { %1764 = dma.done.wait [#allocation4], 256  }
  0x34   :  { %1765 = vsyncadd [#allocation4], 4294967040 }
  0x35   :  { %1766 = dma.done.wait [#allocation6], 9856  }
  0x36   :  { %1767 = vsyncadd [#allocation6], 4294957440  ;;  %v1613_v0 = vld [vmem:[#allocation7 + $0x40] sm:$0xff]   ;;  %v1617_v4 = vld [vmem:[#allocation7 + $0x48] sm:$0xff]   ;;  %vm1775_vm4 = vmmov 1   ;;  %v1776_v48 = vmov 0.0  }
  0x37   :  { %v1614_v1 = vld [vmem:[#allocation7 + $0xc0] sm:$0xff]   ;;  %1486 = vmatprep.subr.bf16.mxu0 %v1613_v0  ;;  %v1618_v5 = vld [vmem:[#allocation7 + $0xc8] sm:$0xff]   ;;  %v1621_v8 = vld [vmem:[#allocation7 + $0x50] sm:$0xff]  }
  0x38   :  { %v1615_v2 = vld [vmem:[#allocation7] sm:$0xff]   ;;  %1508 = vmatprep.subr.bf16.mxu1 %v1614_v1  ;;  %v1619_v6 = vld [vmem:[#allocation7 + $0x8] sm:$0xff]   ;;  %v1622_v9 = vld [vmem:[#allocation7 + $0xd0] sm:$0xff]  }
  0x39   :  { %v1616_v3 = vld [vmem:[#allocation7 + $0x80] sm:$0xff]   ;;  %1487 = vmatpush3.bf16.msra.mxu0 %v1615_v2  ;;  %v1620_v7 = vld [vmem:[#allocation7 + $0x88] sm:$0xff]   ;;  %v1623_v10 = vld [vmem:[#allocation7 + $0x10] sm:$0xff]  }
  0x3a   :  { %1509 = vmatpush3.bf16.msra.mxu1 %v1616_v3  ;;  %1488 = vmatprep.subr.bf16.mxu0 %v1617_v4  ;;  %v1624_v11 = vld [vmem:[#allocation7 + $0x90] sm:$0xff]   ;;  %v1625_v12 = vld [vmem:[#allocation7 + $0x58] sm:$0xff]   ;;  %v1629_v16 = vld [vmem:[#allocation7 + $0x60] sm:$0xff]  }
  0x3b   :  { %1510 = vmatprep.subr.bf16.mxu1 %v1618_v5  ;;  %v1626_v13 = vld [vmem:[#allocation7 + $0xd8] sm:$0xff]   ;;  %v1630_v17 = vld [vmem:[#allocation7 + $0xe0] sm:$0xff]   ;;  %v1633_v20 = vld [vmem:[#allocation7 + $0x68] sm:$0xff]  }
  0x3c   :  { %v1627_v14 = vld [vmem:[#allocation7 + $0x18] sm:$0xff]   ;;  %v1631_v18 = vld [vmem:[#allocation7 + $0x20] sm:$0xff]   ;;  %v1634_v21 = vld [vmem:[#allocation7 + $0xe8] sm:$0xff]  }
  0x3d   :  { %1489 = vmatpush3.bf16.msra.mxu0 %v1619_v6  ;;  %v1628_v15 = vld [vmem:[#allocation7 + $0x98] sm:$0xff]   ;;  %v1632_v19 = vld [vmem:[#allocation7 + $0xa0] sm:$0xff]   ;;  %v1635_v22 = vld [vmem:[#allocation7 + $0x28] sm:$0xff]  }
  0x3e   :  { %1511 = vmatpush3.bf16.msra.mxu1 %v1620_v7  ;;  %1490 = vmatprep.subr.bf16.mxu0 %v1621_v8  ;;  %v1636_v23 = vld [vmem:[#allocation7 + $0xa8] sm:$0xff]   ;;  %v1637_v24 = vld [vmem:[#allocation7 + $0x70] sm:$0xff]   ;;  %v1641_v28 = vld [vmem:[#allocation7 + $0x78] sm:$0xff]  }
  0x3f   :  { %1512 = vmatprep.subr.bf16.mxu1 %v1622_v9  ;;  %v1638_v25 = vld [vmem:[#allocation7 + $0xf0] sm:$0xff]   ;;  %v1642_v29 = vld [vmem:[#allocation7 + $0xf8] sm:$0xff]   ;;  %v1849_v32 = vld [vmem:[%s2080_s0] sm:$0xff] }
  0x40   :  { %v1639_v26 = vld [vmem:[#allocation7 + $0x30] sm:$0xff]   ;;  %v1643_v30 = vld [vmem:[#allocation7 + $0x38] sm:$0xff]   ;;  %v1329_v33 = vld [vmem:[#allocation3] ss:$0 sm:$0xff] }
  0x41   :  { %1491 = vmatpush3.bf16.msra.mxu0 %v1623_v10  ;;  %v1640_v27 = vld [vmem:[#allocation7 + $0xb0] sm:$0xff]   ;;  %v1644_v31 = vld [vmem:[#allocation7 + $0xb8] sm:$0xff]   ;;  %v1330_v34 = vld [vmem:[#allocation3 + $0x1] ss:$0 sm:$0xff]  ;;  %vm86_vm0 = vcmp.ge.f32.partialorder %v1849_v32, %v1329_v33  ;;  %v1856_v38 = vsub.f32 %v1849_v32, %v1329_v33 }
  0x42   :  { %1513 = vmatpush3.bf16.msra.mxu1 %v1624_v11  ;;  %1492 = vmatprep.subr.bf16.mxu0 %v1625_v12  ;;  %v1331_v35 = vld [vmem:[#allocation3 + $0x2] ss:$0 sm:$0xff]  ;;  %v1332_v36 = vld [vmem:[#allocation3 + $0x3] ss:$0 sm:$0xff]  ;;  %v1851_v37 = vld [vmem:[#allocation3 + $0x4] ss:$0 sm:$0xff]  ;;  %vm91_vm1 = vcmp.ge.f32.partialorder %v1849_v32, %v1330_v34  ;;  %v1859_v39 = vsub.f32 %v1849_v32, %v1330_v34 }
  0x43   :  { %1514 = vmatprep.subr.bf16.mxu1 %v1626_v13  ;;  %v1861_v40 = vld [vmem:[#allocation3 + $0x5] ss:$0 sm:$0xff]  ;;  %vm96_vm2 = vcmp.ge.f32.partialorder %v1849_v32, %v1331_v35  ;;  %vm101_vm3 = vcmp.ge.f32.partialorder %v1849_v32, %v1332_v36  ;;  %vm142_vm5 = vmxor %vm91_vm1, %vm1775_vm4  ;;  %v1352_v41 = vld [vmem:[#allocation5] ss:$0 sm:$0xff]  ;;  %v194_v42 = vsub.f32 %v1331_v35, %v1849_v32  ;;  %vm106_vm6 = vcmp.ge.f32.partialorder %v1849_v32, %v1851_v37 }
  0x44   :  { %vm143_vm7 = vmand %vm86_vm0, %vm142_vm5  ;;  %v192_v43 = vmul.f32 %v1352_v41, %v1856_v38  ;;  %v1353_v44 = vld [vmem:[#allocation5 + $0x1] ss:$0 sm:$0xff]  ;;  %v206_v45 = vsub.f32 %v1332_v36, %v1849_v32  ;;  %v1354_v46 = vld [vmem:[#allocation5 + $0x2] ss:$0 sm:$0xff]  ;;  %v1874_v47 = vsub.f32 %v1849_v32, %v1331_v35  ;;  %v218_v52 = vsub.f32 %v1851_v37, %v1849_v32 }
  0x45   :  { %1493 = vmatpush3.bf16.msra.mxu0 %v1627_v14  ;;  %v1341_v49 = vsel %vm143_vm7, 1.0, %v1776_v48  ;;  %vm146_vm8 = vmxor %vm96_vm2, %vm1775_vm4  ;;  %v200_v50 = vmul.f32 %v1353_v44, %v194_v42  ;;  %v204_v51 = vmul.f32 %v1353_v44, %v1859_v39  ;;  %v1355_v53 = vld [vmem:[#allocation5 + $0x3] ss:$0 sm:$0xff]  ;;  %v1883_v54 = vld [vmem:[#allocation5 + $0x4] ss:$0 sm:$0xff]  ;;  %v1889_v58 = vsub.f32 %v1849_v32, %v1332_v36 }
  0x46   :  { %1515 = vmatpush3.bf16.msra.mxu1 %v1628_v15  ;;  %1494 = vmatprep.subr.bf16.mxu0 %v1629_v16  ;;  %vm147_vm9 = vmand %vm91_vm1, %vm146_vm8  ;;  %v193_v55 = vmul.f32 %v1341_v49, %v192_v43  ;;  %v212_v56 = vmul.f32 %v1354_v46, %v206_v45  ;;  %v216_v57 = vmul.f32 %v1354_v46, %v1874_v47  ;;  %v1363_v59 = vld [vmem:[#allocation5 + $0xc] ss:$0 sm:$0xff]  ;;  %v1364_v60 = vld [vmem:[#allocation5 + $0xd] ss:$0 sm:$0xff] }
  0x47   :  { %1516 = vmatprep.subr.bf16.mxu1 %v1630_v17  ;;  %vm111_vm10 = vcmp.ge.f32.partialorder %v1849_v32, %v1861_v40  ;;  %v1342_v61 = vsel %vm147_vm9, 1.0, %v1776_v48  ;;  %vm150_vm11 = vmxor %vm101_vm3, %vm1775_vm4  ;;  %v224_v62 = vmul.f32 %v1355_v53, %v218_v52  ;;  %v230_v63 = vsub.f32 %v1861_v40, %v1849_v32  ;;  %v1365_v4 = vld [vmem:[#allocation5 + $0xe] ss:$0 sm:$0xff]  ;;  %v1903_v5 = vld [vmem:[#allocation5 + $0xf] ss:$0 sm:$0xff] }
  0x48   :  { %vm151_vm12 = vmand %vm96_vm2, %vm150_vm11  ;;  %v201_v0 = vmul.f32 %v1342_v61, %v200_v50  ;;  %v205_v1 = vmul.f32 %v1342_v61, %v204_v51  ;;  %v228_v2 = vmul.f32 %v1355_v53, %v1889_v58  ;;  %v316_v3 = vmul.f32 %v1363_v59, %v1856_v38  ;;  %v1373_v14 = vld [vmem:[#allocation5 + $0x18] ss:$0 sm:$0xff]  ;;  %v1374_v15 = vld [vmem:[#allocation5 + $0x19] ss:$0 sm:$0xff] }
  0x49   :  { %1495 = vmatpush3.bf16.msra.mxu0 %v1631_v18  ;;  %v1343_v6 = vsel %vm151_vm12, 1.0, %v1776_v48  ;;  %vm154_vm13 = vmxor %vm106_vm6, %vm1775_vm4  ;;  %v236_v7 = vmul.f32 %v1883_v54, %v230_v63  ;;  %v1913_v8 = vsub.f32 %v1849_v32, %v1861_v40  ;;  %v323_v9 = vmul.f32 %v1364_v60, %v206_v45  ;;  %v1645_v33 = vld [vmem:[#allocation7 + $0x140] sm:$0xff]   ;;  %v1946_v43 = vld [vmem:[#allocation5 + $0x6] ss:$0 sm:$0xff] }
  0x4a   :  { %1517 = vmatpush3.bf16.msra.mxu1 %v1632_v19  ;;  %1496 = vmatprep.subr.bf16.mxu0 %v1633_v20  ;;  %vm155_vm14 = vmand %vm101_vm3, %vm154_vm13  ;;  %v202_v10 = vadd.f32 %v201_v0, %v193_v55  ;;  %v213_v11 = vmul.f32 %v1343_v6, %v212_v56  ;;  %v217_v12 = vmul.f32 %v1343_v6, %v216_v57  ;;  %v1925_v20 = vld [vmem:[#allocation5 + $0x1a] ss:$0 sm:$0xff]  ;;  %v1647_v49 = vld [vmem:[#allocation7 + $0x1c0] sm:$0xff]  }
  0x4b   :  { %1518 = vmatprep.subr.bf16.mxu1 %v1634_v21  ;;  %v326_v13 = vmul.f32 %v1364_v60, %v1859_v39  ;;  %v1344_v16 = vsel %vm155_vm14, 1.0, %v1776_v48  ;;  %vm158_vm15 = vmxor %vm111_vm10, %vm1775_vm4  ;;  %v333_v17 = vmul.f32 %v1365_v4, %v218_v52  ;;  %v336_v18 = vmul.f32 %v1365_v4, %v1874_v47  ;;  %v1367_v61 = vld [vmem:[#allocation5 + $0x10] ss:$0 sm:$0xff]  ;;  %v1368_v4 = vld [vmem:[#allocation5 + $0x11] ss:$0 sm:$0xff] }
  0x4c   :  { %v343_v19 = vmul.f32 %v1903_v5, %v230_v63  ;;  %vm159_vm0 = vmand %vm106_vm6, %vm158_vm15  ;;  %v214_v21 = vadd.f32 %v213_v11, %v205_v1  ;;  %v428_v42 = vmul.f32 %v1925_v20, %v230_v63 }
  0x4d   :  { %1497 = vmatpush3.bf16.msra.mxu0 %v1635_v22  ;;  %v225_v22 = vmul.f32 %v1344_v16, %v224_v62 }
  0x4e   :  { %1519 = vmatpush3.bf16.msra.mxu1 %v1636_v23  ;;  %1498 = vmatprep.subr.bf16.mxu0 %v1637_v24  ;;  %v229_v23 = vmul.f32 %v1344_v16, %v228_v2  ;;  %v317_v24 = vmul.f32 %v316_v3, %v202_v10  ;;  %v324_v36 = vmul.f32 %v323_v9, %v214_v21 }
  0x4f   :  { %1520 = vmatprep.subr.bf16.mxu1 %v1638_v25  ;;  %v1930_v25 = vld [vmem:[#allocation3 + $0x6] ss:$0 sm:$0xff]  ;;  %v226_v34 = vadd.f32 %v225_v22, %v217_v12  ;;  %v327_v41 = vmul.f32 %v326_v13, %v214_v21  ;;  %v346_v9 = vmul.f32 %v1903_v5, %v1889_v58 }
  0x50   :  { %vm116_vm1 = vcmp.ge.f32.partialorder %v1849_v32, %v1930_v25  ;;  %v325_v44 = vadd.f32 %v324_v36, %v317_v24  ;;  %v242_v50 = vsub.f32 %v1930_v25, %v1849_v32 }
  0x51   :  { %1499 = vmatpush3.bf16.msra.mxu0 %v1639_v26  ;;  %v1932_v26 = vld [vmem:[#allocation3 + $0x7] ss:$0 sm:$0xff]  ;;  %v334_v45 = vmul.f32 %v333_v17, %v226_v34  ;;  %v337_v46 = vmul.f32 %v336_v18, %v226_v34  ;;  %vm162_vm3 = vmxor %vm116_vm1, %vm1775_vm4  ;;  %v1377_v18 = vld [vmem:[#allocation5 + $0x1c] ss:$0 sm:$0xff] }
  0x52   :  { %1521 = vmatpush3.bf16.msra.mxu1 %v1640_v27  ;;  %1500 = vmatprep.subr.bf16.mxu0 %v1641_v28  ;;  %v1345_v27 = vsel %vm159_vm0, 1.0, %v1776_v48  ;;  %v411_v28 = vmul.f32 %v1373_v14, %v1856_v38  ;;  %vm121_vm2 = vcmp.ge.f32.partialorder %v1849_v32, %v1932_v26  ;;  %v1944_v38 = vsub.f32 %v1849_v32, %v1851_v37  ;;  %vm163_vm5 = vmand %vm111_vm10, %vm162_vm3  ;;  %v1376_v14 = vld [vmem:[#allocation5 + $0x1b] ss:$0 sm:$0xff] }
  0x53   :  { %1522 = vmatprep.subr.bf16.mxu1 %v1642_v29  ;;  %v418_v29 = vmul.f32 %v1374_v15, %v218_v52  ;;  %v237_v35 = vmul.f32 %v1345_v27, %v236_v7  ;;  %v254_v52 = vsub.f32 %v1932_v26, %v1849_v32  ;;  %v335_v53 = vadd.f32 %v334_v45, %v327_v41  ;;  %vm166_vm6 = vmxor %vm121_vm2, %vm1775_vm4  ;;  %v1648_v45 = vld [vmem:[#allocation7 + $0x180] sm:$0xff]  }
  0x54   :  { %v240_v37 = vmul.f32 %v1883_v54, %v1944_v38  ;;  %v412_v56 = vmul.f32 %v411_v28, %v325_v44  ;;  %v1346_v57 = vsel %vm163_vm5, 1.0, %v1776_v48  ;;  %vm167_vm7 = vmand %vm116_vm1, %vm166_vm6  ;;  %v353_v10 = vmul.f32 %v1367_v61, %v242_v50  ;;  %v1653_v44 = vld [vmem:[#allocation7 + $0x150] sm:$0xff]  }
  0x55   :  { %1501 = vmatpush3.bf16.msra.mxu0 %v1643_v30  ;;  %v421_v30 = vmul.f32 %v1374_v15, %v1859_v39  ;;  %v238_v39 = vadd.f32 %v237_v35, %v229_v23  ;;  %v260_v60 = vmul.f32 %v1946_v43, %v254_v52  ;;  %v419_v63 = vmul.f32 %v418_v29, %v335_v53  ;;  %v1646_v35 = vld [vmem:[#allocation7 + $0x100] sm:$0xff]  }
  0x56   :  { %1523 = vmatpush3.bf16.msra.mxu1 %v1644_v31  ;;  %v1357_v31 = vld [vmem:[#allocation5 + $0x5] ss:$0 sm:$0xff]  ;;  %1530 = vmatprep.subr.bf16.mxu0 %v1645_v33  ;;  %v241_v40 = vmul.f32 %v1345_v27, %v240_v37  ;;  %v1972_v1 = vsel %vm167_vm7, 1.0, %v1776_v48  ;;  %v356_v13 = vmul.f32 %v1367_v61, %v1944_v38  ;;  %v363_v17 = vmul.f32 %v1368_v4, %v254_v52  ;;  %v1656_v61 = vld [vmem:[#allocation7 + $0x190] sm:$0xff]  }
  0x57   :  { %v252_v51 = vmul.f32 %v1357_v31, %v1913_v8  ;;  %v344_v55 = vmul.f32 %v343_v19, %v238_v39  ;;  %1552 = vmatprep.subr.bf16.mxu1 %v1647_v49  ;;  %v248_v54 = vmul.f32 %v1357_v31, %v242_v50  ;;  %v422_v0 = vmul.f32 %v421_v30, %v335_v53  ;;  %v1980_v19 = vld [vmem:[#allocation3 + $0x8] ss:$0 sm:$0xff]  ;;  %v1651_v49 = vld [vmem:[#allocation7 + $0x1c8] sm:$0xff]  }
  0x58   :  { %v261_v3 = vmul.f32 %v1972_v1, %v260_v60  ;;  %v420_v6 = vadd.f32 %v419_v63, %v412_v56  ;;  %v347_v16 = vmul.f32 %v346_v9, %v238_v39  ;;  %v431_v23 = vmul.f32 %v1925_v20, %v1874_v47  ;;  %v1650_v39 = vld [vmem:[#allocation7 + $0x108] sm:$0xff]   ;;  %v1655_v56 = vld [vmem:[#allocation7 + $0x1d0] sm:$0xff]   ;;  %v1662_v63 = vld [vmem:[#allocation7 + $0x120] sm:$0xff]  }
  0x59   :  { %v253_v59 = vmul.f32 %v1346_v57, %v252_v51  ;;  %v345_v62 = vadd.f32 %v344_v55, %v337_v46  ;;  %v249_v2 = vmul.f32 %v1346_v57, %v248_v54  ;;  %v438_v24 = vmul.f32 %v1376_v14, %v242_v50  ;;  %v1654_v51 = vld [vmem:[#allocation7 + $0x110] sm:$0xff]   ;;  %v1652_v55 = vld [vmem:[#allocation7 + $0x188] sm:$0xff]   ;;  %v1658_v57 = vld [vmem:[#allocation7 + $0x118] sm:$0xff]  }
  0x5a   :  { %v441_v27 = vmul.f32 %v1376_v14, %v1889_v58  ;;  %v448_v30 = vmul.f32 %v1377_v18, %v254_v52  ;;  %v1690_v31 = vpack.c.bf16 %v420_v6, %v420_v6  ;;  %vm126_vm8 = vcmp.ge.f32.partialorder %v1849_v32, %v1980_v19  ;;  %v1657_v52 = vld [vmem:[#allocation7 + $0x158] sm:$0xff]   ;;  %v1338_v6 = vld [vmem:[#allocation3 + $0x9] ss:$0 sm:$0xff] }
  0x5b   :  { %v429_v7 = vmul.f32 %v428_v42, %v345_v62  ;;  %v250_v11 = vadd.f32 %v249_v2, %v241_v40  ;;  %v1977_v12 = vadd.f32 %v261_v3, %v253_v59  ;;  %v432_v29 = vmul.f32 %v431_v23, %v345_v62  ;;  %v1649_v42 = vld [vmem:[#allocation7 + $0x148] sm:$0xff]   ;;  %vm170_vm9 = vmxor %vm126_vm8, %vm1775_vm4  ;;  %v1661_v40 = vld [vmem:[#allocation7 + $0x160] sm:$0xff]  }
  0x5c   :  { %vm1995_vm10 = vmand %vm121_vm2, %vm170_vm9  ;;  %v2001_v53 = vsub.f32 %v1849_v32, %v1930_v25  ;;  %v366_v59 = vmul.f32 %v1368_v4, %v1913_v8  ;;  %v451_v60 = vmul.f32 %v1377_v18, %v1944_v38  ;;  %v1659_v25 = vld [vmem:[#allocation7 + $0x1d8] sm:$0xff]   ;;  %v2009_v62 = vsub.f32 %v1849_v32, %v1932_v26  ;;  %v1666_v4 = vld [vmem:[#allocation7 + $0x128] sm:$0xff]  }
  0x5d   :  { %v430_v15 = vadd.f32 %v429_v7, %v422_v0  ;;  %v354_v21 = vmul.f32 %v353_v10, %v250_v11  ;;  %v357_v22 = vmul.f32 %v356_v13, %v250_v11  ;;  %v364_v5 = vmul.f32 %v363_v17, %v1977_v12  ;;  %v1660_v38 = vld [vmem:[#allocation7 + $0x198] sm:$0xff]   ;;  %v1663_v10 = vld [vmem:[#allocation7 + $0x1e0] sm:$0xff]   ;;  %v1669_v11 = vld [vmem:[#allocation7 + $0x170] sm:$0xff]  }
  0x5e   :  { %v264_v54 = vmul.f32 %v1946_v43, %v2001_v53  ;;  %v266_v0 = vsub.f32 %v1980_v19, %v1849_v32  ;;  %v64_v2 = vsub.f32 0.0, %v1849_v32  ;;  %v1665_v43 = vld [vmem:[#allocation7 + $0x168] sm:$0xff]   ;;  %v1348_v26 = vsel %vm1995_vm10, 1.0, %v1776_v48  ;;  %v1359_v13 = vld [vmem:[#allocation5 + $0x7] ss:$0 sm:$0xff] }
  0x5f   :  { %v355_v28 = vadd.f32 %v354_v21, %v347_v16  ;;  %v1691_v33 = vpack.c.bf16 %v430_v15, %v430_v15  ;;  %v365_v34 = vadd.f32 %v364_v5, %v357_v22  ;;  %v2019_v7 = vmul.f32 %v366_v59, %v1977_v12  ;;  %v1369_v16 = vld [vmem:[#allocation5 + $0x12] ss:$0 sm:$0xff]  ;;  %v1370_v22 = vld [vmem:[#allocation5 + $0x13] ss:$0 sm:$0xff]  ;;  %v1378_v23 = vld [vmem:[#allocation5 + $0x1d] ss:$0 sm:$0xff] }
  0x60   :  { %v265_v3 = vmul.f32 %v1972_v1, %v264_v54  ;;  %vm131_vm11 = vcmp.ge.f32.partialorder %v1849_v32, %v1338_v6  ;;  %v278_v14 = vsub.f32 %v1338_v6, %v1849_v32  ;;  %v1360_v1 = vld [vmem:[#allocation5 + $0x8] ss:$0 sm:$0xff]  ;;  %v299_v15 = vsub.f32 %v1849_v32, %v1338_v6  ;;  %v1671_v54 = vld [vmem:[#allocation7 + $0x1f0] sm:$0xff]  }
  0x61   :  { %v439_v36 = vmul.f32 %v438_v24, %v355_v28  ;;  %v442_v41 = vmul.f32 %v441_v27, %v355_v28  ;;  %1154 = vmatprep.mubr.bf16.mxu0 %v1691_v33  ;;  %v449_v47 = vmul.f32 %v448_v30, %v365_v34  ;;  %v2021_v9 = vmul.f32 %v451_v60, %v365_v34  ;;  %vm174_vm12 = vmxor %vm131_vm11, %vm1775_vm4  ;;  %v1664_v30 = vld [vmem:[#allocation7 + $0x1a0] sm:$0xff]  }
  0x62   :  { %1155 = vmatmul.mubr.bf16.vlgmr.msra.gmra.mrb[0].mxu0 %v1690_v31  ;;  %v2028_v17 = vsub.f32 %v1849_v32, %v1980_v19  ;;  %v272_v12 = vmul.f32 %v1359_v13, %v266_v0  ;;  %v276_v18 = vmul.f32 %v1359_v13, %v2009_v62  ;;  %v373_v21 = vmul.f32 %v1369_v16, %v266_v0  ;;  %vm175_vm13 = vmand %vm126_vm8, %vm174_vm12 }
  0x63   :  { %v440_v58 = vadd.f32 %v439_v36, %v432_v29  ;;  %v450_v20 = vadd.f32 %v449_v47, %v442_v41  ;;  %1531 = vmatpush3.bf16.msra.mxu0 %v1646_v35  ;;  %v65_v5 = vmul.f32 1.442695, %v64_v2  ;;  %v284_v24 = vmul.f32 %v1360_v1, %v278_v14  ;;  %v2038_v29 = vld [vmem:[#allocation5 + $0x1e] ss:$0 sm:$0xff]  ;;  %v1339_v36 = vld [vmem:[#allocation3 + $0xa] ss:$0 sm:$0xff] }
  0x64   :  { %1532 = vmatprep.subr.bf16.mxu0 %v1649_v42  ;;  %v376_v27 = vmul.f32 %v1369_v16, %v2001_v53  ;;  %v383_v28 = vmul.f32 %v1370_v22, %v278_v14  ;;  %v1349_v31 = vsel %vm175_vm13, 1.0, %v1776_v48  ;;  %v273_v33 = vmul.f32 %v1348_v26, %v272_v12  ;;  %v1667_v41 = vld [vmem:[#allocation7 + $0x1e8] sm:$0xff]  }
  0x65   :  { %v1692_v37 = vpack.c.bf16 %v440_v58, %v440_v58  ;;  %v1693_v50 = vpack.c.bf16 %v450_v20, %v450_v20  ;;  %v277_v34 = vmul.f32 %v1348_v26, %v276_v18  ;;  %v458_v35 = vmul.f32 %v1378_v23, %v266_v0  ;;  %v1340_v58 = vld [vmem:[#allocation3 + $0xb] ss:$0 sm:$0xff]  ;;  %v1361_v20 = vld [vmem:[#allocation5 + $0x9] ss:$0 sm:$0xff]  ;;  %v1674_v0 = vld [vmem:[#allocation7 + $0x138] sm:$0xff]  }
  0x66   :  { %v285_v42 = vmul.f32 %v1349_v31, %v284_v24  ;;  %v461_v47 = vmul.f32 %v1378_v23, %v1913_v8  ;;  %v468_v19 = vmul.f32 %v2038_v29, %v278_v14  ;;  %vm136_vm14 = vcmp.ge.f32.partialorder %v1849_v32, %v1339_v36  ;;  %v1381_v18 = vld [vmem:[#allocation5 + $0x20] ss:$0 sm:$0xff] }
  0x67   :  { %1533 = vmatpush3.bf16.msra.mxu0 %v1650_v39  ;;  %1194 = vmatprep.mubr.bf16.mxu1 %v1693_v50  ;;  %v1670_v39 = vld [vmem:[#allocation7 + $0x130] sm:$0xff]   ;;  %vm141_vm15 = vcmp.ge.f32.partialorder %v1849_v32, %v1340_v58  ;;  %vm178_vm0 = vmxor %vm136_vm14, %vm1775_vm4  ;;  %v288_v46 = vmul.f32 %v1360_v1, %v2028_v17  ;;  %1686 = vpow2.f32 %v65_v5  ;;  %v1362_v50 = vld [vmem:[#allocation5 + $0xa] ss:$0 sm:$0xff]  ;;  %v471_v23 = vmul.f32 %v2038_v29, %v2001_v53 }
  0x68   :  { %1534 = vmatprep.subr.bf16.mxu0 %v1653_v44  ;;  %1195 = vmatmul.mubr.bf16.vlgmr.msra.gmra.mrb[0].mxu1 %v1692_v37  ;;  %v1673_v44 = vld [vmem:[#allocation7 + $0x178] sm:$0xff]   ;;  %v286_v8 = vadd.f32 %v285_v42, %v277_v34  ;;  %vm179_vm1 = vmand %vm131_vm11, %vm178_vm0  ;;  %v300_v37 = vmul.f32 %v1361_v20, %v299_v15 }
  0x69   :  { %1553 = vmatpush3.bf16.msra.mxu1 %v1648_v45  ;;  %v274_v45 = vadd.f32 %v273_v33, %v265_v3  ;;  %vm182_vm2 = vmxor %vm141_vm15, %vm1775_vm4  ;;  %v386_v3 = vmul.f32 %v1370_v22, %v2009_v62  ;;  %v1675_v24 = vld [vmem:[#allocation7 + $0x1f8] sm:$0xff]   ;;  %vm1777_vm4 = vmmov 0  }
  0x6a   :  { %1554 = vmatprep.subr.bf16.mxu1 %v1651_v49  ;;  %v290_v49 = vsub.f32 %v1339_v36, %v1849_v32  ;;  %v384_v59 = vmul.f32 %v383_v28, %v286_v8  ;;  %vm183_vm3 = vmand %vm136_vm14, %vm182_vm2  ;;  %v1676_v42 = vld [vmem:[#allocation7 + $0x1b8] sm:$0xff]  }
  0x6b   :  { %1535 = vmatpush3.bf16.msra.mxu0 %v1654_v51  ;;  %v1371_v51 = vld [vmem:[#allocation5 + $0x14] ss:$0 sm:$0xff]  ;;  %v387_v14 = vmul.f32 %v386_v3, %v286_v8 }
  0x6c   :  { %1536 = vmatprep.subr.bf16.mxu0 %v1657_v52  ;;  %v1668_v52 = vld [vmem:[#allocation7 + $0x1a8] sm:$0xff]   ;;  %v296_v60 = vmul.f32 %v1361_v20, %v290_v49  ;;  %v396_v1 = vmul.f32 %v1371_v51, %v2028_v17 }
  0x6d   :  { %1555 = vmatpush3.bf16.msra.mxu1 %v1652_v55  ;;  %v374_v55 = vmul.f32 %v373_v21, %v274_v45  ;;  %v1672_v21 = vld [vmem:[#allocation7 + $0x1b0] sm:$0xff]  }
  0x6e   :  { %1556 = vmatprep.subr.bf16.mxu1 %v1655_v56  ;;  %v377_v56 = vmul.f32 %v376_v27, %v274_v45  ;;  %v1678_v45 = vld [vmem:[#allocation7 + $0x208] sm:$0xff]  }
  0x6f   :  { %1537 = vmatpush3.bf16.msra.mxu0 %v1658_v57  ;;  %v1350_v57 = vsel %vm179_vm1, 1.0, %v1776_v48  ;;  %v375_v2 = vadd.f32 %v374_v55, %v2019_v7  ;;  %v1681_v55 = vld [vmem:[#allocation7 + $0x220] sm:$0xff]  }
  0x70   :  { %1538 = vmatprep.subr.bf16.mxu0 %v1661_v40  ;;  %v289_v40 = vmul.f32 %v1349_v31, %v288_v46  ;;  %v297_v6 = vmul.f32 %v1350_v57, %v296_v60 }
  0x71   :  { %1557 = vmatpush3.bf16.msra.mxu1 %v1656_v61  ;;  %v301_v61 = vmul.f32 %v1350_v57, %v300_v37  ;;  %v462_v13 = vmul.f32 %v461_v47, %v375_v2  ;;  %v1683_v57 = vld [vmem:[#allocation7 + $0x230] sm:$0xff]  }
  0x72   :  { %1558 = vmatprep.subr.bf16.mxu1 %v1659_v25  ;;  %v302_v25 = vsub.f32 %v1340_v58, %v1849_v32  ;;  %v298_v16 = vadd.f32 %v297_v6, %v289_v40  ;;  %v1677_v58 = vld [vmem:[#allocation7 + $0x200] sm:$0xff]   ;;  %v1684_v40 = vld [vmem:[#allocation7 + $0x238] sm:$0xff]  }
  0x73   :  { %1539 = vmatpush3.bf16.msra.mxu0 %v1662_v63  ;;  %v1372_v63 = vld [vmem:[#allocation5 + $0x15] ss:$0 sm:$0xff] }
  0x74   :  { %1540 = vmatprep.subr.bf16.mxu0 %v1665_v43  ;;  %v1351_v43 = vsel %vm183_vm3, 1.0, %v1776_v48  ;;  %v308_v26 = vmul.f32 %v1362_v50, %v302_v25  ;;  %v403_v7 = vmul.f32 %v1372_v63, %v302_v25  ;;  %v397_v31 = vmul.f32 %v396_v1, %v298_v16  ;;  %v1680_v50 = vld [vmem:[#allocation7 + $0x218] sm:$0xff]  }
  0x75   :  { %1559 = vmatpush3.bf16.msra.mxu1 %v1660_v38  ;;  %v393_v38 = vmul.f32 %v1371_v51, %v290_v49 }
  0x76   :  { %1560 = vmatprep.subr.bf16.mxu1 %v1663_v10  ;;  %v1380_v10 = vld [vmem:[#allocation5 + $0x1f] ss:$0 sm:$0xff]  ;;  %v309_v12 = vmul.f32 %v1351_v43, %v308_v26 }
  0x77   :  { %1541 = vmatpush3.bf16.msra.mxu0 %v1666_v4  ;;  %v385_v4 = vadd.f32 %v384_v59, %v377_v56  ;;  %v478_v5 = vmul.f32 %v1380_v10, %v290_v49  ;;  %v394_v28 = vmul.f32 %v393_v38, %v298_v16  ;;  %v481_v34 = vmul.f32 %v1380_v10, %v2009_v62  ;;  %v1679_v49 = vld [vmem:[#allocation7 + $0x210] sm:$0xff]   ;;  %v1682_v56 = vld [vmem:[#allocation7 + $0x228] sm:$0xff]  }
  0x78   :  { %1542 = vmatprep.subr.bf16.mxu0 %v1669_v11  ;;  %v459_v11 = vmul.f32 %v458_v35, %v375_v2  ;;  %v310_v17 = vadd.f32 %v309_v12, %v301_v61  ;;  %v488_v35 = vmul.f32 %v1381_v18, %v302_v25 }
  0x79   :  { %1561 = vmatpush3.bf16.msra.mxu1 %v1664_v30  ;;  %v469_v15 = vmul.f32 %v468_v19, %v385_v4  ;;  %v1687_v30 = vpop.eup %1686  ;;  %v472_v33 = vmul.f32 %v471_v23, %v385_v4  ;;  %v395_v36 = vadd.f32 %v394_v28, %v387_v14 }
  0x7a   :  { %1562 = vmatprep.subr.bf16.mxu1 %v1667_v41  ;;  %v460_v22 = vadd.f32 %v459_v11, %v2021_v9  ;;  %v404_v41 = vmul.f32 %v403_v7, %v310_v17  ;;  %v67_v9 = vadd.f32 1.0, %v1687_v30 }
  0x7b   :  { %1543 = vmatpush3.bf16.msra.mxu0 %v1670_v39  ;;  %v470_v27 = vadd.f32 %v469_v15, %v462_v13  ;;  %v479_v19 = vmul.f32 %v478_v5, %v395_v36  ;;  %v482_v20 = vmul.f32 %v481_v34, %v395_v36 }
  0x7c   :  { %1544 = vmatprep.subr.bf16.mxu0 %v1673_v44  ;;  %v1694_v53 = vpack.c.bf16 %v460_v22, %v460_v22  ;;  %v405_v47 = vadd.f32 %v404_v41, %v397_v31  ;;  %1688 = vrcp.f32 %v67_v9 }
  0x7d   :  { %1563 = vmatpush3.bf16.msra.mxu1 %v1668_v52  ;;  %v1695_v29 = vpack.c.bf16 %v470_v27, %v470_v27  ;;  %v480_v39 = vadd.f32 %v479_v19, %v472_v33 }
  0x7e   :  { %1564 = vmatprep.subr.bf16.mxu1 %v1671_v54  ;;  %v489_v44 = vmul.f32 %v488_v35, %v405_v47 }
  0x7f   :  { %1545 = vmatpush3.bf16.msra.mxu0 %v1674_v0  ;;  %1234 = vmatprep.mubr.bf16.mxu0 %v1695_v29  ;;  %v1696_v46 = vpack.c.bf16 %v480_v39, %v480_v39 }
  0x80   :  { %1583 = vmatprep.subr.bf16.mxu0 %v1776_v48  ;;  %v490_v62 = vadd.f32 %v489_v44, %v482_v20 }
  0x81   :  { %1565 = vmatpush3.bf16.msra.mxu1 %v1672_v21 }
  0x82   :  { %1566 = vmatprep.subr.bf16.mxu1 %v1675_v24  ;;  %1235 = vmatmul.mubr.bf16.vlgmr.msra.gmra.mrb[4].mxu0 %v1694_v53  ;;  %v1697_v8 = vpack.c.bf16 %v490_v62, %v490_v62 }
  0x83   :  { %1584 = vmatpush3.bf16.msra.mxu0 %v1677_v58  ;;  %1599 = vmatprep.mubr.msk.bf16.mxu0 %vm1777_vm4, %v1776_v48 }
  0x84   :  { %1585 = vmatprep.subr.bf16.mxu0 %v1776_v48  ;;  %1274 = vmatprep.mubr.bf16.mxu1 %v1697_v8 }
  0x85   :  { %1567 = vmatpush3.bf16.msra.mxu1 %v1676_v42 }
  0x86   :  { %v1689_v37 = vpop.eup %1688 }
  0x87   :  { %1586 = vmatpush3.bf16.msra.mxu0 %v1678_v45  ;;  %v69_v51 = vmul.f32 %v1689_v37, %v1849_v32 }
  0x88   :  { %1587 = vmatprep.subr.bf16.mxu0 %v1776_v48  ;;  %1275 = vmatmul.mubr.bf16.vlgmr.msra.gmra.mrb[4].mxu1 %v1696_v46 }
  0x89   :  { %v507_v52 = vpack.c.bf16 %v69_v51, %v69_v51 }
  0x8b   :  { %1588 = vmatpush3.bf16.msra.mxu0 %v1679_v49  ;;  %508 = vst [vmem:[#allocation2 + $0x20] sm:$0xf] %v507_v52 }
  0x8c   :  { %1589 = vmatprep.subr.bf16.mxu0 %v1776_v48 }
  0x8f   :  { %1590 = vmatpush3.bf16.msra.mxu0 %v1680_v50 }
  0x90   :  { %1591 = vmatprep.subr.bf16.mxu0 %v1776_v48 }
  0x92   :  { %v1685_v32 = vld [vmem:[#allocation2 + $0x20] ss:$0 sps:$4 sm:$0xff]  }
  0x93   :  { %1592 = vmatpush3.bf16.msra.mxu0 %v1681_v55 }
  0x94   :  { %1593 = vmatprep.subr.bf16.mxu0 %v1776_v48 }
  0x97   :  { %1594 = vmatpush3.bf16.msra.mxu0 %v1682_v56 }
  0x98   :  { %1595 = vmatprep.subr.bf16.mxu0 %v1776_v48 }
  0x9b   :  { %1596 = vmatpush3.bf16.msra.mxu0 %v1683_v57 }
  0x9c   :  { %1597 = vmatprep.subr.bf16.mxu0 %v1776_v48 }
  0x9f   :  { %1598 = vmatpush3.bf16.msra.mxu0 %v1684_v40 }
  0xa2   :  { %1600 = vmatmul.mubr.bf16.vlgmr.msra.gmra.mrb[8].mxu0 %v1685_v32 }
 0x135   :  { %v1502_v54 = vpop.f32.mrb[0].mxu0 }
 0x136   :  { %v1503_v59 = vpop.f32.mrb[1].mxu0 }
 0x137   :  { %v1504_v60 = vadd.f32 %v1503_v59, %v1502_v54  ;;  %v1505_v61 = vpop.f32.mrb[2].mxu0 }
 0x138   :  { %v1506_v25 = vpop.f32.mrb[3].mxu0 }
 0x13b   :  { %v1524_v63 = vpop.f32.mrb[0].mxu1 }
 0x13c   :  { %v1525_v0 = vpop.f32.mrb[1].mxu1 }
 0x13d   :  { %v1526_v2 = vadd.f32 %v1525_v0, %v1524_v63  ;;  %v1527_v43 = vpop.f32.mrb[2].mxu1 }
 0x13e   :  { %v1528_v3 = vpop.f32.mrb[3].mxu1 }
 0x13f   :  { %v1197_v38 = vadd.f32 %v1526_v2, %v1504_v60 }
 0x155   :  { %v1546_v4 = vpop.f32.mrb[4].mxu0 }
 0x156   :  { %v1547_v6 = vpop.f32.mrb[5].mxu0 }
 0x157   :  { %v1548_v26 = vadd.f32 %v1547_v6, %v1546_v4  ;;  %v1549_v10 = vpop.f32.mrb[6].mxu0 }
 0x158   :  { %v1550_v11 = vpop.f32.mrb[7].mxu0 }
 0x159   :  { %v1237_v48 = vadd.f32 %v1548_v26, %v1197_v38 }
 0x15b   :  { %v1568_v13 = vpop.f32.mrb[4].mxu1 }
 0x15c   :  { %v1569_v14 = vpop.f32.mrb[5].mxu1 }
 0x15d   :  { %v1570_v1 = vadd.f32 %v1569_v14, %v1568_v13  ;;  %v1571_v15 = vpop.f32.mrb[6].mxu1 }
 0x15e   :  { %v1572_v16 = vpop.f32.mrb[7].mxu1 }
 0x15f   :  { %v1277_v12 = vadd.f32 %v1570_v1, %v1237_v48 }
 0x175   :  { %v1316_v7 = vpop.f32.mrb[8].mxu0 }
 0x176   :  { %v1317_v18 = vadd.f32 %v1316_v7, %v1277_v12  ;;  %v1601_v21 = vpop.f32.mrb[9].mxu0 }
 0x177   :  { %v1319_v22 = vpop.f32.mrb[10].mxu0 }
 0x178   :  { %1322 = vst [vmem:[%s2084_s4] sm:$0xff] %v1317_v18  ;;  %v1602_v23 = vpop.f32.mrb[11].mxu0 }
 0x179   :  { %1327 = vsyncpa [#allocation4], 1 }
 0x17a   :  { %1328 = vsyncpa [#allocation6], 1 }

</bundles_post_ra>
